<compile_context>
chip_gen: v7x
topology: tpu7x:2x2x1
jax: 0.10.0
libtpu: 0.0.40
codegen_flags: <defaults>
</compile_context>

<pallas_src>
import functools

import jax
import jax.numpy as jnp
import numpy as np
from jax import lax
from jax.experimental import pallas as pl
from jax.experimental.pallas import tpu as pltpu


def _present_kernel(feat_ref, w_ref, b_ref, out_ref, patch_ref, *, n_classes, nb_pad):
    """One (level, batch) step: fused 3x3 conv (pad=1) + sigmoid + background mask.

    feat_ref:  (Hmax+2, Wmax+2, Cmax)   zero-padded NHWC feature, bf16
    w_ref:     (OCp, 9*Cmax)            class-major packed conv weight, bf16
                                        row = cls*NB + box, col = (kh*3+kw)*Cmax + c
    b_ref:     (OCp, 1)                 class-major bias, f32
    out_ref:   (NB, Hmax*Wmax)          per-box masked max probability, f32 (lane-dense)
    patch_ref: (Hmax*Wmax, 9*Cmax)      im2col scratch, bf16
    """
    Hp, Wp, C = feat_ref.shape
    H, W = Hp - 2, Wp - 2
    M = H * W

    # ---- im2col ONCE into VMEM scratch: column block t holds tap (dy, dx) ----
    for dy in range(3):
        for dx in range(3):
            t = dy * 3 + dx
            tap = feat_ref[dy:dy + H, dx:dx + W, :]          # (H, W, C) bf16
            patch_ref[:, t * C:(t + 1) * C] = tap.reshape(M, C)

    # ---- single K = 9*C MXU matmul, transposed (lane-dense) orientation ----
    # (OCp, 9C) . (M, 9C) contracted on the last dims -> (OCp, M), f32 accumulate.
    logits_t = lax.dot_general(
        w_ref[...], patch_ref[...],
        dimension_numbers=(((1,), (1,)), ((), ())),
        preferred_element_type=jnp.float32) + b_ref[...]     # (OCp, M) f32

    # ---- class-major epilogue: pure VPU, n_classes-1 element-wise maxima ----
    g0 = logits_t[0:nb_pad, :]                               # class-0 logits (NB, M)
    mx = g0
    for c in range(1, n_classes):
        mx = jnp.maximum(mx, logits_t[c * nb_pad:(c + 1) * nb_pad, :])
    # Background iff class 0 attains the group max (torch argmax==0, first-occurrence
    # tie-break); sigmoid only on the nb_pad winning logits (monotone => exact).
    out_ref[...] = jnp.where(g0 >= mx, 0.0, jax.nn.sigmoid(mx))


def present_encoder(features_nchw, params, n_classes, normalize_probas=False):
    """SSDIR PresentEncoder forward: list of NCHW features + per-level
    (conv_w (OC,C,3,3), conv_b (OC,)) -> (B, sum(H*W*n_boxes), 1)."""
    L = len(features_nchw)
    B = int(features_nchw[0].shape[0])
    shapes = [(int(f.shape[1]), int(f.shape[2]), int(f.shape[3]))
              for f in features_nchw]                        # (C, H, W) per level
    n_boxes = [int(w.shape[0]) // n_classes for w, _ in params]

    Cmax = max(c for c, _, _ in shapes)
    Hmax = max(h for _, h, _ in shapes)
    Wmax = max(w for _, _, w in shapes)
    NB = -(-max(n_boxes) // 8) * 8          # boxes padded to a sublane multiple
    OCp = n_classes * NB                    # class-major padded output channels
    Hp, Wp = Hmax + 2, Wmax + 2
    Mp = Hmax * Wmax

    # --- pack all levels into common-shaped, zero-padded stacks (host-side glue) ---
    feats, ws, bs = [], [], []
    for (feat, (w, b)), (C, H, W), nb in zip(zip(features_nchw, params),
                                             shapes, n_boxes):
        assert w.shape == (nb * n_classes, C, 3, 3), "cls_header must be a 3x3 conv"
        # NCHW -> NHWC, 1-px zero halo + pad up to (Hp, Wp, Cmax).
        x = jnp.transpose(feat, (0, 2, 3, 1))
        x = jnp.pad(x, ((0, 0), (1, Hp - H - 1), (1, Wp - W - 1), (0, Cmax - C)))
        feats.append(x.astype(jnp.bfloat16))

        # Class-major, box-padded output channels: new row = cls*NB + box.
        w_cm = jnp.zeros((n_classes, NB, Cmax, 3, 3), jnp.float32)
        w_src = jnp.transpose(w.reshape(nb, n_classes, C, 3, 3), (1, 0, 2, 3, 4))
        w_cm = w_cm.at[:, :nb, :C].set(w_src.astype(jnp.float32))
        # (OCp, Cmax, 3, 3) -> (OCp, 9*Cmax) with column = (kh*3+kw)*Cmax + c.
        w_pk = jnp.transpose(w_cm.reshape(OCp, Cmax, 3, 3),
                             (0, 2, 3, 1)).reshape(OCp, 9 * Cmax)
        ws.append(w_pk.astype(jnp.bfloat16))

        b_cm = jnp.zeros((n_classes, NB), jnp.float32)
        b_cm = b_cm.at[:, :nb].set(b.reshape(nb, n_classes).T.astype(jnp.float32))
        bs.append(b_cm.reshape(OCp, 1))

    feat_all = jnp.stack(feats)             # (L, B, Hp, Wp, Cmax) bf16
    w_all = jnp.stack(ws)                   # (L, OCp, 9*Cmax)     bf16
    b_all = jnp.stack(bs)                   # (L, OCp, 1)          f32

    kernel = functools.partial(_present_kernel, n_classes=n_classes, nb_pad=NB)
    out = pl.pallas_call(
        kernel,
        out_shape=jax.ShapeDtypeStruct((L, B, NB, Mp), jnp.float32),
        grid=(L, B),
        in_specs=[
            pl.BlockSpec((None, None, Hp, Wp, Cmax), lambda l, b: (l, b, 0, 0, 0)),
            pl.BlockSpec((None, OCp, 9 * Cmax), lambda l, b: (l, 0, 0)),
            pl.BlockSpec((None, OCp, 1), lambda l, b: (l, 0, 0)),
        ],
        out_specs=pl.BlockSpec((None, None, NB, Mp), lambda l, b: (l, b, 0, 0)),
        scratch_shapes=[pltpu.VMEM((Mp, 9 * Cmax), jnp.bfloat16)],
        compiler_params=pltpu.CompilerParams(
            dimension_semantics=("parallel", "parallel")),
    )(feat_all, w_all, b_all)

    # --- unpack: drop padded boxes/spatial entries, restore torch view order ---
    presents = []
    for li, ((_, H, W), nb) in enumerate(zip(shapes, n_boxes)):
        o = out[li].reshape(B, NB, Hmax, Wmax)[:, :nb, :H, :W]      # (B, nb, H, W)
        presents.append(jnp.transpose(o, (0, 2, 3, 1)).reshape(B, H * W * nb, 1))
    presents = jnp.concatenate(presents, axis=1)                    # (B, sum, 1)

    if normalize_probas:
        maxes = jnp.max(presents, axis=1)                           # (B, 1)
        maxes = jnp.where(maxes == 0.0, 1.0, maxes)
        presents = presents / maxes[:, None, :]
    return presents


def _reference(features_nchw, params, n_classes, normalize_probas=False):
    """Pure-JAX replica of the PyTorch forward (bf16 matmul operands to match the
    kernel's compute precision).  Also returns the per-box decision margin
    |p_class0 - max(p_other)| used to exempt numerical argmax near-ties."""
    outs, margins = [], []
    for feat, (w, b) in zip(features_nchw, params):
        B = feat.shape[0]
        y = lax.conv_general_dilated(
            feat.astype(jnp.bfloat16), w.astype(jnp.bfloat16),
            window_strides=(1, 1), padding="SAME",
            dimension_numbers=("NCHW", "OIHW", "NCHW"),
            preferred_element_type=jnp.float32) + b[None, :, None, None]
        logits = jnp.transpose(y, (0, 2, 3, 1)).reshape(B, -1, n_classes)
        probs = jax.nn.sigmoid(logits)
        mx = jnp.max(probs, axis=-1, keepdims=True)
        am = jnp.argmax(probs, axis=-1, keepdims=True)
        outs.append(jnp.where(am == 0, jnp.zeros_like(mx), mx))
        rest = jnp.max(probs[..., 1:], axis=-1, keepdims=True)
        margins.append(jnp.abs(probs[..., 0:1] - rest))
    out = jnp.concatenate(outs, axis=1)
    margin = jnp.concatenate(margins, axis=1)
    if normalize_probas:
        maxes = jnp.max(out, axis=1)
        maxes = jnp.where(maxes == 0.0, 1.0, maxes)
        out = out / maxes[:, None, :]
    return out, margin


if __name__ == "__main__":
    key = jax.random.PRNGKey(0)

    n_classes = 4          # includes background class 0
    level_cfgs = [         # (in_channels, H, W, boxes_per_location)
        (8, 16, 16, 4),
        (16, 8, 8, 4),
    ]
    batch = 2

    features, params = [], []
    for C, H, W, nb in level_cfgs:
        key, kf, kw, kb = jax.random.split(key, 4)
        features.append(jax.random.normal(kf, (batch, C, H, W), jnp.float32))
        w = 0.05 * jax.random.normal(kw, (nb * n_classes, C, 3, 3), jnp.float32)
        b = 0.05 * jax.random.normal(kb, (nb * n_classes,), jnp.float32)
        params.append((w, b))

    out = jax.block_until_ready(
        present_encoder(features, params, n_classes, normalize_probas=False))

    ref, margin = _reference(features, params, n_classes, normalize_probas=False)
    ref = jax.block_until_ready(ref)

    total = sum(H * W * nb for _, H, W, nb in level_cfgs)
    assert out.shape == (batch, total, 1)

    out_np = np.asarray(out)
    ref_np = np.asarray(ref)
    mg = np.asarray(margin)
    # Positions where class-0 vs best-other probability is a numerical near-tie have
    # an accumulation-order-dependent argmax; exempt only those (a fraction of a
    # percent of boxes), keep the check strict everywhere else.
    near_tie = mg < 1e-3
    assert near_tie.mean() < 0.02
    ok = np.isclose(out_np, ref_np, atol=5e-3) | near_tie
    assert ok.all(), f"mismatch at indices {np.argwhere(~ok)[:5]}"

    # normalize_probas branch (wrapper-level math) checked against numpy.
    out_norm = jax.block_until_ready(
        present_encoder(features, params, n_classes, normalize_probas=True))
    mx = out_np.max(axis=1, keepdims=True)
    mx[mx == 0.0] = 1.0
    np.testing.assert_allclose(np.asarray(out_norm), out_np / mx, atol=1e-5, rtol=0)

    print("KERNEL_OK")
</pallas_src>

<mosaic_0001>
module attributes {stable_mosaic.version = 11 : i64} {
  func.func @_present_kernel(%arg0: i32, %arg1: i32, %arg2: memref<1x1x18x18x16xbf16, #tpu.memory_space<vmem>>, %arg3: memref<1x32x144xbf16, #tpu.memory_space<vmem>>, %arg4: memref<1x32x1xf32, #tpu.memory_space<vmem>>, %arg5: memref<1x1x8x256xf32, #tpu.memory_space<vmem>>, %arg6: memref<256x144xbf16, #tpu.memory_space<vmem>>) attributes {dimension_semantics = [#tpu.dimension_semantics<parallel>, #tpu.dimension_semantics<parallel>], iteration_bounds = array<i64: 2, 2>, scalar_prefetch = 0 : i64, scratch_operands = 1 : i64, tpu.core_type = #tpu.core_type<tc>, window_params = [{transform_indices = @transform_0, window_bounds = array<i64: 1, 1, 18, 18, 16>}, {transform_indices = @transform_1, window_bounds = array<i64: 1, 32, 144>}, {transform_indices = @transform_2, window_bounds = array<i64: 1, 32, 1>}, {transform_indices = @transform_3, window_bounds = array<i64: 1, 1, 8, 256>}]} {
    %c0 = arith.constant 0 : index
    %c0_0 = arith.constant 0 : index
    %c0_1 = arith.constant 0 : index
    %c0_2 = arith.constant 0 : index
    %c0_3 = arith.constant 0 : index
    %0 = vector.load %arg2[%c0, %c0_0, %c0_1, %c0_2, %c0_3] : memref<1x1x18x18x16xbf16, #tpu.memory_space<vmem>>, vector<1x1x16x16x16xbf16>
    %1 = vector.shape_cast %0 : vector<1x1x16x16x16xbf16> to vector<16x16x16xbf16>
    %2 = vector.shape_cast %1 : vector<16x16x16xbf16> to vector<256x16xbf16>
    %c0_4 = arith.constant 0 : index
    %c0_5 = arith.constant 0 : index
    %3 = vector.load %arg6[%c0_4, %c0_5] : memref<256x144xbf16, #tpu.memory_space<vmem>>, vector<256x16xbf16>
    tpu.vector_store %arg6[%c0_4, %c0_5], %2 {strides = array<i32>} : memref<256x144xbf16, #tpu.memory_space<vmem>>, vector<256x16xbf16>,
    %c0_6 = arith.constant 0 : index
    %c0_7 = arith.constant 0 : index
    %c0_8 = arith.constant 0 : index
    %c1 = arith.constant 1 : index
    %c0_9 = arith.constant 0 : index
    %4 = vector.load %arg2[%c0_6, %c0_7, %c0_8, %c1, %c0_9] : memref<1x1x18x18x16xbf16, #tpu.memory_space<vmem>>, vector<1x1x16x16x16xbf16>
    %5 = vector.shape_cast %4 : vector<1x1x16x16x16xbf16> to vector<16x16x16xbf16>
    %6 = vector.shape_cast %5 : vector<16x16x16xbf16> to vector<256x16xbf16>
    %c0_10 = arith.constant 0 : index
    %c16 = arith.constant 16 : index
    %7 = vector.load %arg6[%c0_10, %c16] : memref<256x144xbf16, #tpu.memory_space<vmem>>, vector<256x16xbf16>
    tpu.vector_store %arg6[%c0_10, %c16], %6 {strides = array<i32>} : memref<256x144xbf16, #tpu.memory_space<vmem>>, vector<256x16xbf16>,
    %c0_11 = arith.constant 0 : index
    %c0_12 = arith.constant 0 : index
    %c0_13 = arith.constant 0 : index
    %c2 = arith.constant 2 : index
    %c0_14 = arith.constant 0 : index
    %8 = vector.load %arg2[%c0_11, %c0_12, %c0_13, %c2, %c0_14] : memref<1x1x18x18x16xbf16, #tpu.memory_space<vmem>>, vector<1x1x16x16x16xbf16>
    %9 = vector.shape_cast %8 : vector<1x1x16x16x16xbf16> to vector<16x16x16xbf16>
    %10 = vector.shape_cast %9 : vector<16x16x16xbf16> to vector<256x16xbf16>
    %c0_15 = arith.constant 0 : index
    %c32 = arith.constant 32 : index
    %11 = vector.load %arg6[%c0_15, %c32] : memref<256x144xbf16, #tpu.memory_space<vmem>>, vector<256x16xbf16>
    tpu.vector_store %arg6[%c0_15, %c32], %10 {strides = array<i32>} : memref<256x144xbf16, #tpu.memory_space<vmem>>, vector<256x16xbf16>,
    %c0_16 = arith.constant 0 : index
    %c0_17 = arith.constant 0 : index
    %c1_18 = arith.constant 1 : index
    %c0_19 = arith.constant 0 : index
    %c0_20 = arith.constant 0 : index
    %12 = vector.load %arg2[%c0_16, %c0_17, %c1_18, %c0_19, %c0_20] : memref<1x1x18x18x16xbf16, #tpu.memory_space<vmem>>, vector<1x1x16x16x16xbf16>
    %13 = vector.shape_cast %12 : vector<1x1x16x16x16xbf16> to vector<16x16x16xbf16>
    %14 = vector.shape_cast %13 : vector<16x16x16xbf16> to vector<256x16xbf16>
    %c0_21 = arith.constant 0 : index
    %c48 = arith.constant 48 : index
    %15 = vector.load %arg6[%c0_21, %c48] : memref<256x144xbf16, #tpu.memory_space<vmem>>, vector<256x16xbf16>
    tpu.vector_store %arg6[%c0_21, %c48], %14 {strides = array<i32>} : memref<256x144xbf16, #tpu.memory_space<vmem>>, vector<256x16xbf16>,
    %c0_22 = arith.constant 0 : index
    %c0_23 = arith.constant 0 : index
    %c1_24 = arith.constant 1 : index
    %c1_25 = arith.constant 1 : index
    %c0_26 = arith.constant 0 : index
    %16 = vector.load %arg2[%c0_22, %c0_23, %c1_24, %c1_25, %c0_26] : memref<1x1x18x18x16xbf16, #tpu.memory_space<vmem>>, vector<1x1x16x16x16xbf16>
    %17 = vector.shape_cast %16 : vector<1x1x16x16x16xbf16> to vector<16x16x16xbf16>
    %18 = vector.shape_cast %17 : vector<16x16x16xbf16> to vector<256x16xbf16>
    %c0_27 = arith.constant 0 : index
    %c64 = arith.constant 64 : index
    %19 = vector.load %arg6[%c0_27, %c64] : memref<256x144xbf16, #tpu.memory_space<vmem>>, vector<256x16xbf16>
    tpu.vector_store %arg6[%c0_27, %c64], %18 {strides = array<i32>} : memref<256x144xbf16, #tpu.memory_space<vmem>>, vector<256x16xbf16>,
    %c0_28 = arith.constant 0 : index
    %c0_29 = arith.constant 0 : index
    %c1_30 = arith.constant 1 : index
    %c2_31 = arith.constant 2 : index
    %c0_32 = arith.constant 0 : index
    %20 = vector.load %arg2[%c0_28, %c0_29, %c1_30, %c2_31, %c0_32] : memref<1x1x18x18x16xbf16, #tpu.memory_space<vmem>>, vector<1x1x16x16x16xbf16>
    %21 = vector.shape_cast %20 : vector<1x1x16x16x16xbf16> to vector<16x16x16xbf16>
    %22 = vector.shape_cast %21 : vector<16x16x16xbf16> to vector<256x16xbf16>
    %c0_33 = arith.constant 0 : index
    %c80 = arith.constant 80 : index
    %23 = vector.load %arg6[%c0_33, %c80] : memref<256x144xbf16, #tpu.memory_space<vmem>>, vector<256x16xbf16>
    tpu.vector_store %arg6[%c0_33, %c80], %22 {strides = array<i32>} : memref<256x144xbf16, #tpu.memory_space<vmem>>, vector<256x16xbf16>,
    %c0_34 = arith.constant 0 : index
    %c0_35 = arith.constant 0 : index
    %c2_36 = arith.constant 2 : index
    %c0_37 = arith.constant 0 : index
    %c0_38 = arith.constant 0 : index
    %24 = vector.load %arg2[%c0_34, %c0_35, %c2_36, %c0_37, %c0_38] : memref<1x1x18x18x16xbf16, #tpu.memory_space<vmem>>, vector<1x1x16x16x16xbf16>
    %25 = vector.shape_cast %24 : vector<1x1x16x16x16xbf16> to vector<16x16x16xbf16>
    %26 = vector.shape_cast %25 : vector<16x16x16xbf16> to vector<256x16xbf16>
    %c0_39 = arith.constant 0 : index
    %c96 = arith.constant 96 : index
    %27 = vector.load %arg6[%c0_39, %c96] : memref<256x144xbf16, #tpu.memory_space<vmem>>, vector<256x16xbf16>
    tpu.vector_store %arg6[%c0_39, %c96], %26 {strides = array<i32>} : memref<256x144xbf16, #tpu.memory_space<vmem>>, vector<256x16xbf16>,
    %c0_40 = arith.constant 0 : index
    %c0_41 = arith.constant 0 : index
    %c2_42 = arith.constant 2 : index
    %c1_43 = arith.constant 1 : index
    %c0_44 = arith.constant 0 : index
    %28 = vector.load %arg2[%c0_40, %c0_41, %c2_42, %c1_43, %c0_44] : memref<1x1x18x18x16xbf16, #tpu.memory_space<vmem>>, vector<1x1x16x16x16xbf16>
    %29 = vector.shape_cast %28 : vector<1x1x16x16x16xbf16> to vector<16x16x16xbf16>
    %30 = vector.shape_cast %29 : vector<16x16x16xbf16> to vector<256x16xbf16>
    %c0_45 = arith.constant 0 : index
    %c112 = arith.constant 112 : index
    %31 = vector.load %arg6[%c0_45, %c112] : memref<256x144xbf16, #tpu.memory_space<vmem>>, vector<256x16xbf16>
    tpu.vector_store %arg6[%c0_45, %c112], %30 {strides = array<i32>} : memref<256x144xbf16, #tpu.memory_space<vmem>>, vector<256x16xbf16>,
    %c0_46 = arith.constant 0 : index
    %c0_47 = arith.constant 0 : index
    %c2_48 = arith.constant 2 : index
    %c2_49 = arith.constant 2 : index
    %c0_50 = arith.constant 0 : index
    %32 = vector.load %arg2[%c0_46, %c0_47, %c2_48, %c2_49, %c0_50] : memref<1x1x18x18x16xbf16, #tpu.memory_space<vmem>>, vector<1x1x16x16x16xbf16>
    %33 = vector.shape_cast %32 : vector<1x1x16x16x16xbf16> to vector<16x16x16xbf16>
    %34 = vector.shape_cast %33 : vector<16x16x16xbf16> to vector<256x16xbf16>
    %c0_51 = arith.constant 0 : index
    %c128 = arith.constant 128 : index
    %35 = vector.load %arg6[%c0_51, %c128] : memref<256x144xbf16, #tpu.memory_space<vmem>>, vector<256x16xbf16>
    tpu.vector_store %arg6[%c0_51, %c128], %34 {strides = array<i32>} : memref<256x144xbf16, #tpu.memory_space<vmem>>, vector<256x16xbf16>,
    %c0_52 = arith.constant 0 : index
    %c0_53 = arith.constant 0 : index
    %c0_54 = arith.constant 0 : index
    %36 = vector.load %arg3[%c0_52, %c0_53, %c0_54] : memref<1x32x144xbf16, #tpu.memory_space<vmem>>, vector<1x32x144xbf16>
    %37 = vector.shape_cast %36 : vector<1x32x144xbf16> to vector<32x144xbf16>
    %c0_55 = arith.constant 0 : index
    %c0_56 = arith.constant 0 : index
    %38 = vector.load %arg6[%c0_55, %c0_56] : memref<256x144xbf16, #tpu.memory_space<vmem>>, vector<256x144xbf16>
    %cst = arith.constant dense<0.000000e+00> : vector<32x256xf32>
    %39 = tpu.matmul %37, %38, %cst {dimension_numbers = #tpu.dot_dimension_numbers<[1], [1], [0], [0], [0, 0, 1, 0], [], []>} : vector<32x144xbf16>, vector<256x144xbf16>, vector<32x256xf32> -> vector<32x256xf32>
    %c0_57 = arith.constant 0 : index
    %c0_58 = arith.constant 0 : index
    %c0_59 = arith.constant 0 : index
    %40 = vector.load %arg4[%c0_57, %c0_58, %c0_59] : memref<1x32x1xf32, #tpu.memory_space<vmem>>, vector<1x32x1xf32>
    %41 = vector.shape_cast %40 : vector<1x32x1xf32> to vector<32x1xf32>
    %42 = vector.broadcast %41 : vector<32x1xf32> to vector<32x256xf32>
    %43 = arith.addf %39, %42 : vector<32x256xf32>
    %44 = vector.extract_strided_slice %43 {offsets = [0, 0], sizes = [8, 256], strides = [1, 1]} : vector<32x256xf32> to vector<8x256xf32>
    %45 = vector.extract_strided_slice %43 {offsets = [8, 0], sizes = [8, 256], strides = [1, 1]} : vector<32x256xf32> to vector<8x256xf32>
    %46 = arith.maximumf %44, %45 : vector<8x256xf32>
    %47 = vector.extract_strided_slice %43 {offsets = [16, 0], sizes = [8, 256], strides = [1, 1]} : vector<32x256xf32> to vector<8x256xf32>
    %48 = arith.maximumf %46, %47 : vector<8x256xf32>
    %49 = vector.extract_strided_slice %43 {offsets = [24, 0], sizes = [8, 256], strides = [1, 1]} : vector<32x256xf32> to vector<8x256xf32>
    %50 = arith.maximumf %48, %49 : vector<8x256xf32>
    %51 = arith.cmpf oge, %44, %50 : vector<8x256xf32>
    %52 = arith.negf %50 : vector<8x256xf32>
    %53 = math.exp %52 : vector<8x256xf32>
    %cst_60 = arith.constant 1.000000e+00 : f32
    %54 = vector.broadcast %cst_60 : f32 to vector<8x256xf32>
    %55 = arith.addf %54, %53 : vector<8x256xf32>
    %56 = arith.divf %54, %55 : vector<8x256xf32>
    %cst_61 = arith.constant 0.000000e+00 : f32
    %57 = vector.broadcast %cst_61 : f32 to vector<8x256xf32>
    %58 = arith.select %51, %57, %56 : vector<8x256xi1>, vector<8x256xf32>
    %c0_62 = arith.constant 0 : index
    %c0_63 = arith.constant 0 : index
    %c0_64 = arith.constant 0 : index
    %c0_65 = arith.constant 0 : index
    %59 = vector.load %arg5[%c0_62, %c0_63, %c0_64, %c0_65] : memref<1x1x8x256xf32, #tpu.memory_space<vmem>>, vector<1x1x8x256xf32>
    %60 = vector.shape_cast %59 : vector<1x1x8x256xf32> to vector<8x256xf32>
    %61 = vector.shape_cast %58 : vector<8x256xf32> to vector<1x1x8x256xf32>
    tpu.vector_store %arg5[%c0_62, %c0_63, %c0_64, %c0_65], %61 {strides = array<i32>} : memref<1x1x8x256xf32, #tpu.memory_space<vmem>>, vector<1x1x8x256xf32>,
    return
  }
  func.func @transform_0(%arg0: i32, %arg1: i32) -> (i32, i32, i32, i32, i32) {
    %c0_i32 = arith.constant 0 : i32
    %c0_i32_0 = arith.constant 0 : i32
    %c0_i32_1 = arith.constant 0 : i32
    %c0_i32_2 = arith.constant 0 : i32
    return %arg0, %arg1, %c0_i32, %c0_i32_0, %c0_i32_1 : i32, i32, i32, i32, i32
  }
  func.func @transform_1(%arg0: i32, %arg1: i32) -> (i32, i32, i32) {
    %c0_i32 = arith.constant 0 : i32
    %c0_i32_0 = arith.constant 0 : i32
    %c0_i32_1 = arith.constant 0 : i32
    return %arg0, %c0_i32, %c0_i32_0 : i32, i32, i32
  }
  func.func @transform_2(%arg0: i32, %arg1: i32) -> (i32, i32, i32) {
    %c0_i32 = arith.constant 0 : i32
    %c0_i32_0 = arith.constant 0 : i32
    %c0_i32_1 = arith.constant 0 : i32
    return %arg0, %c0_i32, %c0_i32_0 : i32, i32, i32
  }
  func.func @transform_3(%arg0: i32, %arg1: i32) -> (i32, i32, i32, i32) {
    %c0_i32 = arith.constant 0 : i32
    %c0_i32_0 = arith.constant 0 : i32
    %c0_i32_1 = arith.constant 0 : i32
    return %arg0, %arg1, %c0_i32, %c0_i32_0 : i32, i32, i32, i32
  }
}

</mosaic_0001>

<bundles_post_ra>
// kernel: tpu_custom_call.1
= control target key start
LH: loop header
LB: loop body
LE: loop exit
PB: predicated region body
PF: predicated region fallthrough
CT: control target
= control target key end

     0   :  { %8 = vsyncpa [#allocation4], 0  ;;  %s5681_s0 = inlined_call_operand.vmem [shape: bf16[2,2,18,18,16], index: 0, kind: input, shape index: {}]   ;;  %s5682_s1 = inlined_call_operand.vmem [shape: bf16[2,32,144], index: 1, kind: input, shape index: {}]   ;;  %s5683_s2 = inlined_call_operand.vmem [shape: f32[2,32,1], index: 2, kind: input, shape index: {}]   ;;  %s5684_s3 = inlined_call_operand.hbm [shape: f32[2,2,8,256], index: 3, kind: output, shape index: {}]  }
   0x1   :  { %10 = vsyncpa [#allocation4 + $0x1], 0  ;;  %s4434_s12 = smov 0   ;;  %s4436_s13 = smov 0  }
   0x2   :  { %s4438_s14 = smov 0   ;;  %s4440_s15 = smov 0  }
   0x3   :  { %s4442_s16 = smov 0   ;;  %s4444_s17 = smov 0  }
   0x4   :  { %s4446_s18 = smov 0   ;;  %s4448_s19 = smov 0  }
   0x5 LB: > { %s3641_s20 = sadd.s32 4294967295, %s4403_s19   ;;  %s3642_s21 = sadd.s32 4294967294, %s4403_s19   ;;  %s4403_s19 = sphi %s4448_s19, %s16_s19   ;;  %s4399_s18 = sphi %s4446_s18, %s5697_s18   ;;  %s4395_s17 = sphi %s4444_s17, %s5696_s17   ;;  %s4391_s16 = sphi %s4442_s16, %s5695_s16   ;;  %s4387_s15 = sphi %s4440_s15, %s5694_s15   ;;  %s4383_s14 = sphi %s4438_s14, %s5693_s14   ;;  %s4379_s13 = sphi %s4436_s13, %s5692_s13   ;;  %s4375_s12 = sphi %s4434_s12, %s5691_s12  }
   0x6   : > { %s25_s22 = sadd.s32 1, %s4395_s17  ;;  %s28_s23 = sadd.s32 1, %s4399_s18 }
   0x7   : > { %p26_p0 = scmp.ge.s32.totalorder %s25_s22, 2  ;;  %p127_p1 = scmp.ne.s32.totalorder %s4383_s14, %s4379_s13 }
   0x8   : > { %p128_p2 = scmp.eq.s32.totalorder %s3641_s20, 3  ;;  %p133_p5 = scmp.ne.s32.totalorder %s4379_s13, %s4375_s12 }
   0x9   : > { %s5699_s22 = smov (%p26_p0, %s25_s22), 0  ;;  %s5701_s23 = smov (!%p26_p0, %s28_s23), %s4399_s18 }
   0xa   : > { %s113_s24 = ssub.s32 %s4395_s17, %s5699_s22  ;;  %p4485_p3 = por %p128_p2, %p127_p1 }
   0xb   : > { %p30_p4 = scmp.ge.s32.totalorder %s5701_s23, 2  ;;  %p134_p6 = scmp.eq.s32.totalorder %s3642_s21, 3 }
   0xc   : > { %p3645_p7 = scmp.ge.s32.totalorder %s4403_s19, 1  ;;  %p180_p9 = scmp.lt.s32.totalorder %s4403_s19, 5 }
   0xd   : > { %s5703_s23 = smov (%p30_p4, %s5701_s23), 0  ;;  %p4494_p8 = por %p134_p6, %p133_p5 }
   0xe   : > { %s112_s27 = ssub.s32 %s4399_s18, %s5703_s23  ;;  %s117_s28 = sadd.s32 1, %s4383_s14 }
   0xf   : > { %s114_s29 = sor.u32 %s113_s24, %s112_s27  ;;  %p181_p10 = pnand %p3645_p7, %p180_p9 }
  0x10   : > { %p115_p11 = scmp.eq.s32.totalorder %s114_s29, 0  ;;  %p218_p12 = scmp.lt.s32.totalorder (!%p181_p10), %s4391_s16, 1  ;;  %vm1026_vm0 = vcmask (!%p181_p10), 1042432   ;;  %vm1027_vm1 = vcmask (!%p181_p10), 1046532   ;;  %vm430_vm3 = vsmask.f32 (!%p181_p10), 3328 }
  0x11   : > { %184 = sbr.rel (%p181_p10) target bundleno = 708 (0x2c4), region = 32  ;;  %p220_p13 = scmp.lt.s32.totalorder (!%p181_p10), %s4387_s15, 1  ;;  %vm4517_vm2 = vmor (!%p181_p10), %vm1026_vm0, %vm1027_vm1  ;;  %vm431_vm4 = vsmask.f32 (!%p181_p10), 7440  ;;  %vm365_vm6 = vcmask (!%p181_p10), 130048   ;;  %vm913_vm7 = vcmask (!%p181_p10), 261248  }
  0x12   : > { %s4503_s30 = scalar_select %p115_p11, %s4383_s14, %s117_s28  }
  0x13   : > { %s4405_s21 = smov (!%p181_p10), 48   ;;  %s4406_s24 = smov (!%p181_p10), 96   ;;  %vm4567_vm5 = vmor (!%p181_p10), %vm430_vm3, %vm431_vm4  ;;  %vm1237_vm8 = vcmask (!%p181_p10), 392448   ;;  %vm1415_vm9 = vcmask (!%p181_p10), 523648   ;;  %vm1960_vm10 = vcmask (!%p181_p10), 654848   ;;  %vm2281_vm11 = vcmask (!%p181_p10), 786048  }
  0x14   : > { %s4407_s27 = smov (!%p181_p10), 32   ;;  %s4408_s28 = smov (!%p181_p10), 80   ;;  %vm2459_vm12 = vcmask (!%p181_p10), 917248   ;;  %vm3004_vm13 = vcmask (!%p181_p10), 1048448  }
  0x15   : > { %s4409_s29 = smov (!%p181_p10), 64   ;;  %s4413_s11 = smov (!%p181_p10), [#allocation3]  }
  0x18   : > { %s4508_s4 = scalar_select %p218_p12, %s4391_s16, 1 }
  0x19   : > { %s221_s5 = scalar_select %p220_p13, %s4387_s15, 1 }
  0x1a   : > { %s4165_s6 = smul.u32 108, %s4508_s4 }
  0x1b   : > { %s4164_s7 = smul.u32 54, %s221_s5  ;;  %s4410_s5 = smov 16  }
  0x1d   : > { %s224_s8 = sadd.s32 %s4165_s6, %s4164_s7  ;;  %s4411_s6 = smov 112  }
  0x1e   : > { %s3647_s9 = sshll.u32 %s224_s8, 2  ;;  %s4130_s7 = sshll.u32 %s4508_s4, 5 }
  0x1f   : > { %s4515_s20 = scalar_lea.vmem %s5681_s0, %s3647_s9  ;;  %s5487_s10 = scalar_lea.vmem %s5682_s1, %s4130_s7 }
  0x20   : > { %v4247_v1 = vld [vmem:[%s4515_s20 + $0xc] sm:$0xff]   ;;  %v4248_v2 = vld [vmem:[%s4515_s20 + $0x18] sm:$0xff]   ;;  %v930_v3 = vld [vmem:[%s4515_s20] sm:$0xe]  ;;  %s215_s4 = sand.u32 1, %s4379_s13  }
  0x21   : > { %1367 = vrot.lane.b32.xlu1 %v4247_v1, %s4405_s21  ;;  %v931_v4 = vld [vmem:[%s4515_s20 + $0x4] sm:$0xf]  ;;  %v932_v5 = vld [vmem:[%s4515_s20 + $0x8] sm:$0x1]  ;;  %v3684_v6 = vrot.slane %v930_v3, 9  ;;  %v4249_v16 = vld [vmem:[%s4515_s20 + $0x18] sm:$0xff]  }
  0x22   : > { %v1031_v7 = vrot.slane %v931_v4, 5  ;;  %v1034_v8 = vrot.slane %v932_v5, 5  ;;  %v3828_v9 = vld [vmem:[%s4515_s20 + $0xc] sm:$0xe]  ;;  %v3829_v10 = vld [vmem:[%s4515_s20 + $0x10] sm:$0xf] }
  0x23   : > { %v3830_v13 = vld [vmem:[%s4515_s20 + $0x14] sm:$0x1]  ;;  %v3876_v14 = vrot.slane %v3828_v9, 9  ;;  %v2075_v15 = vrot.slane %v3829_v10, 5  ;;  %v3831_v18 = vld [vmem:[%s4515_s20 + $0x18] sm:$0xe] }
  0x24   : > { %v1032_v11 = vsel %vm4517_vm2, %v3684_v6, %v1031_v7  ;;  %v1033_v12 = vrot.slane %v1031_v7, 4  ;;  %v2078_v17 = vrot.slane %v3830_v13, 5  ;;  %v3832_v19 = vld [vmem:[%s4515_s20 + $0x1c] sm:$0xf]  ;;  %v3833_v23 = vld [vmem:[%s4515_s20 + $0x20] sm:$0x1] }
  0x25   : > { %2411 = vrot.lane.b32.xlu1 %v4248_v2, %s4406_s24  ;;  %v2076_v21 = vsel %vm4517_vm2, %v3876_v14, %v2075_v15  ;;  %v2077_v22 = vrot.slane %v2075_v15, 4  ;;  %v3877_v24 = vrot.slane %v3831_v18, 9  ;;  %v933_v25 = vld [vmem:[%s4515_s20 + $0xc] sm:$0xe]  ;;  %v2082_v27 = vrot.slane %v3832_v19, 5 }
  0x26   : > { %v1035_v20 = vsel %vm4517_vm2, %v1033_v12, %v1034_v8  ;;  %v2085_v28 = vrot.slane %v3833_v23, 5  ;;  %v934_v29 = vld [vmem:[%s4515_s20 + $0x10] sm:$0xf]  ;;  %v935_v30 = vld [vmem:[%s4515_s20 + $0x14] sm:$0x1]  ;;  %v3685_v32 = vrot.slane %v933_v25, 9 }
  0x27   : > { %v3700_v26 = vcombine.low %v1032_v11, %v1035_v20  ;;  %v2079_v31 = vsel %vm4517_vm2, %v2077_v22, %v2078_v17  ;;  %v1038_v33 = vrot.slane %v934_v29, 5  ;;  %v1041_v34 = vrot.slane %v935_v30, 5  ;;  %v3764_v35 = vld [vmem:[%s4515_s20 + $0xc] sm:$0xf]  ;;  %v3765_v39 = vld [vmem:[%s4515_s20 + $0x10] sm:$0xf] }
  0x28   : > { %v3892_v36 = vcombine.low %v2076_v21, %v2079_v31  ;;  %v2083_v37 = vsel %vm4517_vm2, %v3877_v24, %v2082_v27  ;;  %v2084_v38 = vrot.slane %v2082_v27, 4  ;;  %v3766_v40 = vld [vmem:[%s4515_s20 + $0x14] sm:$0x1]  ;;  %v1481_v41 = vshrl.u32 %v3764_v35, 16  ;;  %v382_v46 = vld [vmem:[%s4515_s20] sm:$0xf] }
  0x29   : > { %1189 = vrot.lane.b32.xlu0 %v3700_v26, %s4407_s27  ;;  %1369 = vrot.lane.b32.xlu1 %v4249_v16, %s4405_s21  ;;  %v1039_v42 = vsel %vm4517_vm2, %v3685_v32, %v1038_v33  ;;  %v1040_v43 = vrot.slane %v1038_v33, 4  ;;  %v1484_v44 = vshll.u32 %v3764_v35, 16  ;;  %v1490_v45 = vshll.u32 %v3765_v39, 16  ;;  %v383_v51 = vld [vmem:[%s4515_s20 + $0x4] sm:$0xf] }
  0x2a   : > { %v2086_v47 = vsel %vm4517_vm2, %v2084_v38, %v2085_v28  ;;  %v1483_v48 = vrot.slane %v1481_v41, 4  ;;  %v1494_v49 = vshrl.u32 %v3765_v39, 16  ;;  %v1500_v50 = vshll.u32 %v3766_v40, 16  ;;  %v384_v56 = vld [vmem:[%s4515_s20 + $0x8] sm:$0x1] }
  0x2b   : > { %v3893_v52 = vcombine.low %v2083_v37, %v2086_v47  ;;  %v1042_v53 = vsel %vm4517_vm2, %v1040_v43, %v1041_v34  ;;  %v1486_v54 = vrot.slane %v1484_v44, 5  ;;  %v1492_v55 = vrot.slane %v1490_v45, 5  ;;  %v385_v57 = vld [vmem:[%s4515_s20 + $0xc] sm:$0xf]  ;;  %v386_v7 = vld [vmem:[%s4515_s20 + $0x10] sm:$0xf] }
  0x2c   : > { %v3701_v58 = vcombine.low %v1039_v42, %v1042_v53  ;;  %v1496_v59 = vrot.slane %v1494_v49, 4  ;;  %v1502_v60 = vrot.slane %v1500_v50, 5  ;;  %v434_v61 = vshrl.u32 %v382_v46, 16  ;;  %v387_v13 = vld [vmem:[%s4515_s20 + $0x14] sm:$0x1] }
  0x2d   : > { %2233 = vrot.lane.b32.xlu0 %v3892_v36, %s4408_s28  ;;  %2235 = vrot.lane.b32.xlu1 %v3893_v52, %s4408_s28  ;;  %v1487_v62 = vor.u32 %v1486_v54, %v1483_v48  ;;  %v437_v63 = vshll.u32 %v382_v46, 16  ;;  %v443_v1 = vshll.u32 %v383_v51, 16  ;;  %v447_v2 = vshrl.u32 %v383_v51, 16  ;;  %v3956_v22 = vld [vmem:[%s4515_s20 + $0x18] sm:$0xf] }
  0x2e   : > { %v1497_v4 = vor.u32 %v1496_v59, %v1492_v55  ;;  %v436_v5 = vrot.slane %v434_v61, 4  ;;  %v453_v6 = vshll.u32 %v384_v56, 16  ;;  %v458_v8 = vshrl.u32 %v385_v57, 16  ;;  %v3957_v23 = vld [vmem:[%s4515_s20 + $0x1c] sm:$0xf] }
  0x2f   : > { %v1488_v9 = vrot.slane %v1487_v62, 4  ;;  %v439_v10 = vrot.slane %v437_v63, 5  ;;  %v445_v11 = vrot.slane %v443_v1, 5  ;;  %v449_v12 = vrot.slane %v447_v2, 4  ;;  %v3958_v28 = vld [vmem:[%s4515_s20 + $0x20] sm:$0x1] }
  0x30   : > { %v1498_v14 = vrot.slane %v1497_v4, 4  ;;  %v455_v15 = vrot.slane %v453_v6, 5  ;;  %v460_v16 = vrot.slane %v458_v8, 4  ;;  %v461_v17 = vshll.u32 %v385_v57, 16  ;;  %v3767_v41 = vld [vmem:[%s4515_s20 + $0x18] sm:$0xf] }
  0x31   : > { %1191 = vrot.lane.b32.xlu0 %v3701_v58, %s4407_s27  ;;  %v1493_v18 = vsel %vm4567_vm5, %v1488_v9, %v1492_v55  ;;  %v440_v19 = vor.u32 %v439_v10, %v436_v5  ;;  %v450_v20 = vor.u32 %v449_v12, %v445_v11  ;;  %v467_v21 = vshll.u32 %v386_v7, 16  ;;  %v3768_v46 = vld [vmem:[%s4515_s20 + $0x1c] sm:$0xf]  ;;  %v3769_v53 = vld [vmem:[%s4515_s20 + $0x20] sm:$0x1] }
  0x32   : > { %v1503_v24 = vsel %vm4567_vm5, %v1498_v14, %v1502_v60  ;;  %v463_v25 = vrot.slane %v461_v17, 5  ;;  %v471_v26 = vshrl.u32 %v386_v7, 16  ;;  %v477_v27 = vshll.u32 %v387_v13, 16  ;;  %v3959_v60 = vld [vmem:[%s4515_s20 + $0x24] sm:$0xf] }
  0x33   : > { %v3812_v29 = vcombine.low %v1493_v18, %v1503_v24  ;;  %v441_v30 = vrot.slane %v440_v19, 4  ;;  %v451_v31 = vrot.slane %v450_v20, 4  ;;  %v469_v32 = vrot.slane %v467_v21, 5  ;;  %v3960_v2 = vld [vmem:[%s4515_s20 + $0x28] sm:$0xf] }
  0x34   : > { %v464_v33 = vor.u32 %v463_v25, %v460_v16  ;;  %v473_v34 = vrot.slane %v471_v26, 4  ;;  %v479_v35 = vrot.slane %v477_v27, 5  ;;  %v2525_v36 = vshrl.u32 %v3956_v22, 16  ;;  %v3961_v14 = vld [vmem:[%s4515_s20 + $0x2c] sm:$0x1] }
  0x35   : > { %1912 = vrot.lane.b32.xlu1 %v3812_v29, %s4409_s29  ;;  %v446_v37 = vsel %vm4567_vm5, %v441_v30, %v445_v11  ;;  %v456_v38 = vsel %vm4567_vm5, %v451_v31, %v455_v15  ;;  %v2528_v39 = vshll.u32 %v3956_v22, 16  ;;  %v2534_v40 = vshll.u32 %v3957_v23, 16  ;;  %v388_v21 = vld [vmem:[%s4515_s20 + $0x18] sm:$0xf]  ;;  %v389_v26 = vld [vmem:[%s4515_s20 + $0x1c] sm:$0xf] }
  0x36   : > { %v3668_v42 = vcombine.low %v446_v37, %v456_v38  ;;  %v465_v43 = vrot.slane %v464_v33, 4  ;;  %v474_v44 = vor.u32 %v473_v34, %v469_v32  ;;  %v2527_v45 = vrot.slane %v2525_v36, 4  ;;  %v390_v31 = vld [vmem:[%s4515_s20 + $0x20] sm:$0x1]  ;;  %v937_v37 = vld [vmem:[%s4515_s20 + $0x1c] sm:$0xf] }
  0x37   : > { %v2530_v47 = vrot.slane %v2528_v39, 5  ;;  %v2536_v48 = vrot.slane %v2534_v40, 5  ;;  %v2538_v49 = vshrl.u32 %v3957_v23, 16  ;;  %v2544_v50 = vshll.u32 %v3958_v28, 16 }
  0x38   : > { %865 = vrot.lane.b32.xlu0 %v3668_v42, %s4410_s5  ;;  %v470_v51 = vsel %vm4567_vm5, %v465_v43, %v469_v32  ;;  %v475_v52 = vrot.slane %v474_v44, 4  ;;  %v1505_v54 = vshrl.u32 %v3767_v41, 16  ;;  %v1508_v55 = vshll.u32 %v3767_v41, 16  ;;  %v936_v32 = vld [vmem:[%s4515_s20 + $0x18] sm:$0xe] }
  0x39   : > { %v2531_v56 = vor.u32 %v2530_v47, %v2527_v45  ;;  %v2540_v57 = vrot.slane %v2538_v49, 4  ;;  %v2546_v58 = vrot.slane %v2544_v50, 5  ;;  %v1514_v59 = vshll.u32 %v3768_v46, 16 }
  0x3a   : > { %v480_v61 = vsel %vm4567_vm5, %v475_v52, %v479_v35  ;;  %v1507_v62 = vrot.slane %v1505_v54, 4  ;;  %v1510_v63 = vrot.slane %v1508_v55, 5  ;;  %v1518_v1 = vshrl.u32 %v3768_v46, 16  ;;  %v938_v46 = vld [vmem:[%s4515_s20 + $0x20] sm:$0x1]  ;;  %v4250_v52 = vld [vmem:[%s4515_s20 + $0x24] sm:$0xff]  }
  0x3b   : > { %v3669_v4 = vcombine.low %v470_v51, %v480_v61  ;;  %v2532_v5 = vrot.slane %v2531_v56, 4  ;;  %v2541_v6 = vor.u32 %v2540_v57, %v2536_v48  ;;  %v1516_v7 = vrot.slane %v1514_v59, 5  ;;  %v3770_v51 = vld [vmem:[%s4515_s20 + $0x24] sm:$0xf]  ;;  %v3771_v61 = vld [vmem:[%s4515_s20 + $0x28] sm:$0xf] }
  0x3c   : > { %v1511_v8 = vor.u32 %v1510_v63, %v1507_v62  ;;  %v1520_v9 = vrot.slane %v1518_v1, 4  ;;  %v1524_v10 = vshll.u32 %v3769_v53, 16  ;;  %v2549_v11 = vshrl.u32 %v3959_v60, 16  ;;  %v3772_v62 = vld [vmem:[%s4515_s20 + $0x2c] sm:$0x1] }
  0x3d   : > { %867 = vrot.lane.b32.xlu1 %v3669_v4, %s4410_s5  ;;  %v2537_v12 = vsel %vm4567_vm5, %v2532_v5, %v2536_v48  ;;  %v2542_v13 = vrot.slane %v2541_v6, 4  ;;  %v2552_v15 = vshll.u32 %v3959_v60, 16  ;;  %v2558_v16 = vshll.u32 %v3960_v2, 16  ;;  %v3834_v5 = vld [vmem:[%s4515_s20 + $0x24] sm:$0xe] }
  0x3e   : > { %v1512_v17 = vrot.slane %v1511_v8, 4  ;;  %v1521_v18 = vor.u32 %v1520_v9, %v1516_v7  ;;  %v1526_v19 = vrot.slane %v1524_v10, 5  ;;  %v2551_v20 = vrot.slane %v2549_v11, 4  ;;  %v3835_v6 = vld [vmem:[%s4515_s20 + $0x28] sm:$0xf] }
  0x3f   : > { %v2547_v22 = vsel %vm4567_vm5, %v2542_v13, %v2546_v58  ;;  %v2554_v23 = vrot.slane %v2552_v15, 5  ;;  %v2560_v24 = vrot.slane %v2558_v16, 5  ;;  %v2562_v25 = vshrl.u32 %v3960_v2, 16  ;;  %v3836_v11 = vld [vmem:[%s4515_s20 + $0x2c] sm:$0x1] }
  0x40   : > { %v4004_v27 = vcombine.low %v2537_v12, %v2547_v22  ;;  %v1517_v28 = vsel %vm4567_vm5, %v1512_v17, %v1516_v7  ;;  %v1522_v29 = vrot.slane %v1521_v18, 4  ;;  %v2568_v30 = vshll.u32 %v3961_v14, 16  ;;  %v3962_v16 = vld [vmem:[%s4515_s20 + $0x30] sm:$0xf] }
  0x41   : > { %v2555_v33 = vor.u32 %v2554_v23, %v2551_v20  ;;  %v2564_v34 = vrot.slane %v2562_v25, 4  ;;  %v482_v35 = vshrl.u32 %v388_v21, 16  ;;  %v485_v36 = vshll.u32 %v388_v21, 16  ;;  %v3963_v25 = vld [vmem:[%s4515_s20 + $0x34] sm:$0xf] }
  0x42   : > { %2956 = vrot.lane.b32.xlu0 %v4004_v27, %s4411_s6  ;;  %v1527_v38 = vsel %vm4567_vm5, %v1522_v29, %v1526_v19  ;;  %v2570_v39 = vrot.slane %v2568_v30, 5  ;;  %v491_v40 = vshll.u32 %v389_v26, 16  ;;  %v495_v41 = vshrl.u32 %v389_v26, 16 }
  0x43   : > { %v3813_v42 = vcombine.low %v1517_v28, %v1527_v38  ;;  %v2556_v43 = vrot.slane %v2555_v33, 4  ;;  %v2565_v44 = vor.u32 %v2564_v34, %v2560_v24  ;;  %v484_v45 = vrot.slane %v482_v35, 4  ;;  %v4251_v35 = vld [vmem:[%s4515_s20 + $0x24] sm:$0xff]  }
  0x44   : > { %v487_v47 = vrot.slane %v485_v36, 5  ;;  %v493_v48 = vrot.slane %v491_v40, 5  ;;  %v497_v49 = vrot.slane %v495_v41, 4  ;;  %v501_v50 = vshll.u32 %v390_v31, 16  ;;  %v391_v40 = vld [vmem:[%s4515_s20 + $0x24] sm:$0xf] }
  0x45   : > { %v2561_v53 = vsel %vm4567_vm5, %v2556_v43, %v2560_v24  ;;  %v2566_v54 = vrot.slane %v2565_v44, 4  ;;  %v3686_v55 = vrot.slane %v936_v32, 9  ;;  %v1045_v56 = vrot.slane %v937_v37, 5  ;;  %v3964_v32 = vld [vmem:[%s4515_s20 + $0x38] sm:$0x1] }
  0x46   : > { %1914 = vrot.lane.b32.xlu0 %v3813_v42, %s4409_s29  ;;  %v488_v57 = vor.u32 %v487_v47, %v484_v45  ;;  %v498_v58 = vor.u32 %v497_v49, %v493_v48  ;;  %v503_v59 = vrot.slane %v501_v50, 5  ;;  %v1048_v60 = vrot.slane %v938_v46, 5  ;;  %v392_v45 = vld [vmem:[%s4515_s20 + $0x28] sm:$0xf]  ;;  %v393_v50 = vld [vmem:[%s4515_s20 + $0x2c] sm:$0x1] }
  0x47   : > { %v2571_v63 = vsel %vm4567_vm5, %v2566_v54, %v2570_v39  ;;  %v1046_v1 = vsel %vm4517_vm2, %v3686_v55, %v1045_v56  ;;  %v1047_v2 = vrot.slane %v1045_v56, 4  ;;  %v1529_v4 = vshrl.u32 %v3770_v51, 16  ;;  %v939_v55 = vld [vmem:[%s4515_s20 + $0x24] sm:$0xe] }
  0x48   : > { %v4005_v7 = vcombine.low %v2561_v53, %v2571_v63  ;;  %v489_v8 = vrot.slane %v488_v57, 4  ;;  %v499_v9 = vrot.slane %v498_v58, 4  ;;  %v1532_v10 = vshll.u32 %v3770_v51, 16 }
  0x49   : > { %v1049_v12 = vsel %vm4517_vm2, %v1047_v2, %v1048_v60  ;;  %v1531_v13 = vrot.slane %v1529_v4, 4  ;;  %v1538_v14 = vshll.u32 %v3771_v61, 16  ;;  %v1542_v15 = vshrl.u32 %v3771_v61, 16  ;;  %v940_v60 = vld [vmem:[%s4515_s20 + $0x28] sm:$0xf]  ;;  %v4252_v61 = vld [vmem:[%s4515_s20 + $0x30] sm:$0xff]  }
  0x4a   : > { %2413 = vrot.lane.b32.xlu0 %v4250_v52, %s4406_s24  ;;  %2958 = vrot.lane.b32.xlu1 %v4005_v7, %s4411_s6  ;;  %v494_v17 = vsel %vm4567_vm5, %v489_v8, %v493_v48  ;;  %v504_v18 = vsel %vm4567_vm5, %v499_v9, %v503_v59  ;;  %v3702_v19 = vcombine.low %v1046_v1, %v1049_v12  ;;  %v1534_v20 = vrot.slane %v1532_v10, 5  ;;  %v941_v4 = vld [vmem:[%s4515_s20 + $0x2c] sm:$0x1]  ;;  %v3773_v9 = vld [vmem:[%s4515_s20 + $0x30] sm:$0xf] }
  0x4b   : > { %v3670_v21 = vcombine.low %v494_v17, %v504_v18  ;;  %v1540_v22 = vrot.slane %v1538_v14, 5  ;;  %v1544_v23 = vrot.slane %v1542_v15, 4  ;;  %v1548_v24 = vshll.u32 %v3772_v62, 16  ;;  %v3774_v18 = vld [vmem:[%s4515_s20 + $0x34] sm:$0xf] }
  0x4c   : > { %v1535_v26 = vor.u32 %v1534_v20, %v1531_v13  ;;  %v3878_v27 = vrot.slane %v3834_v5, 9  ;;  %v2089_v28 = vrot.slane %v3835_v6, 5  ;;  %v2092_v29 = vrot.slane %v3836_v11, 5 }
  0x4d   : > { %v1545_v30 = vor.u32 %v1544_v23, %v1540_v22  ;;  %v1550_v31 = vrot.slane %v1548_v24, 5  ;;  %v2573_v33 = vshrl.u32 %v3962_v16, 16  ;;  %v2576_v34 = vshll.u32 %v3962_v16, 16  ;;  %v3837_v24 = vld [vmem:[%s4515_s20 + $0x30] sm:$0xe] }
  0x4e   : > { %869 = vrot.lane.b32.xlu0 %v3670_v21, %s4410_s5  ;;  %1193 = vrot.lane.b32.xlu1 %v3702_v19, %s4407_s27  ;;  %v1536_v36 = vrot.slane %v1535_v26, 4  ;;  %v2090_v37 = vsel %vm4517_vm2, %v3878_v27, %v2089_v28  ;;  %v2091_v38 = vrot.slane %v2089_v28, 4  ;;  %v2582_v39 = vshll.u32 %v3963_v25, 16  ;;  %v3775_v21 = vld [vmem:[%s4515_s20 + $0x38] sm:$0x1] }
  0x4f   : > { %v1546_v41 = vrot.slane %v1545_v30, 4  ;;  %v2575_v42 = vrot.slane %v2573_v33, 4  ;;  %v2578_v43 = vrot.slane %v2576_v34, 5  ;;  %v2586_v44 = vshrl.u32 %v3963_v25, 16 }
  0x50   : > { %v1541_v46 = vsel %vm4567_vm5, %v1536_v36, %v1540_v22  ;;  %v2093_v47 = vsel %vm4517_vm2, %v2091_v38, %v2092_v29  ;;  %v2584_v48 = vrot.slane %v2582_v39, 5  ;;  %v2592_v49 = vshll.u32 %v3964_v32, 16  ;;  %v3838_v29 = vld [vmem:[%s4515_s20 + $0x34] sm:$0xf]  ;;  %v3839_v38 = vld [vmem:[%s4515_s20 + $0x38] sm:$0x1] }
  0x51   : > { %v1551_v51 = vsel %vm4567_vm5, %v1546_v41, %v1550_v31  ;;  %v3894_v52 = vcombine.low %v2090_v37, %v2093_v47  ;;  %v2579_v53 = vor.u32 %v2578_v43, %v2575_v42  ;;  %v2588_v54 = vrot.slane %v2586_v44, 4  ;;  %v3965_v39 = vld [vmem:[%s4515_s20 + $0x3c] sm:$0xf]  ;;  %v3966_v44 = vld [vmem:[%s4515_s20 + $0x40] sm:$0xf] }
  0x52   : > { %1371 = vrot.lane.b32.xlu0 %v4251_v35, %s4405_s21  ;;  %v3814_v56 = vcombine.low %v1541_v46, %v1551_v51  ;;  %v2594_v57 = vrot.slane %v2592_v49, 5  ;;  %v506_v58 = vshrl.u32 %v391_v40, 16  ;;  %v509_v59 = vshll.u32 %v391_v40, 16  ;;  %v3967_v49 = vld [vmem:[%s4515_s20 + $0x44] sm:$0x1] }
  0x53   : > { %v2580_v62 = vrot.slane %v2579_v53, 4  ;;  %v2589_v63 = vor.u32 %v2588_v54, %v2584_v48  ;;  %v515_v1 = vshll.u32 %v392_v45, 16  ;;  %v519_v2 = vshrl.u32 %v392_v45, 16  ;;  %v394_v54 = vld [vmem:[%s4515_s20 + $0x30] sm:$0xf] }
  0x54   : > { %1916 = vrot.lane.b32.xlu1 %v3814_v56, %s4409_s29  ;;  %v508_v5 = vrot.slane %v506_v58, 4  ;;  %v511_v6 = vrot.slane %v509_v59, 5  ;;  %v525_v7 = vshll.u32 %v393_v50, 16  ;;  %v3687_v8 = vrot.slane %v939_v55, 9  ;;  %v4253_v55 = vld [vmem:[%s4515_s20 + $0x30] sm:$0xff]  }
  0x55   : > { %v2585_v10 = vsel %vm4567_vm5, %v2580_v62, %v2584_v48  ;;  %v2590_v11 = vrot.slane %v2589_v63, 4  ;;  %v517_v12 = vrot.slane %v515_v1, 5  ;;  %v521_v13 = vrot.slane %v519_v2, 4 }
  0x56   : > { %2237 = vrot.lane.b32.xlu0 %v3894_v52, %s4408_s28  ;;  %v512_v14 = vor.u32 %v511_v6, %v508_v5  ;;  %v527_v15 = vrot.slane %v525_v7, 5  ;;  %v1052_v16 = vrot.slane %v940_v60, 5  ;;  %v1055_v17 = vrot.slane %v941_v4, 5 }
  0x57   : > { %v2595_v19 = vsel %vm4567_vm5, %v2590_v11, %v2594_v57  ;;  %v522_v20 = vor.u32 %v521_v13, %v517_v12  ;;  %v1553_v22 = vshrl.u32 %v3773_v9, 16  ;;  %v1556_v23 = vshll.u32 %v3773_v9, 16 }
  0x58   : > { %2415 = vrot.lane.b32.xlu1 %v4252_v61, %s4406_s24  ;;  %v4006_v25 = vcombine.low %v2585_v10, %v2595_v19  ;;  %v513_v26 = vrot.slane %v512_v14, 4  ;;  %v1053_v27 = vsel %vm4517_vm2, %v3687_v8, %v1052_v16  ;;  %v1054_v28 = vrot.slane %v1052_v16, 4  ;;  %v395_v8 = vld [vmem:[%s4515_s20 + $0x34] sm:$0xf]  ;;  %v942_v16 = vld [vmem:[%s4515_s20 + $0x30] sm:$0xe] }
  0x59   : > { %v523_v30 = vrot.slane %v522_v20, 4  ;;  %v1555_v31 = vrot.slane %v1553_v22, 4  ;;  %v1558_v32 = vrot.slane %v1556_v23, 5  ;;  %v1562_v33 = vshll.u32 %v3774_v18, 16  ;;  %v944_v22 = vld [vmem:[%s4515_s20 + $0x38] sm:$0x1] }
  0x5a   : > { %2960 = vrot.lane.b32.xlu0 %v4006_v25, %s4411_s6  ;;  %v518_v34 = vsel %vm4567_vm5, %v513_v26, %v517_v12  ;;  %v1056_v35 = vsel %vm4517_vm2, %v1054_v28, %v1055_v17  ;;  %v1566_v36 = vshrl.u32 %v3774_v18, 16  ;;  %v1572_v37 = vshll.u32 %v3775_v21, 16  ;;  %v943_v17 = vld [vmem:[%s4515_s20 + $0x34] sm:$0xf]  ;;  %v4254_v28 = vld [vmem:[%s4515_s20 + $0x3c] sm:$0xff]  }
  0x5b   : > { %v528_v40 = vsel %vm4567_vm5, %v523_v30, %v527_v15  ;;  %v3703_v41 = vcombine.low %v1053_v27, %v1056_v35  ;;  %v1559_v42 = vor.u32 %v1558_v32, %v1555_v31  ;;  %v1564_v43 = vrot.slane %v1562_v33, 5  ;;  %v396_v15 = vld [vmem:[%s4515_s20 + $0x38] sm:$0x1]  ;;  %v3776_v27 = vld [vmem:[%s4515_s20 + $0x3c] sm:$0xf] }
  0x5c   : > { %v3671_v45 = vcombine.low %v518_v34, %v528_v40  ;;  %v1568_v46 = vrot.slane %v1566_v36, 4  ;;  %v1574_v47 = vrot.slane %v1572_v37, 5  ;;  %v3879_v48 = vrot.slane %v3837_v24, 9  ;;  %v3777_v33 = vld [vmem:[%s4515_s20 + $0x40] sm:$0xf] }
  0x5d   : > { %v1560_v50 = vrot.slane %v1559_v42, 4  ;;  %v2096_v51 = vrot.slane %v3838_v29, 5  ;;  %v2099_v52 = vrot.slane %v3839_v38, 5  ;;  %v2597_v53 = vshrl.u32 %v3965_v39, 16  ;;  %v3778_v42 = vld [vmem:[%s4515_s20 + $0x44] sm:$0x1] }
  0x5e   : > { %871 = vrot.lane.b32.xlu1 %v3671_v45, %s4410_s5  ;;  %1195 = vrot.lane.b32.xlu0 %v3703_v41, %s4407_s27  ;;  %v1569_v56 = vor.u32 %v1568_v46, %v1564_v43  ;;  %v2600_v57 = vshll.u32 %v3965_v39, 16  ;;  %v2606_v58 = vshll.u32 %v3966_v44, 16  ;;  %v2610_v59 = vshrl.u32 %v3966_v44, 16 }
  0x5f   : > { %v1565_v60 = vsel %vm4567_vm5, %v1560_v50, %v1564_v43  ;;  %v2097_v61 = vsel %vm4517_vm2, %v3879_v48, %v2096_v51  ;;  %v2098_v62 = vrot.slane %v2096_v51, 4  ;;  %v2599_v63 = vrot.slane %v2597_v53, 4  ;;  %v3840_v43 = vld [vmem:[%s4515_s20 + $0x3c] sm:$0xe]  ;;  %v3841_v48 = vld [vmem:[%s4515_s20 + $0x40] sm:$0xf] }
  0x60   : > { %v1570_v1 = vrot.slane %v1569_v56, 4  ;;  %v2602_v2 = vrot.slane %v2600_v57, 5  ;;  %v2608_v4 = vrot.slane %v2606_v58, 5  ;;  %v2612_v5 = vrot.slane %v2610_v59, 4  ;;  %v3842_v53 = vld [vmem:[%s4515_s20 + $0x44] sm:$0x1] }
  0x61   : > { %v2100_v6 = vsel %vm4517_vm2, %v2098_v62, %v2099_v52  ;;  %v2616_v7 = vshll.u32 %v3967_v49, 16  ;;  %v530_v9 = vshrl.u32 %v394_v54, 16  ;;  %v533_v10 = vshll.u32 %v394_v54, 16  ;;  %v3968_v58 = vld [vmem:[%s4515_s20 + $0x48] sm:$0xf] }
  0x62   : > { %1373 = vrot.lane.b32.xlu1 %v4253_v55, %s4405_s21  ;;  %v1575_v11 = vsel %vm4567_vm5, %v1570_v1, %v1574_v47  ;;  %v3895_v12 = vcombine.low %v2097_v61, %v2100_v6  ;;  %v2603_v13 = vor.u32 %v2602_v2, %v2599_v63  ;;  %v2613_v14 = vor.u32 %v2612_v5, %v2608_v4  ;;  %v3969_v63 = vld [vmem:[%s4515_s20 + $0x4c] sm:$0xf] }
  0x63   : > { %v3815_v18 = vcombine.low %v1565_v60, %v1575_v11  ;;  %v2618_v19 = vrot.slane %v2616_v7, 5  ;;  %v532_v20 = vrot.slane %v530_v9, 4  ;;  %v535_v21 = vrot.slane %v533_v10, 5  ;;  %v3970_v10 = vld [vmem:[%s4515_s20 + $0x50] sm:$0x1]  ;;  %v4255_v11 = vld [vmem:[%s4515_s20 + $0x3c] sm:$0xff]  }
  0x64   : > { %v2604_v23 = vrot.slane %v2603_v13, 4  ;;  %v2614_v24 = vrot.slane %v2613_v14, 4  ;;  %v539_v25 = vshll.u32 %v395_v8, 16  ;;  %v543_v26 = vshrl.u32 %v395_v8, 16 }
  0x65   : > { %1918 = vrot.lane.b32.xlu0 %v3815_v18, %s4409_s29  ;;  %v536_v29 = vor.u32 %v535_v21, %v532_v20  ;;  %v549_v30 = vshll.u32 %v396_v15, 16  ;;  %v3688_v31 = vrot.slane %v942_v16, 9  ;;  %v1059_v32 = vrot.slane %v943_v17, 5  ;;  %v397_v20 = vld [vmem:[%s4515_s20 + $0x3c] sm:$0xf] }
  0x66   : > { %2239 = vrot.lane.b32.xlu1 %v3895_v12, %s4408_s28  ;;  %v2609_v34 = vsel %vm4567_vm5, %v2604_v23, %v2608_v4  ;;  %v2619_v35 = vsel %vm4567_vm5, %v2614_v24, %v2618_v19  ;;  %v541_v36 = vrot.slane %v539_v25, 5  ;;  %v545_v37 = vrot.slane %v543_v26, 4  ;;  %v398_v25 = vld [vmem:[%s4515_s20 + $0x40] sm:$0xf] }
  0x67   : > { %v4007_v38 = vcombine.low %v2609_v34, %v2619_v35  ;;  %v537_v39 = vrot.slane %v536_v29, 4  ;;  %v551_v40 = vrot.slane %v549_v30, 5  ;;  %v1060_v41 = vsel %vm4517_vm2, %v3688_v31, %v1059_v32  ;;  %v399_v30 = vld [vmem:[%s4515_s20 + $0x44] sm:$0x1]  ;;  %v945_v31 = vld [vmem:[%s4515_s20 + $0x3c] sm:$0xe] }
  0x68   : > { %v546_v44 = vor.u32 %v545_v37, %v541_v36  ;;  %v1061_v45 = vrot.slane %v1059_v32, 4  ;;  %v1062_v46 = vrot.slane %v944_v22, 5  ;;  %v1577_v47 = vshrl.u32 %v3776_v27, 16  ;;  %v947_v37 = vld [vmem:[%s4515_s20 + $0x44] sm:$0x1] }
  0x69   : > { %2417 = vrot.lane.b32.xlu0 %v4254_v28, %s4406_s24  ;;  %v542_v49 = vsel %vm4567_vm5, %v537_v39, %v541_v36  ;;  %v1580_v50 = vshll.u32 %v3776_v27, 16  ;;  %v1586_v51 = vshll.u32 %v3777_v33, 16  ;;  %v1590_v52 = vshrl.u32 %v3777_v33, 16  ;;  %v946_v36 = vld [vmem:[%s4515_s20 + $0x40] sm:$0xf] }
  0x6a   : > { %2962 = vrot.lane.b32.xlu1 %v4007_v38, %s4411_s6  ;;  %v547_v54 = vrot.slane %v546_v44, 4  ;;  %v1063_v55 = vsel %vm4517_vm2, %v1061_v45, %v1062_v46  ;;  %v1579_v56 = vrot.slane %v1577_v47, 4  ;;  %v1596_v57 = vshll.u32 %v3778_v42, 16  ;;  %v3779_v42 = vld [vmem:[%s4515_s20 + $0x48] sm:$0xf] }
  0x6b   : > { %v3704_v59 = vcombine.low %v1060_v41, %v1063_v55  ;;  %v1582_v60 = vrot.slane %v1580_v50, 5  ;;  %v1588_v61 = vrot.slane %v1586_v51, 5  ;;  %v1592_v62 = vrot.slane %v1590_v52, 4 }
  0x6c   : > { %v552_v1 = vsel %vm4567_vm5, %v547_v54, %v551_v40  ;;  %v1598_v2 = vrot.slane %v1596_v57, 5  ;;  %v3880_v4 = vrot.slane %v3840_v43, 9  ;;  %v2103_v5 = vrot.slane %v3841_v48, 5  ;;  %v4256_v43 = vld [vmem:[%s4515_s20 + $0x48] sm:$0xff]  }
  0x6d   : > { %v3672_v6 = vcombine.low %v542_v49, %v552_v1  ;;  %v1583_v7 = vor.u32 %v1582_v60, %v1579_v56  ;;  %v1593_v8 = vor.u32 %v1592_v62, %v1588_v61  ;;  %v2106_v9 = vrot.slane %v3842_v53, 5  ;;  %v3781_v60 = vld [vmem:[%s4515_s20 + $0x50] sm:$0x1] }
  0x6e   : > { %1197 = vrot.lane.b32.xlu1 %v3704_v59, %s4407_s27  ;;  %v2104_v12 = vsel %vm4517_vm2, %v3880_v4, %v2103_v5  ;;  %v2105_v13 = vrot.slane %v2103_v5, 4  ;;  %v2621_v14 = vshrl.u32 %v3968_v58, 16  ;;  %v2624_v15 = vshll.u32 %v3968_v58, 16  ;;  %v3780_v59 = vld [vmem:[%s4515_s20 + $0x4c] sm:$0xf] }
  0x6f   : > { %873 = vrot.lane.b32.xlu0 %v3672_v6, %s4410_s5  ;;  %v1584_v16 = vrot.slane %v1583_v7, 4  ;;  %v1594_v17 = vrot.slane %v1593_v8, 4  ;;  %v2630_v18 = vshll.u32 %v3969_v63, 16  ;;  %v2634_v19 = vshrl.u32 %v3969_v63, 16  ;;  %v3843_v4 = vld [vmem:[%s4515_s20 + $0x48] sm:$0xe] }
  0x70   : > { %v2107_v21 = vsel %vm4517_vm2, %v2105_v13, %v2106_v9  ;;  %v2623_v22 = vrot.slane %v2621_v14, 4  ;;  %v2626_v23 = vrot.slane %v2624_v15, 5  ;;  %v2640_v24 = vshll.u32 %v3970_v10, 16  ;;  %v3844_v5 = vld [vmem:[%s4515_s20 + $0x4c] sm:$0xf] }
  0x71   : > { %v1589_v26 = vsel %vm4567_vm5, %v1584_v16, %v1588_v61  ;;  %v1599_v27 = vsel %vm4567_vm5, %v1594_v17, %v1598_v2  ;;  %v3896_v28 = vcombine.low %v2104_v12, %v2107_v21  ;;  %v2632_v29 = vrot.slane %v2630_v18, 5  ;;  %v3845_v10 = vld [vmem:[%s4515_s20 + $0x50] sm:$0x1] }
  0x72   : > { %v3816_v32 = vcombine.low %v1589_v26, %v1599_v27  ;;  %v2627_v33 = vor.u32 %v2626_v23, %v2623_v22  ;;  %v2636_v34 = vrot.slane %v2634_v19, 4  ;;  %v2642_v35 = vrot.slane %v2640_v24, 5  ;;  %v3971_v19 = vld [vmem:[%s4515_s20 + $0x54] sm:$0xf]  ;;  %v3972_v24 = vld [vmem:[%s4515_s20 + $0x58] sm:$0xf] }
  0x73   : > { %1375 = vrot.lane.b32.xlu0 %v4255_v11, %s4405_s21  ;;  %v554_v38 = vshrl.u32 %v397_v20, 16  ;;  %v557_v39 = vshll.u32 %v397_v20, 16  ;;  %v563_v40 = vshll.u32 %v398_v25, 16  ;;  %v567_v41 = vshrl.u32 %v398_v25, 16 }
  0x74   : > { %1920 = vrot.lane.b32.xlu1 %v3816_v32, %s4409_s29  ;;  %v2628_v44 = vrot.slane %v2627_v33, 4  ;;  %v2637_v45 = vor.u32 %v2636_v34, %v2632_v29  ;;  %v573_v46 = vshll.u32 %v399_v30, 16  ;;  %v3689_v47 = vrot.slane %v945_v31, 9  ;;  %v3973_v32 = vld [vmem:[%s4515_s20 + $0x5c] sm:$0x1] }
  0x75   : > { %v556_v48 = vrot.slane %v554_v38, 4  ;;  %v559_v49 = vrot.slane %v557_v39, 5  ;;  %v565_v50 = vrot.slane %v563_v40, 5  ;;  %v569_v51 = vrot.slane %v567_v41, 4  ;;  %v400_v39 = vld [vmem:[%s4515_s20 + $0x48] sm:$0xf] }
  0x76   : > { %v2633_v52 = vsel %vm4567_vm5, %v2628_v44, %v2632_v29  ;;  %v2638_v53 = vrot.slane %v2637_v45, 4  ;;  %v575_v54 = vrot.slane %v573_v46, 5  ;;  %v1066_v55 = vrot.slane %v946_v36, 5  ;;  %v4257_v29 = vld [vmem:[%s4515_s20 + $0x48] sm:$0xff]  }
  0x77   : > { %2241 = vrot.lane.b32.xlu0 %v3896_v28, %s4408_s28  ;;  %v560_v56 = vor.u32 %v559_v49, %v556_v48  ;;  %v570_v57 = vor.u32 %v569_v51, %v565_v50  ;;  %v1069_v58 = vrot.slane %v947_v37, 5  ;;  %v1601_v61 = vshrl.u32 %v3779_v42, 16  ;;  %v401_v44 = vld [vmem:[%s4515_s20 + $0x4c] sm:$0xf]  ;;  %v402_v49 = vld [vmem:[%s4515_s20 + $0x50] sm:$0x1] }
  0x78   : > { %2419 = vrot.lane.b32.xlu1 %v4256_v43, %s4406_s24  ;;  %v2643_v62 = vsel %vm4567_vm5, %v2638_v53, %v2642_v35  ;;  %v1067_v63 = vsel %vm4517_vm2, %v3689_v47, %v1066_v55  ;;  %v1068_v1 = vrot.slane %v1066_v55, 4  ;;  %v1604_v2 = vshll.u32 %v3779_v42, 16 }
  0x79   : > { %v4008_v6 = vcombine.low %v2633_v52, %v2643_v62  ;;  %v561_v7 = vrot.slane %v560_v56, 4  ;;  %v571_v8 = vrot.slane %v570_v57, 4  ;;  %v1603_v9 = vrot.slane %v1601_v61, 4  ;;  %v4258_v56 = vld [vmem:[%s4515_s20 + $0x54] sm:$0xff]  }
  0x7a   : > { %v1070_v11 = vsel %vm4517_vm2, %v1068_v1, %v1069_v58  ;;  %v1606_v12 = vrot.slane %v1604_v2, 5  ;;  %v1610_v13 = vshll.u32 %v3780_v59, 16  ;;  %v1614_v14 = vshrl.u32 %v3780_v59, 16  ;;  %v950_v2 = vld [vmem:[%s4515_s20 + $0x50] sm:$0x1] }
  0x7b   : > { %2964 = vrot.lane.b32.xlu0 %v4008_v6, %s4411_s6  ;;  %v566_v15 = vsel %vm4567_vm5, %v561_v7, %v565_v50  ;;  %v576_v16 = vsel %vm4567_vm5, %v571_v8, %v575_v54  ;;  %v3705_v17 = vcombine.low %v1067_v63, %v1070_v11  ;;  %v1620_v18 = vshll.u32 %v3781_v60, 16  ;;  %v948_v54 = vld [vmem:[%s4515_s20 + $0x48] sm:$0xe]  ;;  %v949_v60 = vld [vmem:[%s4515_s20 + $0x4c] sm:$0xf] }
  0x7c   : > { %v3673_v20 = vcombine.low %v566_v15, %v576_v16  ;;  %v1607_v21 = vor.u32 %v1606_v12, %v1603_v9  ;;  %v1612_v22 = vrot.slane %v1610_v13, 5  ;;  %v1616_v23 = vrot.slane %v1614_v14, 4  ;;  %v3782_v8 = vld [vmem:[%s4515_s20 + $0x54] sm:$0xf]  ;;  %v3783_v13 = vld [vmem:[%s4515_s20 + $0x58] sm:$0xf] }
  0x7d   : > { %v1622_v25 = vrot.slane %v1620_v18, 5  ;;  %v3881_v26 = vrot.slane %v3843_v4, 9  ;;  %v2110_v27 = vrot.slane %v3844_v5, 5  ;;  %v2113_v28 = vrot.slane %v3845_v10, 5  ;;  %v3784_v18 = vld [vmem:[%s4515_s20 + $0x5c] sm:$0x1] }
  0x7e   : > { %875 = vrot.lane.b32.xlu1 %v3673_v20, %s4410_s5  ;;  %v1608_v30 = vrot.slane %v1607_v21, 4  ;;  %v1617_v31 = vor.u32 %v1616_v23, %v1612_v22  ;;  %v2645_v33 = vshrl.u32 %v3971_v19, 16  ;;  %v2648_v34 = vshll.u32 %v3971_v19, 16 }
  0x7f   : > { %1199 = vrot.lane.b32.xlu0 %v3705_v17, %s4407_s27  ;;  %v2111_v35 = vsel %vm4517_vm2, %v3881_v26, %v2110_v27  ;;  %v2112_v36 = vrot.slane %v2110_v27, 4  ;;  %v2654_v37 = vshll.u32 %v3972_v24, 16  ;;  %v2658_v38 = vshrl.u32 %v3972_v24, 16  ;;  %v3846_v27 = vld [vmem:[%s4515_s20 + $0x54] sm:$0xe] }
  0x80   : > { %v1613_v40 = vsel %vm4567_vm5, %v1608_v30, %v1612_v22  ;;  %v1618_v41 = vrot.slane %v1617_v31, 4  ;;  %v2647_v42 = vrot.slane %v2645_v33, 4  ;;  %v2650_v43 = vrot.slane %v2648_v34, 5 }
  0x81   : > { %v2114_v45 = vsel %vm4517_vm2, %v2112_v36, %v2113_v28  ;;  %v2656_v46 = vrot.slane %v2654_v37, 5  ;;  %v2660_v47 = vrot.slane %v2658_v38, 4  ;;  %v2664_v48 = vshll.u32 %v3973_v32, 16  ;;  %v3847_v32 = vld [vmem:[%s4515_s20 + $0x58] sm:$0xf] }
  0x82   : > { %1377 = vrot.lane.b32.xlu1 %v4257_v29, %s4405_s21  ;;  %v1623_v50 = vsel %vm4567_vm5, %v1618_v41, %v1622_v25  ;;  %v3897_v51 = vcombine.low %v2111_v35, %v2114_v45  ;;  %v2651_v52 = vor.u32 %v2650_v43, %v2647_v42  ;;  %v578_v53 = vshrl.u32 %v400_v39, 16  ;;  %v3848_v37 = vld [vmem:[%s4515_s20 + $0x5c] sm:$0x1]  ;;  %v3974_v38 = vld [vmem:[%s4515_s20 + $0x60] sm:$0xf] }
  0x83   : > { %v3817_v55 = vcombine.low %v1613_v40, %v1623_v50  ;;  %v2661_v57 = vor.u32 %v2660_v47, %v2656_v46  ;;  %v2666_v58 = vrot.slane %v2664_v48, 5  ;;  %v581_v59 = vshll.u32 %v400_v39, 16  ;;  %v3975_v43 = vld [vmem:[%s4515_s20 + $0x64] sm:$0xf]  ;;  %v3976_v48 = vld [vmem:[%s4515_s20 + $0x68] sm:$0x1] }
  0x84   : > { %v2652_v61 = vrot.slane %v2651_v52, 4  ;;  %v580_v62 = vrot.slane %v578_v53, 4  ;;  %v587_v63 = vshll.u32 %v401_v44, 16  ;;  %v591_v1 = vshrl.u32 %v401_v44, 16  ;;  %v403_v53 = vld [vmem:[%s4515_s20 + $0x54] sm:$0xf] }
  0x85   : > { %1922 = vrot.lane.b32.xlu0 %v3817_v55, %s4409_s29  ;;  %v2662_v4 = vrot.slane %v2661_v57, 4  ;;  %v583_v5 = vrot.slane %v581_v59, 5  ;;  %v597_v6 = vshll.u32 %v402_v49, 16  ;;  %v3690_v7 = vrot.slane %v948_v54, 9  ;;  %v4259_v54 = vld [vmem:[%s4515_s20 + $0x54] sm:$0xff]  }
  0x86   : > { %2243 = vrot.lane.b32.xlu1 %v3897_v51, %s4408_s28  ;;  %v2657_v9 = vsel %vm4567_vm5, %v2652_v61, %v2656_v46  ;;  %v589_v10 = vrot.slane %v587_v63, 5  ;;  %v593_v11 = vrot.slane %v591_v1, 4  ;;  %v1073_v12 = vrot.slane %v949_v60, 5  ;;  %v404_v59 = vld [vmem:[%s4515_s20 + $0x58] sm:$0xf] }
  0x87   : > { %v2667_v14 = vsel %vm4567_vm5, %v2662_v4, %v2666_v58  ;;  %v584_v15 = vor.u32 %v583_v5, %v580_v62  ;;  %v599_v16 = vrot.slane %v597_v6, 5  ;;  %v1076_v17 = vrot.slane %v950_v2, 5  ;;  %v405_v6 = vld [vmem:[%s4515_s20 + $0x5c] sm:$0x1] }
  0x88   : > { %v4009_v19 = vcombine.low %v2657_v9, %v2667_v14  ;;  %v594_v20 = vor.u32 %v593_v11, %v589_v10  ;;  %v1074_v21 = vsel %vm4517_vm2, %v3690_v7, %v1073_v12  ;;  %v1075_v22 = vrot.slane %v1073_v12, 4  ;;  %v951_v11 = vld [vmem:[%s4515_s20 + $0x54] sm:$0xe]  ;;  %v952_v12 = vld [vmem:[%s4515_s20 + $0x58] sm:$0xf] }
  0x89   : > { %2421 = vrot.lane.b32.xlu0 %v4258_v56, %s4406_s24  ;;  %v585_v23 = vrot.slane %v584_v15, 4  ;;  %v1625_v24 = vshrl.u32 %v3782_v8, 16  ;;  %v1628_v25 = vshll.u32 %v3782_v8, 16  ;;  %v1634_v26 = vshll.u32 %v3783_v13, 16 }
  0x8a   : > { %2966 = vrot.lane.b32.xlu1 %v4009_v19, %s4411_s6  ;;  %v595_v28 = vrot.slane %v594_v20, 4  ;;  %v1077_v29 = vsel %vm4517_vm2, %v1075_v22, %v1076_v17  ;;  %v1638_v30 = vshrl.u32 %v3783_v13, 16  ;;  %v1644_v31 = vshll.u32 %v3784_v18, 16  ;;  %v953_v17 = vld [vmem:[%s4515_s20 + $0x5c] sm:$0x1]  ;;  %v4260_v18 = vld [vmem:[%s4515_s20 + $0x60] sm:$0xff]  }
  0x8b   : > { %v590_v33 = vsel %vm4567_vm5, %v585_v23, %v589_v10  ;;  %v3706_v34 = vcombine.low %v1074_v21, %v1077_v29  ;;  %v1627_v35 = vrot.slane %v1625_v24, 4  ;;  %v1630_v36 = vrot.slane %v1628_v25, 5  ;;  %v3785_v23 = vld [vmem:[%s4515_s20 + $0x60] sm:$0xf] }
  0x8c   : > { %v600_v39 = vsel %vm4567_vm5, %v595_v28, %v599_v16  ;;  %v1636_v40 = vrot.slane %v1634_v26, 5  ;;  %v1640_v41 = vrot.slane %v1638_v30, 4  ;;  %v1646_v42 = vrot.slane %v1644_v31, 5  ;;  %v3786_v28 = vld [vmem:[%s4515_s20 + $0x64] sm:$0xf] }
  0x8d   : > { %v3674_v44 = vcombine.low %v590_v33, %v600_v39  ;;  %v1631_v45 = vor.u32 %v1630_v36, %v1627_v35  ;;  %v3882_v46 = vrot.slane %v3846_v27, 9  ;;  %v2117_v47 = vrot.slane %v3847_v32, 5 }
  0x8e   : > { %1201 = vrot.lane.b32.xlu1 %v3706_v34, %s4407_s27  ;;  %v1641_v49 = vor.u32 %v1640_v41, %v1636_v40  ;;  %v2120_v50 = vrot.slane %v3848_v37, 5  ;;  %v2669_v51 = vshrl.u32 %v3974_v38, 16  ;;  %v2672_v52 = vshll.u32 %v3974_v38, 16 }
  0x8f   : > { %877 = vrot.lane.b32.xlu0 %v3674_v44, %s4410_s5  ;;  %v1632_v55 = vrot.slane %v1631_v45, 4  ;;  %v2118_v56 = vsel %vm4517_vm2, %v3882_v46, %v2117_v47  ;;  %v2119_v57 = vrot.slane %v2117_v47, 4  ;;  %v2678_v58 = vshll.u32 %v3975_v43, 16  ;;  %v3849_v47 = vld [vmem:[%s4515_s20 + $0x60] sm:$0xe] }
  0x90   : > { %v1642_v60 = vrot.slane %v1641_v49, 4  ;;  %v2671_v61 = vrot.slane %v2669_v51, 4  ;;  %v2674_v62 = vrot.slane %v2672_v52, 5  ;;  %v2682_v63 = vshrl.u32 %v3975_v43, 16 }
  0x91   : > { %v1637_v1 = vsel %vm4567_vm5, %v1632_v55, %v1636_v40  ;;  %v2121_v2 = vsel %vm4517_vm2, %v2119_v57, %v2120_v50  ;;  %v2680_v4 = vrot.slane %v2678_v58, 5  ;;  %v2688_v5 = vshll.u32 %v3976_v48, 16  ;;  %v3787_v40 = vld [vmem:[%s4515_s20 + $0x68] sm:$0x1]  ;;  %v3850_v48 = vld [vmem:[%s4515_s20 + $0x64] sm:$0xf] }
  0x92   : > { %v1647_v7 = vsel %vm4567_vm5, %v1642_v60, %v1646_v42  ;;  %v3898_v8 = vcombine.low %v2118_v56, %v2121_v2  ;;  %v2675_v9 = vor.u32 %v2674_v62, %v2671_v61  ;;  %v2684_v10 = vrot.slane %v2682_v63, 4  ;;  %v3977_v58 = vld [vmem:[%s4515_s20 + $0x6c] sm:$0xf]  ;;  %v3978_v63 = vld [vmem:[%s4515_s20 + $0x70] sm:$0xf] }
  0x93   : > { %1379 = vrot.lane.b32.xlu0 %v4259_v54, %s4405_s21  ;;  %v3818_v13 = vcombine.low %v1637_v1, %v1647_v7  ;;  %v2690_v14 = vrot.slane %v2688_v5, 5  ;;  %v602_v15 = vshrl.u32 %v403_v53, 16  ;;  %v605_v16 = vshll.u32 %v403_v53, 16  ;;  %v4839_v37 = vpop.permute.xlu1 %1367  ;;  %v3851_v53 = vld [vmem:[%s4515_s20 + $0x68] sm:$0x1] }
  0x94   : > { %v2676_v19 = vrot.slane %v2675_v9, 4  ;;  %v2685_v20 = vor.u32 %v2684_v10, %v2680_v4  ;;  %v611_v21 = vshll.u32 %v404_v59, 16  ;;  %v615_v22 = vshrl.u32 %v404_v59, 16  ;;  %v3979_v7 = vld [vmem:[%s4515_s20 + $0x74] sm:$0x1] }
  0x95   : > { %1924 = vrot.lane.b32.xlu1 %v3818_v13, %s4409_s29  ;;  %v604_v24 = vrot.slane %v602_v15, 4  ;;  %v607_v25 = vrot.slane %v605_v16, 5  ;;  %v621_v26 = vshll.u32 %v405_v6, 16  ;;  %v3691_v27 = vrot.slane %v951_v11, 9  ;;  %v406_v13 = vld [vmem:[%s4515_s20 + $0x60] sm:$0xf] }
  0x96   : > { %v2681_v29 = vsel %vm4567_vm5, %v2676_v19, %v2680_v4  ;;  %v2686_v30 = vrot.slane %v2685_v20, 4  ;;  %v613_v31 = vrot.slane %v611_v21, 5  ;;  %v617_v32 = vrot.slane %v615_v22, 4 }
  0x97   : > { %2245 = vrot.lane.b32.xlu0 %v3898_v8, %s4408_s28  ;;  %v608_v33 = vor.u32 %v607_v25, %v604_v24  ;;  %v623_v34 = vrot.slane %v621_v26, 5  ;;  %v1080_v35 = vrot.slane %v952_v12, 5  ;;  %v1083_v36 = vrot.slane %v953_v17, 5  ;;  %v4862_v8 = vpop.permute.xlu1 %2411 }
  0x98   : > { %v2691_v38 = vsel %vm4567_vm5, %v2686_v30, %v2690_v14  ;;  %v618_v39 = vor.u32 %v617_v32, %v613_v31  ;;  %v1649_v41 = vshrl.u32 %v3785_v23, 16  ;;  %v1652_v42 = vshll.u32 %v3785_v23, 16  ;;  %v4261_v14 = vld [vmem:[%s4515_s20 + $0x60] sm:$0xff]  }
  0x99   : > { %2423 = vrot.lane.b32.xlu1 %v4260_v18, %s4406_s24  ;;  %v4010_v43 = vcombine.low %v2681_v29, %v2691_v38  ;;  %v609_v44 = vrot.slane %v608_v33, 4  ;;  %v1081_v45 = vsel %vm4517_vm2, %v3691_v27, %v1080_v35  ;;  %v1082_v46 = vrot.slane %v1080_v35, 4  ;;  %v407_v29 = vld [vmem:[%s4515_s20 + $0x64] sm:$0xf]  ;;  %v408_v38 = vld [vmem:[%s4515_s20 + $0x68] sm:$0x1] }
  0x9a   : > { %v619_v49 = vrot.slane %v618_v39, 4  ;;  %v1651_v50 = vrot.slane %v1649_v41, 4  ;;  %v1654_v51 = vrot.slane %v1652_v42, 5  ;;  %v1658_v52 = vshll.u32 %v3786_v28, 16  ;;  %v954_v39 = vld [vmem:[%s4515_s20 + $0x60] sm:$0xe] }
  0x9b   : > { %2968 = vrot.lane.b32.xlu0 %v4010_v43, %s4411_s6  ;;  %v614_v54 = vsel %vm4567_vm5, %v609_v44, %v613_v31  ;;  %v1084_v55 = vsel %vm4517_vm2, %v1082_v46, %v1083_v36  ;;  %v1662_v56 = vshrl.u32 %v3786_v28, 16  ;;  %v1668_v57 = vshll.u32 %v3787_v40, 16  ;;  %v4859_v1 = vpop.permute.xlu0 %1189  ;;  %v955_v40 = vld [vmem:[%s4515_s20 + $0x64] sm:$0xf]  ;;  %v4883_v41 = vpop.permute.xlu1 %1369  ;;  %v956_v46 = vld [vmem:[%s4515_s20 + $0x68] sm:$0x1] }
  0x9c   : > { %v624_v59 = vsel %vm4567_vm5, %v619_v49, %v623_v34  ;;  %v3707_v60 = vcombine.low %v1081_v45, %v1084_v55  ;;  %v1655_v61 = vor.u32 %v1654_v51, %v1651_v50  ;;  %v1660_v62 = vrot.slane %v1658_v52, 5  ;;  %v3788_v51 = vld [vmem:[%s4515_s20 + $0x6c] sm:$0xf] }
  0x9d   : > { %v3675_v2 = vcombine.low %v614_v54, %v624_v59  ;;  %v1664_v4 = vrot.slane %v1662_v56, 4  ;;  %v1670_v5 = vrot.slane %v1668_v57, 5  ;;  %v3883_v6 = vrot.slane %v3849_v47, 9  ;;  %v4262_v52 = vld [vmem:[%s4515_s20 + $0x6c] sm:$0xff]  }
  0x9e   : > { %v1656_v9 = vrot.slane %v1655_v61, 4  ;;  %v2124_v10 = vrot.slane %v3850_v48, 5  ;;  %v2127_v11 = vrot.slane %v3851_v53, 5  ;;  %v2693_v12 = vshrl.u32 %v3977_v58, 16  ;;  %v3789_v61 = vld [vmem:[%s4515_s20 + $0x70] sm:$0xf] }
  0x9f   : > { %879 = vrot.lane.b32.xlu1 %v3675_v2, %s4410_s5  ;;  %1203 = vrot.lane.b32.xlu0 %v3707_v60, %s4407_s27  ;;  %v1665_v15 = vor.u32 %v1664_v4, %v1660_v62  ;;  %v2696_v16 = vshll.u32 %v3977_v58, 16  ;;  %v2702_v17 = vshll.u32 %v3978_v63, 16  ;;  %v2706_v18 = vshrl.u32 %v3978_v63, 16  ;;  %v4875_v32 = vpop.permute.xlu0 %2233 }
  0xa0   : > { %v1661_v19 = vsel %vm4567_vm5, %v1656_v9, %v1660_v62  ;;  %v2125_v20 = vsel %vm4517_vm2, %v3883_v6, %v2124_v10  ;;  %v2126_v21 = vrot.slane %v2124_v10, 4  ;;  %v2695_v22 = vrot.slane %v2693_v12, 4  ;;  %v3852_v12 = vld [vmem:[%s4515_s20 + $0x6c] sm:$0xe] }
  0xa1   : > { %v1666_v23 = vrot.slane %v1665_v15, 4  ;;  %v2698_v24 = vrot.slane %v2696_v16, 5  ;;  %v2704_v25 = vrot.slane %v2702_v17, 5  ;;  %v2708_v26 = vrot.slane %v2706_v18, 4  ;;  %v3853_v18 = vld [vmem:[%s4515_s20 + $0x70] sm:$0xf] }
  0xa2   : > { %v2128_v27 = vsel %vm4517_vm2, %v2126_v21, %v2127_v11  ;;  %v2712_v28 = vshll.u32 %v3979_v7, 16  ;;  %v626_v30 = vshrl.u32 %v406_v13, 16  ;;  %v629_v31 = vshll.u32 %v406_v13, 16  ;;  %v4901_v13 = vpop.permute.xlu1 %2235 }
  0xa3   : > { %1381 = vrot.lane.b32.xlu1 %v4261_v14, %s4405_s21  ;;  %v1671_v33 = vsel %vm4567_vm5, %v1666_v23, %v1670_v5  ;;  %v3899_v34 = vcombine.low %v2125_v20, %v2128_v27  ;;  %v2699_v35 = vor.u32 %v2698_v24, %v2695_v22  ;;  %v2709_v36 = vor.u32 %v2708_v26, %v2704_v25  ;;  %v3790_v5 = vld [vmem:[%s4515_s20 + $0x74] sm:$0x1]  ;;  %v4898_v6 = vpop.permute.xlu0 %1191 }
  0xa4   : > { %v3819_v42 = vcombine.low %v1661_v19, %v1671_v33  ;;  %v2714_v43 = vrot.slane %v2712_v28, 5  ;;  %v628_v44 = vrot.slane %v626_v30, 4  ;;  %v631_v45 = vrot.slane %v629_v31, 5  ;;  %v3854_v23 = vld [vmem:[%s4515_s20 + $0x74] sm:$0x1] }
  0xa5   : > { %v2700_v47 = vrot.slane %v2699_v35, 4  ;;  %v2710_v48 = vrot.slane %v2709_v36, 4  ;;  %v635_v49 = vshll.u32 %v407_v29, 16  ;;  %v639_v50 = vshrl.u32 %v407_v29, 16  ;;  %v3980_v28 = vld [vmem:[%s4515_s20 + $0x78] sm:$0xf] }
  0xa6   : > { %1926 = vrot.lane.b32.xlu0 %v3819_v42, %s4409_s29  ;;  %v632_v53 = vor.u32 %v631_v45, %v628_v44  ;;  %v645_v54 = vshll.u32 %v408_v38, 16  ;;  %v3692_v55 = vrot.slane %v954_v39, 9  ;;  %v1087_v56 = vrot.slane %v955_v40, 5  ;;  %v3982_v40 = vld [vmem:[%s4515_s20 + $0x80] sm:$0x1] }
  0xa7   : > { %2247 = vrot.lane.b32.xlu1 %v3899_v34, %s4408_s28  ;;  %v2705_v57 = vsel %vm4567_vm5, %v2700_v47, %v2704_v25  ;;  %v2715_v58 = vsel %vm4567_vm5, %v2710_v48, %v2714_v43  ;;  %v637_v59 = vrot.slane %v635_v49, 5  ;;  %v641_v60 = vrot.slane %v639_v50, 4  ;;  %v3981_v34 = vld [vmem:[%s4515_s20 + $0x7c] sm:$0xf]  ;;  %v4263_v43 = vld [vmem:[%s4515_s20 + $0x6c] sm:$0xff]   ;;  %v4924_v48 = vpop.permute.xlu1 %1912 }
  0xa8   : > { %v4011_v62 = vcombine.low %v2705_v57, %v2715_v58  ;;  %v633_v63 = vrot.slane %v632_v53, 4  ;;  %v647_v2 = vrot.slane %v645_v54, 5  ;;  %v1088_v4 = vsel %vm4517_vm2, %v3692_v55, %v1087_v56  ;;  %v409_v49 = vld [vmem:[%s4515_s20 + $0x6c] sm:$0xf]  ;;  %v410_v50 = vld [vmem:[%s4515_s20 + $0x70] sm:$0xf] }
  0xa9   : > { %v642_v7 = vor.u32 %v641_v60, %v637_v59  ;;  %v1089_v9 = vrot.slane %v1087_v56, 4  ;;  %v1090_v10 = vrot.slane %v956_v46, 5  ;;  %v1673_v11 = vshrl.u32 %v3788_v51, 16  ;;  %v411_v55 = vld [vmem:[%s4515_s20 + $0x74] sm:$0x1]  ;;  %v4265_v56 = vld [vmem:[%s4515_s20] sm:$0xff]  }
  0xaa   : > { %2425 = vrot.lane.b32.xlu0 %v4262_v52, %s4406_s24  ;;  %v638_v14 = vsel %vm4567_vm5, %v633_v63, %v637_v59  ;;  %v1676_v15 = vshll.u32 %v3788_v51, 16  ;;  %v1682_v16 = vshll.u32 %v3789_v61, 16  ;;  %v1686_v17 = vshrl.u32 %v3789_v61, 16  ;;  %v4916_v42 = vpop.permute.xlu0 %865  ;;  %v4267_v57 = vld [vmem:[%s4515_s20 + $0xc] sm:$0xff]   ;;  %v4269_v58 = vld [vmem:[%s4515_s20 + $0x18] sm:$0xff]   ;;  %v4272_v59 = vld [vmem:[%s4515_s20 + $0x24] sm:$0xff]  }
  0xab   : > { %2970 = vrot.lane.b32.xlu1 %v4011_v62, %s4411_s6  ;;  %v643_v19 = vrot.slane %v642_v7, 4  ;;  %v1091_v20 = vsel %vm4517_vm2, %v1089_v9, %v1090_v10  ;;  %v1675_v21 = vrot.slane %v1673_v11, 4  ;;  %v1692_v22 = vshll.u32 %v3790_v5, 16  ;;  %v4275_v60 = vld [vmem:[%s4515_s20 + $0x30] sm:$0xff]   ;;  %v4278_v61 = vld [vmem:[%s4515_s20 + $0x3c] sm:$0xff]   ;;  %v4281_v5 = vld [vmem:[%s4515_s20 + $0x48] sm:$0xff]  }
  0xac   : > { %v3708_v24 = vcombine.low %v1088_v4, %v1091_v20  ;;  %v1678_v25 = vrot.slane %v1676_v15, 5  ;;  %v1684_v26 = vrot.slane %v1682_v16, 5  ;;  %v1688_v27 = vrot.slane %v1686_v17, 4  ;;  %366 = vst.msk [vmem:[#allocation2] sm:$0xff] %vm365_vm6, %v4265_v56  ;;  %367 = vst.msk [vmem:[#allocation2 + $0x10] sm:$0xff] %vm365_vm6, %v4267_v57 }
  0xad   : > { %v648_v29 = vsel %vm4567_vm5, %v643_v19, %v647_v2  ;;  %v1694_v30 = vrot.slane %v1692_v22, 5  ;;  %v3884_v31 = vrot.slane %v3852_v12, 9  ;;  %v2131_v33 = vrot.slane %v3853_v18, 5  ;;  %v4284_v12 = vld [vmem:[%s4515_s20 + $0x54] sm:$0xff]   ;;  %v957_v22 = vld [vmem:[%s4515_s20 + $0x6c] sm:$0xe] }
  0xae   : > { %v3676_v35 = vcombine.low %v638_v14, %v648_v29  ;;  %v1679_v36 = vor.u32 %v1678_v25, %v1675_v21  ;;  %v1689_v38 = vor.u32 %v1688_v27, %v1684_v26  ;;  %v2134_v39 = vrot.slane %v3854_v23, 5  ;;  %368 = vst.msk [vmem:[#allocation2 + $0x20] sm:$0xff] %vm365_vm6, %v4269_v58  ;;  %369 = vst.msk [vmem:[#allocation2 + $0x30] sm:$0xff] %vm365_vm6, %v4272_v59  ;;  %v3856_v57 = vld [vmem:[%s4515_s20 + $0x7c] sm:$0xf] }
  0xaf   : > { %1205 = vrot.lane.b32.xlu1 %v3708_v24, %s4407_s27  ;;  %v4922_v44 = vsel %vm4517_vm2, %v3884_v31, %v2131_v33  ;;  %v2133_v45 = vrot.slane %v2131_v33, 4  ;;  %v2717_v46 = vshrl.u32 %v3980_v28, 16  ;;  %v2720_v47 = vshll.u32 %v3980_v28, 16  ;;  %v4264_v24 = vld [vmem:[%s4515_s20 + $0x78] sm:$0xff]   ;;  %v958_v28 = vld [vmem:[%s4515_s20 + $0x70] sm:$0xf]  ;;  %v868_v29 = vpop.permute.xlu1 %867 }
  0xb0   : > { %881 = vrot.lane.b32.xlu0 %v3676_v35, %s4410_s5  ;;  %v1680_v51 = vrot.slane %v1679_v36, 4  ;;  %v1690_v52 = vrot.slane %v1689_v38, 4  ;;  %v2726_v53 = vshll.u32 %v3981_v34, 16  ;;  %v2730_v54 = vshrl.u32 %v3981_v34, 16  ;;  %v959_v35 = vld [vmem:[%s4515_s20 + $0x74] sm:$0x1] }
  0xb1   : > { %v2135_v62 = vsel %vm4517_vm2, %v2133_v45, %v2134_v39  ;;  %v2719_v63 = vrot.slane %v2717_v46, 4  ;;  %v2722_v2 = vrot.slane %v2720_v47, 5  ;;  %v2736_v4 = vshll.u32 %v3982_v40, 16  ;;  %370 = vst.msk [vmem:[#allocation2 + $0x40] sm:$0xff] %vm365_vm6, %v4275_v60  ;;  %371 = vst.msk [vmem:[#allocation2 + $0x50] sm:$0xff] %vm365_vm6, %v4278_v61 }
  0xb2   : > { %v1685_v7 = vsel %vm4567_vm5, %v1680_v51, %v1684_v26  ;;  %v1695_v9 = vsel %vm4567_vm5, %v1690_v52, %v1694_v30  ;;  %v3900_v10 = vcombine.low %v4922_v44, %v2135_v62  ;;  %v2728_v11 = vrot.slane %v2726_v53, 5  ;;  %372 = vst.msk [vmem:[#allocation2 + $0x60] sm:$0xff] %vm365_vm6, %v4281_v5  ;;  %373 = vst.msk [vmem:[#allocation2 + $0x70] sm:$0xff] %vm365_vm6, %v4284_v12  ;;  %v3791_v44 = vld [vmem:[%s4515_s20 + $0x78] sm:$0xf] }
  0xb3   : > { %v3820_v14 = vcombine.low %v1685_v7, %v1695_v9  ;;  %v2723_v15 = vor.u32 %v2722_v2, %v2719_v63  ;;  %v2732_v16 = vrot.slane %v2730_v54, 4  ;;  %v2738_v17 = vrot.slane %v2736_v4, 5  ;;  %914 = vst.msk [vmem:[#allocation2] sm:$0xff] %vm913_vm7, %v4916_v42  ;;  %915 = vst.msk [vmem:[#allocation2 + $0x10] sm:$0xff] %vm913_vm7, %v868_v29  ;;  %v3792_v45 = vld [vmem:[%s4515_s20 + $0x7c] sm:$0xf] }
  0xb4   : > { %1383 = vrot.lane.b32.xlu0 %v4263_v43, %s4405_s21  ;;  %v650_v18 = vshrl.u32 %v409_v49, 16  ;;  %v653_v19 = vshll.u32 %v409_v49, 16  ;;  %v659_v20 = vshll.u32 %v410_v50, 16  ;;  %v663_v21 = vshrl.u32 %v410_v50, 16  ;;  %v4947_v23 = vpop.permute.xlu0 %2956  ;;  %1238 = vst.msk [vmem:[#allocation2] sm:$0xff] %vm1237_vm8, %v4859_v1  ;;  %1239 = vst.msk [vmem:[#allocation2 + $0x10] sm:$0xff] %vm1237_vm8, %v4898_v6 }
  0xb5   : > { %1928 = vrot.lane.b32.xlu1 %v3820_v14, %s4409_s29  ;;  %v2724_v25 = vrot.slane %v2723_v15, 4  ;;  %v2733_v26 = vor.u32 %v2732_v16, %v2728_v11  ;;  %v669_v27 = vshll.u32 %v411_v55, 16  ;;  %v3693_v49 = vrot.slane %v957_v22, 9  ;;  %v3793_v42 = vld [vmem:[%s4515_s20 + $0x80] sm:$0x1]  ;;  %1416 = vst.msk [vmem:[#allocation2] sm:$0xff] %vm1415_vm9, %v4839_v37 }
  0xb6   : > { %v652_v30 = vrot.slane %v650_v18, 4  ;;  %v655_v31 = vrot.slane %v653_v19, 5  ;;  %v661_v33 = vrot.slane %v659_v20, 5  ;;  %v665_v34 = vrot.slane %v663_v21, 4  ;;  %1417 = vst.msk [vmem:[#allocation2 + $0x10] sm:$0xff] %vm1415_vm9, %v4883_v41  ;;  %v4266_v4 = vld [vmem:[%s4515_s20 + $0x78] sm:$0xff]  }
  0xb7   : > { %v2729_v36 = vsel %vm4567_vm5, %v2724_v25, %v2728_v11  ;;  %v2734_v38 = vrot.slane %v2733_v26, 4  ;;  %v671_v39 = vrot.slane %v669_v27, 5  ;;  %v1094_v50 = vrot.slane %v958_v28, 5  ;;  %v3855_v55 = vld [vmem:[%s4515_s20 + $0x78] sm:$0xe]  ;;  %1961 = vst.msk [vmem:[#allocation2] sm:$0xff] %vm1960_vm10, %v4924_v48 }
  0xb8   : > { %2249 = vrot.lane.b32.xlu0 %v3900_v10, %s4408_s28  ;;  %v656_v40 = vor.u32 %v655_v31, %v652_v30  ;;  %v666_v43 = vor.u32 %v665_v34, %v661_v33  ;;  %v1915_v46 = vpop.permute.xlu0 %1914  ;;  %v1097_v51 = vrot.slane %v959_v35, 5  ;;  %2282 = vst.msk [vmem:[#allocation2] sm:$0xff] %vm2281_vm11, %v4875_v32  ;;  %v1697_v6 = vshrl.u32 %v3791_v44, 16  ;;  %v3857_v63 = vld [vmem:[%s4515_s20 + $0x80] sm:$0x1] }
  0xb9   : > { %2427 = vrot.lane.b32.xlu1 %v4264_v24, %s4406_s24  ;;  %v2739_v47 = vsel %vm4567_vm5, %v2734_v38, %v2738_v17  ;;  %v1095_v1 = vsel %vm4517_vm2, %v3693_v49, %v1094_v50  ;;  %v1096_v56 = vrot.slane %v1094_v50, 4  ;;  %1962 = vst.msk [vmem:[#allocation2 + $0x10] sm:$0xff] %vm1960_vm10, %v1915_v46  ;;  %v1700_v61 = vshll.u32 %v3791_v44, 16  ;;  %v3983_v32 = vld [vmem:[%s4515_s20 + $0x84] sm:$0xf] }
  0xba   : > { %v4012_v52 = vcombine.low %v2729_v36, %v2739_v47  ;;  %v657_v53 = vrot.slane %v656_v40, 4  ;;  %v667_v54 = vrot.slane %v666_v43, 4  ;;  %2283 = vst.msk [vmem:[#allocation2 + $0x10] sm:$0xff] %vm2281_vm11, %v4901_v13  ;;  %v1706_v62 = vshll.u32 %v3792_v45, 16  ;;  %v3984_v9 = vld [vmem:[%s4515_s20 + $0x88] sm:$0xf] }
  0xbb   : > { %v1098_v60 = vsel %vm4517_vm2, %v1096_v56, %v1097_v51  ;;  %2460 = vst.msk [vmem:[#allocation2] sm:$0xff] %vm2459_vm12, %v4862_v8  ;;  %v1699_v13 = vrot.slane %v1697_v6, 4  ;;  %v1710_v5 = vshrl.u32 %v3792_v45, 16  ;;  %v1716_v7 = vshll.u32 %v3793_v42, 16  ;;  %v3985_v14 = vld [vmem:[%s4515_s20 + $0x8c] sm:$0x1] }
  0xbc   : > { %2972 = vrot.lane.b32.xlu0 %v4012_v52, %s4411_s6  ;;  %v662_v37 = vsel %vm4567_vm5, %v657_v53, %v661_v33  ;;  %v672_v41 = vsel %vm4567_vm5, %v667_v54, %v671_v39  ;;  %v2414_v48 = vpop.permute.xlu0 %2413  ;;  %v2959_v58 = vpop.permute.xlu1 %2958  ;;  %v3709_v2 = vcombine.low %v1095_v1, %v1098_v60  ;;  %3005 = vst.msk [vmem:[#allocation2] sm:$0xff] %vm3004_vm13, %v4947_v23  ;;  %v1702_v8 = vrot.slane %v1700_v61, 5  ;;  %v4020_v19 = vld [vmem:[%s4515_s20 + $0x18] sm:$0xe]  ;;  %v4021_v30 = vld [vmem:[%s4515_s20 + $0x1c] sm:$0xf] }
  0xbd   : > { %v3677_v59 = vcombine.low %v662_v37, %v672_v41  ;;  %2461 = vst.msk [vmem:[#allocation2 + $0x10] sm:$0xff] %vm2459_vm12, %v2414_v48  ;;  %v1708_v10 = vrot.slane %v1706_v62, 5  ;;  %v3885_v11 = vrot.slane %v3855_v55, 9  ;;  %v2138_v12 = vrot.slane %v3856_v57, 5  ;;  %v4287_v31 = vld [vmem:[%s4515_s20 + $0x60] sm:$0xff]  }
  0xbe   : > { %3006 = vst.msk [vmem:[#allocation2 + $0x10] sm:$0xff] %vm3004_vm13, %v2959_v58  ;;  %v1712_v15 = vrot.slane %v1710_v5, 4  ;;  %v1718_v16 = vrot.slane %v1716_v7, 5  ;;  %v2141_v17 = vrot.slane %v3857_v63, 5  ;;  %v2741_v18 = vshrl.u32 %v3983_v32, 16  ;;  %v4288_v58 = vld [vmem:[%s4515_s20 + $0x6c] sm:$0xff]  }
  0xbf   : > { %883 = vrot.lane.b32.xlu1 %v3677_v59, %s4410_s5  ;;  %v1703_v22 = vor.u32 %v1702_v8, %v1699_v13  ;;  %v2139_v23 = vsel %vm4517_vm2, %v3885_v11, %v2138_v12  ;;  %v2140_v24 = vrot.slane %v2138_v12, 4  ;;  %v2744_v25 = vshll.u32 %v3983_v32, 16  ;;  %v4022_v38 = vld [vmem:[%s4515_s20 + $0x20] sm:$0x1]  ;;  %v412_v45 = vld [vmem:[%s4515_s20 + $0x78] sm:$0xf] }
  0xc0   : > { %1207 = vrot.lane.b32.xlu0 %v3709_v2, %s4407_s27  ;;  %v870_v20 = vpop.permute.xlu0 %869  ;;  %v1194_v21 = vpop.permute.xlu1 %1193  ;;  %v1713_v26 = vor.u32 %v1712_v15, %v1708_v10  ;;  %v2743_v27 = vrot.slane %v2741_v18, 4  ;;  %v2750_v28 = vshll.u32 %v3984_v9, 16  ;;  %v2754_v29 = vshrl.u32 %v3984_v9, 16  ;;  %374 = vst.msk [vmem:[#allocation2 + $0x80] sm:$0xff] %vm365_vm6, %v4287_v31  ;;  %v413_v42 = vld [vmem:[%s4515_s20 + $0x7c] sm:$0xf] }
  0xc1   : > { %916 = vst.msk [vmem:[#allocation2 + $0x20] sm:$0xff] %vm913_vm7, %v870_v20  ;;  %v1704_v33 = vrot.slane %v1703_v22, 4  ;;  %v2142_v34 = vsel %vm4517_vm2, %v2140_v24, %v2141_v17  ;;  %v2746_v35 = vrot.slane %v2744_v25, 5  ;;  %v2760_v36 = vshll.u32 %v3985_v14, 16  ;;  %v414_v1 = vld [vmem:[%s4515_s20 + $0x80] sm:$0x1] }
  0xc2   : > { %1240 = vst.msk [vmem:[#allocation2 + $0x20] sm:$0xff] %vm1237_vm8, %v1194_v21  ;;  %v1714_v39 = vrot.slane %v1713_v26, 4  ;;  %v3901_v40 = vcombine.low %v2139_v23, %v2142_v34  ;;  %v2752_v43 = vrot.slane %v2750_v28, 5  ;;  %v2756_v44 = vrot.slane %v2754_v29, 4  ;;  %v960_v48 = vld [vmem:[%s4515_s20 + $0x78] sm:$0xe] }
  0xc3   : > { %1385 = vrot.lane.b32.xlu1 %v4266_v4, %s4405_s21  ;;  %v1709_v47 = vsel %vm4567_vm5, %v1704_v33, %v1708_v10  ;;  %v2747_v49 = vor.u32 %v2746_v35, %v2743_v27  ;;  %v2762_v50 = vrot.slane %v2760_v36, 5  ;;  %v4068_v51 = vrot.slane %v4020_v19, 9  ;;  %v961_v63 = vld [vmem:[%s4515_s20 + $0x7c] sm:$0xf]  ;;  %v4268_v2 = vld [vmem:[%s4515_s20 + $0x84] sm:$0xff]   ;;  %375 = vst.msk [vmem:[#allocation2 + $0x90] sm:$0xff] %vm365_vm6, %v4288_v58 }
  0xc4   : > { %v1372_v46 = vpop.permute.xlu0 %1371  ;;  %v1719_v52 = vsel %vm4567_vm5, %v1714_v39, %v1718_v16  ;;  %v2757_v53 = vor.u32 %v2756_v44, %v2752_v43  ;;  %v3119_v54 = vrot.slane %v4021_v30, 5  ;;  %v3122_v55 = vrot.slane %v4022_v38, 5  ;;  %v962_v9 = vld [vmem:[%s4515_s20 + $0x80] sm:$0x1]  ;;  %v3794_v14 = vld [vmem:[%s4515_s20 + $0x84] sm:$0xf] }
  0xc5   : > { %1418 = vst.msk [vmem:[#allocation2 + $0x20] sm:$0xff] %vm1415_vm9, %v1372_v46  ;;  %v3821_v37 = vcombine.low %v1709_v47, %v1719_v52  ;;  %v2748_v41 = vrot.slane %v2747_v49, 4  ;;  %v674_v6 = vshrl.u32 %v412_v45, 16  ;;  %v677_v57 = vshll.u32 %v412_v45, 16  ;;  %v3795_v20 = vld [vmem:[%s4515_s20 + $0x88] sm:$0xf] }
  0xc6   : > { %v1917_v56 = vpop.permute.xlu1 %1916  ;;  %v2758_v59 = vrot.slane %v2757_v53, 4  ;;  %v3120_v60 = vsel %vm4517_vm2, %v4068_v51, %v3119_v54  ;;  %v3121_v61 = vrot.slane %v3119_v54, 4  ;;  %v683_v62 = vshll.u32 %v413_v42, 16  ;;  %v3796_v21 = vld [vmem:[%s4515_s20 + $0x8c] sm:$0x1]  ;;  %v4289_v34 = vld [vmem:[%s4515_s20 + $0x78] sm:$0xff]  }
  0xc7   : > { %2251 = vrot.lane.b32.xlu1 %v3901_v40, %s4408_s28  ;;  %1963 = vst.msk [vmem:[#allocation2 + $0x20] sm:$0xff] %vm1960_vm10, %v1917_v56  ;;  %1930 = vrot.lane.b32.xlu0 %v3821_v37, %s4409_s29  ;;  %v2753_v4 = vsel %vm4567_vm5, %v2748_v41, %v2752_v43  ;;  %v676_v13 = vrot.slane %v674_v6, 4  ;;  %v679_v5 = vrot.slane %v677_v57, 5  ;;  %v687_v7 = vshrl.u32 %v413_v42, 16  ;;  %v3858_v26 = vld [vmem:[%s4515_s20 + $0x84] sm:$0xe] }
  0xc8   : > { %v2238_v32 = vpop.permute.xlu0 %2237  ;;  %v2763_v8 = vsel %vm4567_vm5, %v2758_v59, %v2762_v50  ;;  %v3123_v10 = vsel %vm4517_vm2, %v3121_v61, %v3122_v55  ;;  %v685_v11 = vrot.slane %v683_v62, 5  ;;  %v693_v12 = vshll.u32 %v414_v1, 16  ;;  %v3859_v33 = vld [vmem:[%s4515_s20 + $0x88] sm:$0xf]  ;;  %v3860_v40 = vld [vmem:[%s4515_s20 + $0x8c] sm:$0x1] }
  0xc9   : > { %2284 = vst.msk [vmem:[#allocation2 + $0x20] sm:$0xff] %vm2281_vm11, %v2238_v32  ;;  %v4013_v16 = vcombine.low %v2753_v4, %v2763_v8  ;;  %v4084_v17 = vcombine.low %v3120_v60, %v3123_v10  ;;  %v680_v18 = vor.u32 %v679_v5, %v676_v13  ;;  %v689_v19 = vrot.slane %v687_v7, 4  ;;  %v4023_v47 = vld [vmem:[%s4515_s20 + $0x24] sm:$0xe]  ;;  %v4024_v52 = vld [vmem:[%s4515_s20 + $0x28] sm:$0xf] }
  0xca   : > { %v2416_v15 = vpop.permute.xlu1 %2415  ;;  %v695_v22 = vrot.slane %v693_v12, 5  ;;  %v3694_v23 = vrot.slane %v960_v48, 9  ;;  %v1101_v24 = vrot.slane %v961_v63, 5  ;;  %v1104_v25 = vrot.slane %v962_v9, 5  ;;  %376 = vst.msk [vmem:[#allocation2 + $0xa0] sm:$0xff] %vm365_vm6, %v4289_v34  ;;  %v3313_v61 = vld [vmem:[#allocation2] sm:$0xff] }
  0xcb   : > { %2462 = vst.msk [vmem:[#allocation2 + $0x20] sm:$0xff] %vm2459_vm12, %v2416_v15  ;;  %2429 = vrot.lane.b32.xlu0 %v4268_v2, %s4406_s24  ;;  %2974 = vrot.lane.b32.xlu1 %v4013_v16, %s4411_s6  ;;  %v681_v28 = vrot.slane %v680_v18, 4  ;;  %v690_v29 = vor.u32 %v689_v19, %v685_v11  ;;  %v1721_v30 = vshrl.u32 %v3794_v14, 16  ;;  %v1724_v31 = vshll.u32 %v3794_v14, 16  ;;  %v4025_v41 = vld [vmem:[%s4515_s20 + $0x2c] sm:$0x1] }
  0xcc   : > { %v2961_v27 = vpop.permute.xlu0 %2960  ;;  %3293 = vst.msk [vmem:[#allocation2 + $0x8] sm:$0xff] %vm365_vm6, %v4084_v17  ;;  %v1102_v35 = vsel %vm4517_vm2, %v3694_v23, %v1101_v24  ;;  %v1103_v36 = vrot.slane %v1101_v24, 4  ;;  %v1730_v38 = vshll.u32 %v3795_v20, 16  ;;  %v1734_v39 = vshrl.u32 %v3795_v20, 16  ;;  %v3986_v59 = vld [vmem:[%s4515_s20 + $0x90] sm:$0xf] }
  0xcd   : > { %3007 = vst.msk [vmem:[#allocation2 + $0x20] sm:$0xff] %vm3004_vm13, %v2961_v27  ;;  %v686_v43 = vsel %vm4567_vm5, %v681_v28, %v685_v11  ;;  %v691_v44 = vrot.slane %v690_v29, 4  ;;  %v1723_v45 = vrot.slane %v1721_v30, 4  ;;  %v1726_v46 = vrot.slane %v1724_v31, 5  ;;  %v3987_v60 = vld [vmem:[%s4515_s20 + $0x94] sm:$0xf] }
  0xce   : > { %v1105_v49 = vsel %vm4517_vm2, %v1103_v36, %v1104_v25  ;;  %v1732_v50 = vrot.slane %v1730_v38, 5  ;;  %v1736_v51 = vrot.slane %v1734_v39, 4  ;;  %v1740_v42 = vshll.u32 %v3796_v21, 16  ;;  %v4270_v62 = vld [vmem:[%s4515_s20 + $0x84] sm:$0xff]   ;;  %v3988_v10 = vld [vmem:[%s4515_s20 + $0x98] sm:$0x1] }
  0xcf   : > { %v696_v55 = vsel %vm4567_vm5, %v691_v44, %v695_v22  ;;  %v3710_v1 = vcombine.low %v1102_v35, %v1105_v49  ;;  %v1727_v56 = vor.u32 %v1726_v46, %v1723_v45  ;;  %v3886_v37 = vrot.slane %v3858_v26, 9  ;;  %v415_v11 = vld [vmem:[%s4515_s20 + $0x84] sm:$0xf]  ;;  %v416_v18 = vld [vmem:[%s4515_s20 + $0x88] sm:$0xf]  ;;  %v4271_v31 = vld [vmem:[%s4515_s20 + $0x90] sm:$0xff]  }
  0xd0   : > { %v872_v53 = vpop.permute.xlu1 %871  ;;  %v1196_v54 = vpop.permute.xlu0 %1195  ;;  %v3678_v6 = vcombine.low %v686_v43, %v696_v55  ;;  %v1737_v57 = vor.u32 %v1736_v51, %v1732_v50  ;;  %v1742_v48 = vrot.slane %v1740_v42, 5  ;;  %v2145_v58 = vrot.slane %v3859_v33, 5  ;;  %v417_v19 = vld [vmem:[%s4515_s20 + $0x8c] sm:$0x1]  ;;  %v4290_v29 = vld [vmem:[%s4515_s20 + $0x84] sm:$0xff]  }
  0xd1   : > { %917 = vst.msk [vmem:[#allocation2 + $0x30] sm:$0xff] %vm913_vm7, %v872_v53  ;;  %1209 = vrot.lane.b32.xlu1 %v3710_v1, %s4407_s27  ;;  %v1728_v63 = vrot.slane %v1727_v56, 4  ;;  %v2148_v32 = vrot.slane %v3860_v40, 5  ;;  %v4069_v2 = vrot.slane %v4023_v47, 9  ;;  %v3126_v4 = vrot.slane %v4024_v52, 5 }
  0xd2   : > { %1241 = vst.msk [vmem:[#allocation2 + $0x30] sm:$0xff] %vm1237_vm8, %v1196_v54  ;;  %885 = vrot.lane.b32.xlu0 %v3678_v6, %s4410_s5  ;;  %v1738_v5 = vrot.slane %v1737_v57, 4  ;;  %v2146_v7 = vsel %vm4517_vm2, %v3886_v37, %v2145_v58  ;;  %v2147_v9 = vrot.slane %v2145_v58, 4  ;;  %v3129_v8 = vrot.slane %v4025_v41, 5  ;;  %v963_v36 = vld [vmem:[%s4515_s20 + $0x84] sm:$0xe] }
  0xd3   : > { %v3314_v13 = vld [vmem:[#allocation2 + $0x8] sm:$0xff]  ;;  %v1733_v14 = vsel %vm4567_vm5, %v1728_v63, %v1732_v50  ;;  %v3127_v15 = vsel %vm4517_vm2, %v4069_v2, %v3126_v4  ;;  %v3128_v16 = vrot.slane %v3126_v4, 4  ;;  %v2765_v17 = vshrl.u32 %v3986_v59, 16  ;;  %377 = vst.msk [vmem:[#allocation2 + $0xb0] sm:$0xff] %vm365_vm6, %v4290_v29  ;;  %v3797_v55 = vld [vmem:[%s4515_s20 + $0x90] sm:$0xf] }
  0xd4   : > { %v1374_v12 = vpop.permute.xlu1 %1373  ;;  %4104 = vmatprep.subr.msk.bf16.mxu0 %vm365_vm6, %v3314_v13  ;;  %4132 = vmatprep.subr.msk.bf16.mxu1 %vm365_vm6, %v3314_v13  ;;  %v1743_v20 = vsel %vm4567_vm5, %v1738_v5, %v1742_v48  ;;  %v2149_v21 = vsel %vm4517_vm2, %v2147_v9, %v2148_v32  ;;  %v2768_v22 = vshll.u32 %v3986_v59, 16  ;;  %v2774_v23 = vshll.u32 %v3987_v60, 16  ;;  %v964_v45 = vld [vmem:[%s4515_s20 + $0x88] sm:$0xf]  ;;  %v965_v51 = vld [vmem:[%s4515_s20 + $0x8c] sm:$0x1] }
  0xd5   : > { %1419 = vst.msk [vmem:[#allocation2 + $0x30] sm:$0xff] %vm1415_vm9, %v1374_v12  ;;  %3442 = vmatpush1.bf16.xpose.msra.mxu0 %v3313_v61  ;;  %4148 = vmatpush1.bf16.xpose.msra.mxu1 %v3313_v61  ;;  %v3822_v24 = vcombine.low %v1733_v14, %v1743_v20  ;;  %v3902_v25 = vcombine.low %v2146_v7, %v2149_v21  ;;  %v2767_v27 = vrot.slane %v2765_v17, 4  ;;  %v2778_v35 = vshrl.u32 %v3987_v60, 16  ;;  %v3798_v61 = vld [vmem:[%s4515_s20 + $0x94] sm:$0xf] }
  0xd6   : > { %v3130_v26 = vsel %vm4517_vm2, %v3128_v16, %v3129_v8  ;;  %1387 = vrot.lane.b32.xlu0 %v4270_v62, %s4405_s21  ;;  %v2770_v33 = vrot.slane %v2768_v22, 5  ;;  %v2776_v34 = vrot.slane %v2774_v23, 5  ;;  %v2784_v39 = vshll.u32 %v3988_v10, 16  ;;  %v3799_v2 = vld [vmem:[%s4515_s20 + $0x98] sm:$0x1]  ;;  %v3315_v12 = vld [vmem:[#allocation2 + $0x10] sm:$0xff] }
  0xd7   : > { %v1919_v28 = vpop.permute.xlu0 %1918  ;;  %v4085_v30 = vcombine.low %v3127_v15, %v3130_v26  ;;  %1932 = vrot.lane.b32.xlu1 %v3822_v24, %s4409_s29  ;;  %v698_v40 = vshrl.u32 %v415_v11, 16  ;;  %v701_v43 = vshll.u32 %v415_v11, 16  ;;  %v707_v44 = vshll.u32 %v416_v18, 16  ;;  %v3861_v13 = vld [vmem:[%s4515_s20 + $0x90] sm:$0xe] }
  0xd8   : > { %1964 = vst.msk [vmem:[#allocation2 + $0x30] sm:$0xff] %vm1960_vm10, %v1919_v28  ;;  %v2240_v38 = vpop.permute.xlu1 %2239  ;;  %v2771_v46 = vor.u32 %v2770_v33, %v2767_v27  ;;  %v2780_v47 = vrot.slane %v2778_v35, 4  ;;  %v711_v49 = vshrl.u32 %v416_v18, 16  ;;  %v717_v50 = vshll.u32 %v417_v19, 16  ;;  %v3862_v10 = vld [vmem:[%s4515_s20 + $0x94] sm:$0xf] }
  0xd9   : > { %2285 = vst.msk [vmem:[#allocation2 + $0x30] sm:$0xff] %vm2281_vm11, %v2240_v38  ;;  %v2786_v42 = vrot.slane %v2784_v39, 5  ;;  %v700_v52 = vrot.slane %v698_v40, 4  ;;  %v703_v53 = vrot.slane %v701_v43, 5  ;;  %v709_v54 = vrot.slane %v707_v44, 5  ;;  %v4273_v39 = vld [vmem:[%s4515_s20 + $0x90] sm:$0xff]  }
  0xda   : > { %3294 = vst.msk [vmem:[#allocation2 + $0x18] sm:$0xff] %vm365_vm6, %v4085_v30  ;;  %2253 = vrot.lane.b32.xlu0 %v3902_v25, %s4408_s28  ;;  %v2772_v56 = vrot.slane %v2771_v46, 4  ;;  %v2781_v37 = vor.u32 %v2780_v47, %v2776_v34  ;;  %v713_v41 = vrot.slane %v711_v49, 4  ;;  %v719_v6 = vrot.slane %v717_v50, 5  ;;  %v3863_v11 = vld [vmem:[%s4515_s20 + $0x98] sm:$0x1] }
  0xdb   : > { %v2418_v1 = vpop.permute.xlu0 %2417  ;;  %2431 = vrot.lane.b32.xlu1 %v4271_v31, %s4406_s24  ;;  %v704_v48 = vor.u32 %v703_v53, %v700_v52  ;;  %v3695_v58 = vrot.slane %v963_v36, 9  ;;  %v1108_v59 = vrot.slane %v964_v45, 5  ;;  %v1111_v60 = vrot.slane %v965_v51, 5  ;;  %v4026_v24 = vld [vmem:[%s4515_s20 + $0x30] sm:$0xe] }
  0xdc   : > { %2463 = vst.msk [vmem:[#allocation2 + $0x30] sm:$0xff] %vm2459_vm12, %v2418_v1  ;;  %v2963_v57 = vpop.permute.xlu1 %2962  ;;  %v2777_v62 = vsel %vm4567_vm5, %v2772_v56, %v2776_v34  ;;  %v2782_v63 = vrot.slane %v2781_v37, 4  ;;  %v714_v32 = vor.u32 %v713_v41, %v709_v54  ;;  %v1745_v4 = vshrl.u32 %v3797_v55, 16  ;;  %v4027_v30 = vld [vmem:[%s4515_s20 + $0x34] sm:$0xf] }
  0xdd   : > { %3008 = vst.msk [vmem:[#allocation2 + $0x30] sm:$0xff] %vm3004_vm13, %v2963_v57  ;;  %v705_v5 = vrot.slane %v704_v48, 4  ;;  %v1109_v7 = vsel %vm4517_vm2, %v3695_v58, %v1108_v59  ;;  %v1110_v9 = vrot.slane %v1108_v59, 4  ;;  %v1748_v8 = vshll.u32 %v3797_v55, 16  ;;  %v4028_v31 = vld [vmem:[%s4515_s20 + $0x38] sm:$0x1] }
  0xde   : > { %v2787_v14 = vsel %vm4567_vm5, %v2782_v63, %v2786_v42  ;;  %v715_v15 = vrot.slane %v714_v32, 4  ;;  %v1747_v16 = vrot.slane %v1745_v4, 4  ;;  %v1754_v17 = vshll.u32 %v3798_v61, 16  ;;  %v3989_v38 = vld [vmem:[%s4515_s20 + $0x9c] sm:$0xf] }
  0xdf   : > { %v4014_v20 = vcombine.low %v2777_v62, %v2787_v14  ;;  %v710_v21 = vsel %vm4567_vm5, %v705_v5, %v709_v54  ;;  %v1112_v22 = vsel %vm4517_vm2, %v1110_v9, %v1111_v60  ;;  %v1750_v23 = vrot.slane %v1748_v8, 5  ;;  %v3990_v51 = vld [vmem:[%s4515_s20 + $0xa0] sm:$0xf]  ;;  %v418_v48 = vld [vmem:[%s4515_s20 + $0x90] sm:$0xf] }
  0xe0   : > { %v1198_v18 = vpop.permute.xlu1 %1197  ;;  %v720_v26 = vsel %vm4567_vm5, %v715_v15, %v719_v6  ;;  %v3711_v27 = vcombine.low %v1109_v7, %v1112_v22  ;;  %v1756_v28 = vrot.slane %v1754_v17, 5  ;;  %v1758_v29 = vshrl.u32 %v3798_v61, 16  ;;  %v3991_v6 = vld [vmem:[%s4515_s20 + $0xa4] sm:$0x1]  ;;  %v419_v62 = vld [vmem:[%s4515_s20 + $0x94] sm:$0xf] }
  0xe1   : > { %v3316_v19 = vld [vmem:[#allocation2 + $0x18] sm:$0xff]  ;;  %v874_v25 = vpop.permute.xlu0 %873  ;;  %v3679_v33 = vcombine.low %v710_v21, %v720_v26  ;;  %v1751_v34 = vor.u32 %v1750_v23, %v1747_v16  ;;  %v1764_v35 = vshll.u32 %v3799_v2, 16  ;;  %v3887_v36 = vrot.slane %v3861_v13, 9  ;;  %2976 = vrot.lane.b32.xlu0 %v4014_v20, %s4411_s6 }
  0xe2   : > { %4105 = vmatprep.subr.msk.bf16.mxu0 %vm365_vm6, %v3316_v19  ;;  %4133 = vmatprep.subr.msk.bf16.mxu1 %vm365_vm6, %v3316_v19  ;;  %918 = vst.msk [vmem:[#allocation2 + $0x40] sm:$0xff] %vm913_vm7, %v874_v25  ;;  %v1760_v40 = vrot.slane %v1758_v29, 4  ;;  %v2152_v43 = vrot.slane %v3862_v10, 5  ;;  %v2155_v44 = vrot.slane %v3863_v11, 5  ;;  %v4070_v45 = vrot.slane %v4026_v24, 9  ;;  %v4274_v14 = vld [vmem:[%s4515_s20 + $0x9c] sm:$0xff]  }
  0xe3   : > { %3444 = vmatpush1.bf16.xpose.msra.mxu0 %v3315_v12  ;;  %4149 = vmatpush1.bf16.xpose.msra.mxu1 %v3315_v12  ;;  %1242 = vst.msk [vmem:[#allocation2 + $0x40] sm:$0xff] %vm1237_vm8, %v1198_v18  ;;  %v1752_v46 = vrot.slane %v1751_v34, 4  ;;  %v1766_v47 = vrot.slane %v1764_v35, 5  ;;  %v3133_v49 = vrot.slane %v4027_v30, 5  ;;  %v3136_v50 = vrot.slane %v4028_v31, 5  ;;  %v4291_v31 = vld [vmem:[%s4515_s20 + $0x90] sm:$0xff]  }
  0xe4   : > { %887 = vrot.lane.b32.xlu1 %v3679_v33, %s4410_s5  ;;  %v1761_v52 = vor.u32 %v1760_v40, %v1756_v28  ;;  %v2153_v53 = vsel %vm4517_vm2, %v3887_v36, %v2152_v43  ;;  %v2154_v54 = vrot.slane %v2152_v43, 4  ;;  %v2789_v55 = vshrl.u32 %v3989_v38, 16  ;;  %v420_v10 = vld [vmem:[%s4515_s20 + $0x98] sm:$0x1]  ;;  %v966_v18 = vld [vmem:[%s4515_s20 + $0x90] sm:$0xe] }
  0xe5   : > { %v1376_v42 = vpop.permute.xlu0 %1375  ;;  %v1757_v56 = vsel %vm4567_vm5, %v1752_v46, %v1756_v28  ;;  %v3134_v37 = vsel %vm4517_vm2, %v4070_v45, %v3133_v49  ;;  %v3135_v41 = vrot.slane %v3133_v49, 4  ;;  %v2792_v57 = vshll.u32 %v3989_v38, 16  ;;  %1211 = vrot.lane.b32.xlu0 %v3711_v27, %s4407_s27  ;;  %v967_v19 = vld [vmem:[%s4515_s20 + $0x94] sm:$0xf]  ;;  %v968_v24 = vld [vmem:[%s4515_s20 + $0x98] sm:$0x1] }
  0xe6   : > { %1420 = vst.msk [vmem:[#allocation2 + $0x40] sm:$0xff] %vm1415_vm9, %v1376_v42  ;;  %v1921_v1 = vpop.permute.xlu1 %1920  ;;  %v1762_v58 = vrot.slane %v1761_v52, 4  ;;  %v2156_v59 = vsel %vm4517_vm2, %v2154_v54, %v2155_v44  ;;  %v2791_v60 = vrot.slane %v2789_v55, 4  ;;  %v2798_v61 = vshll.u32 %v3990_v51, 16  ;;  %v3800_v29 = vld [vmem:[%s4515_s20 + $0x9c] sm:$0xf] }
  0xe7   : > { %1965 = vst.msk [vmem:[#allocation2 + $0x40] sm:$0xff] %vm1960_vm10, %v1921_v1  ;;  %v3903_v63 = vcombine.low %v2153_v53, %v2156_v59  ;;  %v3137_v32 = vsel %vm4517_vm2, %v3135_v41, %v3136_v50  ;;  %v2794_v2 = vrot.slane %v2792_v57, 5  ;;  %v2802_v4 = vshrl.u32 %v3990_v51, 16  ;;  %v3801_v44 = vld [vmem:[%s4515_s20 + $0xa0] sm:$0xf] }
  0xe8   : > { %1389 = vrot.lane.b32.xlu1 %v4273_v39, %s4405_s21  ;;  %v1767_v5 = vsel %vm4567_vm5, %v1762_v58, %v1766_v47  ;;  %v4086_v7 = vcombine.low %v3134_v37, %v3137_v32  ;;  %v2800_v9 = vrot.slane %v2798_v61, 5  ;;  %v2808_v8 = vshll.u32 %v3991_v6, 16  ;;  %378 = vst.msk [vmem:[#allocation2 + $0xc0] sm:$0xff] %vm365_vm6, %v4291_v31  ;;  %v3802_v49 = vld [vmem:[%s4515_s20 + $0xa4] sm:$0x1] }
  0xe9   : > { %v2242_v13 = vpop.permute.xlu0 %2241  ;;  %v3823_v12 = vcombine.low %v1757_v56, %v1767_v5  ;;  %v2795_v15 = vor.u32 %v2794_v2, %v2791_v60  ;;  %v2804_v16 = vrot.slane %v2802_v4, 4  ;;  %v722_v17 = vshrl.u32 %v418_v48, 16  ;;  %v4029_v55 = vld [vmem:[%s4515_s20 + $0x3c] sm:$0xe]  ;;  %v3317_v56 = vld [vmem:[#allocation2 + $0x20] sm:$0xff] }
  0xea   : > { %2286 = vst.msk [vmem:[#allocation2 + $0x40] sm:$0xff] %vm2281_vm11, %v2242_v13  ;;  %v2420_v11 = vpop.permute.xlu1 %2419  ;;  %v2810_v20 = vrot.slane %v2808_v8, 5  ;;  %v725_v21 = vshll.u32 %v418_v48, 16  ;;  %v731_v22 = vshll.u32 %v419_v62, 16  ;;  %v735_v23 = vshrl.u32 %v419_v62, 16 }
  0xeb   : > { %2464 = vst.msk [vmem:[#allocation2 + $0x40] sm:$0xff] %vm2459_vm12, %v2420_v11  ;;  %1934 = vrot.lane.b32.xlu0 %v3823_v12, %s4409_s29  ;;  %v2796_v25 = vrot.slane %v2795_v15, 4  ;;  %v2805_v26 = vor.u32 %v2804_v16, %v2800_v9  ;;  %v724_v27 = vrot.slane %v722_v17, 4  ;;  %v741_v28 = vshll.u32 %v420_v10, 16  ;;  %v4030_v48 = vld [vmem:[%s4515_s20 + $0x40] sm:$0xf] }
  0xec   : > { %3295 = vst.msk [vmem:[#allocation2 + $0x28] sm:$0xff] %vm365_vm6, %v4086_v7  ;;  %2255 = vrot.lane.b32.xlu1 %v3903_v63, %s4408_s28  ;;  %v727_v33 = vrot.slane %v725_v21, 5  ;;  %v733_v34 = vrot.slane %v731_v22, 5  ;;  %v737_v35 = vrot.slane %v735_v23, 4  ;;  %v3696_v36 = vrot.slane %v966_v18, 9 }
  0xed   : > { %v2965_v30 = vpop.permute.xlu0 %2964  ;;  %v2801_v38 = vsel %vm4567_vm5, %v2796_v25, %v2800_v9  ;;  %v2806_v39 = vrot.slane %v2805_v26, 4  ;;  %v743_v40 = vrot.slane %v741_v28, 5  ;;  %v1115_v43 = vrot.slane %v967_v19, 5  ;;  %v4031_v63 = vld [vmem:[%s4515_s20 + $0x44] sm:$0x1] }
  0xee   : > { %3009 = vst.msk [vmem:[#allocation2 + $0x40] sm:$0xff] %vm3004_vm13, %v2965_v30  ;;  %v728_v45 = vor.u32 %v727_v33, %v724_v27  ;;  %v738_v46 = vor.u32 %v737_v35, %v733_v34  ;;  %v1118_v47 = vrot.slane %v968_v24, 5  ;;  %v1769_v50 = vshrl.u32 %v3800_v29, 16  ;;  %v3864_v5 = vld [vmem:[%s4515_s20 + $0x9c] sm:$0xe] }
  0xef   : > { %2433 = vrot.lane.b32.xlu0 %v4274_v14, %s4406_s24  ;;  %v2811_v42 = vsel %vm4567_vm5, %v2806_v39, %v2810_v20  ;;  %v5187_v52 = vsel %vm4517_vm2, %v3696_v36, %v1115_v43  ;;  %v1117_v53 = vrot.slane %v1115_v43, 4  ;;  %v1772_v54 = vshll.u32 %v3800_v29, 16  ;;  %v3865_v7 = vld [vmem:[%s4515_s20 + $0xa0] sm:$0xf]  ;;  %v3866_v14 = vld [vmem:[%s4515_s20 + $0xa4] sm:$0x1] }
  0xf0   : > { %v876_v51 = vpop.permute.xlu1 %875  ;;  %v4015_v37 = vcombine.low %v2801_v38, %v2811_v42  ;;  %v729_v41 = vrot.slane %v728_v45, 4  ;;  %v739_v6 = vrot.slane %v738_v46, 4  ;;  %v1771_v57 = vrot.slane %v1769_v50, 4  ;;  %v3992_v15 = vld [vmem:[%s4515_s20 + $0xa8] sm:$0xf]  ;;  %v4276_v20 = vld [vmem:[%s4515_s20 + $0x9c] sm:$0xff]  }
  0xf1   : > { %919 = vst.msk [vmem:[#allocation2 + $0x50] sm:$0xff] %vm913_vm7, %v876_v51  ;;  %v1200_v1 = vpop.permute.xlu0 %1199  ;;  %v1119_v59 = vsel %vm4517_vm2, %v1117_v53, %v1118_v47  ;;  %v1774_v60 = vrot.slane %v1772_v54, 5  ;;  %v1778_v61 = vshll.u32 %v3801_v44, 16  ;;  %v1782_v62 = vshrl.u32 %v3801_v44, 16  ;;  %v3993_v25 = vld [vmem:[%s4515_s20 + $0xac] sm:$0xf] }
  0xf2   : > { %1243 = vst.msk [vmem:[#allocation2 + $0x50] sm:$0xff] %vm1237_vm8, %v1200_v1  ;;  %v734_v32 = vsel %vm4567_vm5, %v729_v41, %v733_v34  ;;  %v744_v2 = vsel %vm4567_vm5, %v739_v6, %v743_v40  ;;  %v3712_v4 = vcombine.low %v5187_v52, %v1119_v59  ;;  %v1788_v13 = vshll.u32 %v3802_v49, 16  ;;  %2978 = vrot.lane.b32.xlu1 %v4015_v37, %s4411_s6  ;;  %v3994_v30 = vld [vmem:[%s4515_s20 + $0xb0] sm:$0x1]  ;;  %v421_v33 = vld [vmem:[%s4515_s20 + $0x9c] sm:$0xf] }
  0xf3   : > { %v3318_v58 = vld [vmem:[#allocation2 + $0x28] sm:$0xff]  ;;  %v3680_v8 = vcombine.low %v734_v32, %v744_v2  ;;  %v1775_v10 = vor.u32 %v1774_v60, %v1771_v57  ;;  %v1780_v11 = vrot.slane %v1778_v61, 5  ;;  %v1784_v12 = vrot.slane %v1782_v62, 4  ;;  %v422_v40 = vld [vmem:[%s4515_s20 + $0xa0] sm:$0xf] }
  0xf4   : > { %4106 = vmatprep.subr.msk.bf16.mxu0 %vm365_vm6, %v3318_v58  ;;  %4134 = vmatprep.subr.msk.bf16.mxu1 %vm365_vm6, %v3318_v58  ;;  %v1378_v9 = vpop.permute.xlu1 %1377  ;;  %v1790_v16 = vrot.slane %v1788_v13, 5  ;;  %v4071_v17 = vrot.slane %v4029_v55, 9  ;;  %v3140_v18 = vrot.slane %v4030_v48, 5  ;;  %v3143_v19 = vrot.slane %v4031_v63, 5  ;;  %v423_v42 = vld [vmem:[%s4515_s20 + $0xa4] sm:$0x1] }
  0xf5   : > { %3446 = vmatpush1.bf16.xpose.msra.mxu0 %v3317_v56  ;;  %4150 = vmatpush1.bf16.xpose.msra.mxu1 %v3317_v56  ;;  %1421 = vst.msk [vmem:[#allocation2 + $0x50] sm:$0xff] %vm1415_vm9, %v1378_v9  ;;  %v1776_v21 = vrot.slane %v1775_v10, 4  ;;  %v1785_v22 = vor.u32 %v1784_v12, %v1780_v11  ;;  %v3888_v23 = vrot.slane %v3864_v5, 9  ;;  %v2159_v24 = vrot.slane %v3865_v7, 5  ;;  %v4292_v53 = vld [vmem:[%s4515_s20 + $0x9c] sm:$0xff]   ;;  %v4277_v60 = vld [vmem:[%s4515_s20 + $0xa8] sm:$0xff]  }
  0xf6   : > { %889 = vrot.lane.b32.xlu0 %v3680_v8, %s4410_s5  ;;  %v3141_v27 = vsel %vm4517_vm2, %v4071_v17, %v3140_v18  ;;  %v3142_v28 = vrot.slane %v3140_v18, 4  ;;  %v2162_v29 = vrot.slane %v3866_v14, 5  ;;  %v2813_v31 = vshrl.u32 %v3992_v15, 16  ;;  %1213 = vrot.lane.b32.xlu1 %v3712_v4, %s4407_s27  ;;  %v969_v37 = vld [vmem:[%s4515_s20 + $0x9c] sm:$0xe]  ;;  %379 = vst.msk [vmem:[#allocation2 + $0xd0] sm:$0xff] %vm365_vm6, %v4292_v53 }
  0xf7   : > { %v1923_v26 = vpop.permute.xlu0 %1922  ;;  %v1781_v35 = vsel %vm4567_vm5, %v1776_v21, %v1780_v11  ;;  %v1786_v36 = vrot.slane %v1785_v22, 4  ;;  %v2160_v38 = vsel %vm4517_vm2, %v3888_v23, %v2159_v24  ;;  %v2161_v39 = vrot.slane %v2159_v24, 4  ;;  %v970_v59 = vld [vmem:[%s4515_s20 + $0xa0] sm:$0xf]  ;;  %v971_v2 = vld [vmem:[%s4515_s20 + $0xa4] sm:$0x1] }
  0xf8   : > { %1966 = vst.msk [vmem:[#allocation2 + $0x50] sm:$0xff] %vm1960_vm10, %v1923_v26  ;;  %v2244_v34 = vpop.permute.xlu1 %2243  ;;  %v3144_v43 = vsel %vm4517_vm2, %v3142_v28, %v3143_v19  ;;  %v2815_v44 = vrot.slane %v2813_v31, 4  ;;  %v2816_v45 = vshll.u32 %v3992_v15, 16  ;;  %v2822_v46 = vshll.u32 %v3993_v25, 16  ;;  %v3803_v9 = vld [vmem:[%s4515_s20 + $0xa8] sm:$0xf] }
  0xf9   : > { %2287 = vst.msk [vmem:[#allocation2 + $0x50] sm:$0xff] %vm2281_vm11, %v2244_v34  ;;  %v1791_v47 = vsel %vm4567_vm5, %v1786_v36, %v1790_v16  ;;  %v4087_v49 = vcombine.low %v3141_v27, %v3144_v43  ;;  %v2163_v50 = vsel %vm4517_vm2, %v2161_v39, %v2162_v29  ;;  %v2826_v51 = vshrl.u32 %v3993_v25, 16  ;;  %v3804_v14 = vld [vmem:[%s4515_s20 + $0xac] sm:$0xf]  ;;  %v3319_v16 = vld [vmem:[#allocation2 + $0x30] sm:$0xff] }
  0xfa   : > { %1391 = vrot.lane.b32.xlu0 %v4276_v20, %s4405_s21  ;;  %v3824_v54 = vcombine.low %v1781_v35, %v1791_v47  ;;  %v3904_v55 = vcombine.low %v2160_v38, %v2163_v50  ;;  %v2818_v1 = vrot.slane %v2816_v45, 5  ;;  %v2824_v56 = vrot.slane %v2822_v46, 5  ;;  %v3805_v21 = vld [vmem:[%s4515_s20 + $0xb0] sm:$0x1]  ;;  %v3867_v27 = vld [vmem:[%s4515_s20 + $0xa8] sm:$0xe] }
  0xfb   : > { %v2422_v52 = vpop.permute.xlu0 %2421  ;;  %3296 = vst.msk [vmem:[#allocation2 + $0x38] sm:$0xff] %vm365_vm6, %v4087_v49  ;;  %v2828_v6 = vrot.slane %v2826_v51, 4  ;;  %v2832_v57 = vshll.u32 %v3994_v30, 16  ;;  %v746_v48 = vshrl.u32 %v421_v33, 16  ;;  %v749_v58 = vshll.u32 %v421_v33, 16 }
  0xfc   : > { %2465 = vst.msk [vmem:[#allocation2 + $0x50] sm:$0xff] %vm2459_vm12, %v2422_v52  ;;  %v2967_v41 = vpop.permute.xlu1 %2966  ;;  %1936 = vrot.lane.b32.xlu1 %v3824_v54, %s4409_s29  ;;  %v2819_v61 = vor.u32 %v2818_v1, %v2815_v44  ;;  %v755_v62 = vshll.u32 %v422_v40, 16  ;;  %v759_v63 = vshrl.u32 %v422_v40, 16  ;;  %v765_v32 = vshll.u32 %v423_v42, 16  ;;  %v3868_v33 = vld [vmem:[%s4515_s20 + $0xac] sm:$0xf] }
  0xfd   : > { %3010 = vst.msk [vmem:[#allocation2 + $0x50] sm:$0xff] %vm3004_vm13, %v2967_v41  ;;  %v2829_v4 = vor.u32 %v2828_v6, %v2824_v56  ;;  %v2834_v13 = vrot.slane %v2832_v57, 5  ;;  %v748_v5 = vrot.slane %v746_v48, 4  ;;  %v751_v7 = vrot.slane %v749_v58, 5  ;;  %v3869_v40 = vld [vmem:[%s4515_s20 + $0xb0] sm:$0x1] }
  0xfe   : > { %2257 = vrot.lane.b32.xlu0 %v3904_v55, %s4408_s28  ;;  %v2820_v8 = vrot.slane %v2819_v61, 4  ;;  %v757_v10 = vrot.slane %v755_v62, 5  ;;  %v761_v11 = vrot.slane %v759_v63, 4  ;;  %v767_v12 = vrot.slane %v765_v32, 5  ;;  %v4032_v47 = vld [vmem:[%s4515_s20 + $0x48] sm:$0xe] }
  0xff   : > { %v2830_v17 = vrot.slane %v2829_v4, 4  ;;  %v752_v18 = vor.u32 %v751_v7, %v748_v5  ;;  %v3697_v19 = vrot.slane %v969_v37, 9  ;;  %v1122_v20 = vrot.slane %v970_v59, 5  ;;  %v4033_v49 = vld [vmem:[%s4515_s20 + $0x4c] sm:$0xf] }
 0x100   : > { %v1202_v15 = vpop.permute.xlu1 %1201  ;;  %2435 = vrot.lane.b32.xlu1 %v4277_v60, %s4406_s24  ;;  %v2825_v23 = vsel %vm4567_vm5, %v2820_v8, %v2824_v56  ;;  %v762_v24 = vor.u32 %v761_v11, %v757_v10  ;;  %v1125_v25 = vrot.slane %v971_v2, 5  ;;  %v1793_v26 = vshrl.u32 %v3803_v9, 16  ;;  %v4034_v54 = vld [vmem:[%s4515_s20 + $0x50] sm:$0x1]  ;;  %v3995_v55 = vld [vmem:[%s4515_s20 + $0xb4] sm:$0xf] }
 0x101   : > { %v878_v22 = vpop.permute.xlu0 %877  ;;  %v2835_v28 = vsel %vm4567_vm5, %v2830_v17, %v2834_v13  ;;  %v753_v29 = vrot.slane %v752_v18, 4  ;;  %v1123_v30 = vsel %vm4517_vm2, %v3697_v19, %v1122_v20  ;;  %v1124_v31 = vrot.slane %v1122_v20, 4  ;;  %v3996_v6 = vld [vmem:[%s4515_s20 + $0xb8] sm:$0xf]  ;;  %v4279_v61 = vld [vmem:[%s4515_s20 + $0xa8] sm:$0xff]  }
 0x102   : > { %920 = vst.msk [vmem:[#allocation2 + $0x60] sm:$0xff] %vm913_vm7, %v878_v22  ;;  %v3320_v34 = vld [vmem:[#allocation2 + $0x38] sm:$0xff]  ;;  %v4016_v35 = vcombine.low %v2825_v23, %v2835_v28  ;;  %v763_v36 = vrot.slane %v762_v24, 4  ;;  %v1795_v38 = vrot.slane %v1793_v26, 4  ;;  %v1796_v39 = vshll.u32 %v3803_v9, 16  ;;  %v4293_v28 = vld [vmem:[%s4515_s20 + $0xa8] sm:$0xff]  }
 0x103   : > { %1244 = vst.msk [vmem:[#allocation2 + $0x60] sm:$0xff] %vm1237_vm8, %v1202_v15  ;;  %4107 = vmatprep.subr.msk.bf16.mxu0 %vm365_vm6, %v3320_v34  ;;  %4135 = vmatprep.subr.msk.bf16.mxu1 %vm365_vm6, %v3320_v34  ;;  %v758_v43 = vsel %vm4567_vm5, %v753_v29, %v757_v10  ;;  %v1126_v44 = vsel %vm4517_vm2, %v1124_v31, %v1125_v25  ;;  %v1802_v45 = vshll.u32 %v3804_v14, 16  ;;  %v1806_v46 = vshrl.u32 %v3804_v14, 16  ;;  %v3997_v9 = vld [vmem:[%s4515_s20 + $0xbc] sm:$0x1] }
 0x104   : > { %3448 = vmatpush1.bf16.xpose.msra.mxu0 %v3319_v16  ;;  %4151 = vmatpush1.bf16.xpose.msra.mxu1 %v3319_v16  ;;  %v768_v51 = vsel %vm4567_vm5, %v763_v36, %v767_v12  ;;  %v3713_v42 = vcombine.low %v1123_v30, %v1126_v44  ;;  %v1798_v52 = vrot.slane %v1796_v39, 5  ;;  %v1812_v53 = vshll.u32 %v3805_v21, 16  ;;  %v424_v15 = vld [vmem:[%s4515_s20 + $0xa8] sm:$0xf]  ;;  %v425_v21 = vld [vmem:[%s4515_s20 + $0xac] sm:$0xf] }
 0x105   : > { %v1380_v50 = vpop.permute.xlu0 %1379  ;;  %2980 = vrot.lane.b32.xlu0 %v4016_v35, %s4411_s6  ;;  %v3681_v1 = vcombine.low %v758_v43, %v768_v51  ;;  %v1804_v56 = vrot.slane %v1802_v45, 5  ;;  %v1808_v37 = vrot.slane %v1806_v46, 4  ;;  %v3889_v41 = vrot.slane %v3867_v27, 9  ;;  %v426_v26 = vld [vmem:[%s4515_s20 + $0xb0] sm:$0x1]  ;;  %v4280_v35 = vld [vmem:[%s4515_s20 + $0xb4] sm:$0xff]  }
 0x106   : > { %1422 = vst.msk [vmem:[#allocation2 + $0x60] sm:$0xff] %vm1415_vm9, %v1380_v50  ;;  %v1799_v48 = vor.u32 %v1798_v52, %v1795_v38  ;;  %v1814_v58 = vrot.slane %v1812_v53, 5  ;;  %v2166_v59 = vrot.slane %v3868_v33, 5  ;;  %v2169_v60 = vrot.slane %v3869_v40, 5  ;;  %v972_v34 = vld [vmem:[%s4515_s20 + $0xa8] sm:$0xe] }
 0x107   : > { %v1925_v57 = vpop.permute.xlu1 %1924  ;;  %891 = vrot.lane.b32.xlu1 %v3681_v1, %s4410_s5  ;;  %v1809_v62 = vor.u32 %v1808_v37, %v1804_v56  ;;  %v4072_v63 = vrot.slane %v4032_v47, 9  ;;  %v3147_v32 = vrot.slane %v4033_v49, 5  ;;  %v3150_v2 = vrot.slane %v4034_v54, 5  ;;  %v973_v43 = vld [vmem:[%s4515_s20 + $0xac] sm:$0xf]  ;;  %380 = vst.msk [vmem:[#allocation2 + $0xe0] sm:$0xff] %vm365_vm6, %v4293_v28 }
 0x108   : > { %1967 = vst.msk [vmem:[#allocation2 + $0x60] sm:$0xff] %vm1960_vm10, %v1925_v57  ;;  %v1800_v13 = vrot.slane %v1799_v48, 4  ;;  %v2167_v5 = vsel %vm4517_vm2, %v3889_v41, %v2166_v59  ;;  %v2168_v7 = vrot.slane %v2166_v59, 4  ;;  %v2837_v8 = vshrl.u32 %v3995_v55, 16  ;;  %v974_v49 = vld [vmem:[%s4515_s20 + $0xb0] sm:$0x1] }
 0x109   : > { %v2246_v4 = vpop.permute.xlu0 %2245  ;;  %1215 = vrot.lane.b32.xlu0 %v3713_v42, %s4407_s27  ;;  %v1810_v10 = vrot.slane %v1809_v62, 4  ;;  %v3148_v11 = vsel %vm4517_vm2, %v4072_v63, %v3147_v32  ;;  %v3149_v12 = vrot.slane %v3147_v32, 4  ;;  %v2840_v14 = vshll.u32 %v3995_v55, 16  ;;  %v3806_v53 = vld [vmem:[%s4515_s20 + $0xb4] sm:$0xf] }
 0x10a   : > { %2288 = vst.msk [vmem:[#allocation2 + $0x60] sm:$0xff] %vm2281_vm11, %v2246_v4  ;;  %v1805_v17 = vsel %vm4567_vm5, %v1800_v13, %v1804_v56  ;;  %v2170_v18 = vsel %vm4517_vm2, %v2168_v7, %v2169_v60  ;;  %v2839_v19 = vrot.slane %v2837_v8, 4  ;;  %v2846_v20 = vshll.u32 %v3996_v6, 16  ;;  %v3807_v59 = vld [vmem:[%s4515_s20 + $0xb8] sm:$0xf] }
 0x10b   : > { %v2424_v16 = vpop.permute.xlu1 %2423  ;;  %1393 = vrot.lane.b32.xlu1 %v4279_v61, %s4405_s21  ;;  %v1815_v22 = vsel %vm4567_vm5, %v1810_v10, %v1814_v58  ;;  %v3905_v23 = vcombine.low %v2167_v5, %v2170_v18  ;;  %v3151_v24 = vsel %vm4517_vm2, %v3149_v12, %v3150_v2  ;;  %v2842_v25 = vrot.slane %v2840_v14, 5  ;;  %v3808_v63 = vld [vmem:[%s4515_s20 + $0xbc] sm:$0x1]  ;;  %v4035_v2 = vld [vmem:[%s4515_s20 + $0x54] sm:$0xe] }
 0x10c   : > { %2466 = vst.msk [vmem:[#allocation2 + $0x60] sm:$0xff] %vm2459_vm12, %v2424_v16  ;;  %v3825_v29 = vcombine.low %v1805_v17, %v1815_v22  ;;  %v4088_v30 = vcombine.low %v3148_v11, %v3151_v24  ;;  %v2848_v31 = vrot.slane %v2846_v20, 5  ;;  %v2850_v33 = vshrl.u32 %v3996_v6, 16  ;;  %v5321_v8 = vld [vmem:[%s4515_s20 + $0x5c] sm:$0x1]  ;;  %v3321_v11 = vld [vmem:[#allocation2 + $0x40] sm:$0xff] }
 0x10d   : > { %v2969_v27 = vpop.permute.xlu0 %2968  ;;  %v2843_v36 = vor.u32 %v2842_v25, %v2839_v19  ;;  %v2856_v38 = vshll.u32 %v3997_v9, 16  ;;  %v770_v39 = vshrl.u32 %v424_v15, 16  ;;  %v773_v40 = vshll.u32 %v424_v15, 16  ;;  %v4036_v9 = vld [vmem:[%s4515_s20 + $0x58] sm:$0xf] }
 0x10e   : > { %3011 = vst.msk [vmem:[#allocation2 + $0x60] sm:$0xff] %vm3004_vm13, %v2969_v27  ;;  %1938 = vrot.lane.b32.xlu0 %v3825_v29, %s4409_s29  ;;  %v2852_v44 = vrot.slane %v2850_v33, 4  ;;  %v779_v45 = vshll.u32 %v425_v21, 16  ;;  %v783_v46 = vshrl.u32 %v425_v21, 16  ;;  %v789_v47 = vshll.u32 %v426_v26, 16 }
 0x10f   : > { %3297 = vst.msk [vmem:[#allocation2 + $0x48] sm:$0xff] %vm365_vm6, %v4088_v30  ;;  %2259 = vrot.lane.b32.xlu1 %v3905_v23, %s4408_s28  ;;  %v2844_v50 = vrot.slane %v2843_v36, 4  ;;  %v2858_v51 = vrot.slane %v2856_v38, 5  ;;  %v772_v42 = vrot.slane %v770_v39, 4  ;;  %v775_v52 = vrot.slane %v773_v40, 5 }
 0x110   : > { %v2853_v1 = vor.u32 %v2852_v44, %v2848_v31  ;;  %v781_v56 = vrot.slane %v779_v45, 5  ;;  %v785_v37 = vrot.slane %v783_v46, 4  ;;  %v791_v41 = vrot.slane %v789_v47, 5  ;;  %v3870_v17 = vld [vmem:[%s4515_s20 + $0xb4] sm:$0xe] }
 0x111   : > { %v880_v54 = vpop.permute.xlu1 %879  ;;  %v1204_v55 = vpop.permute.xlu0 %1203  ;;  %v2849_v6 = vsel %vm4567_vm5, %v2844_v50, %v2848_v31  ;;  %v776_v57 = vor.u32 %v775_v52, %v772_v42  ;;  %v3698_v48 = vrot.slane %v972_v34, 9  ;;  %v1129_v58 = vrot.slane %v973_v43, 5  ;;  %v3871_v23 = vld [vmem:[%s4515_s20 + $0xb8] sm:$0xf]  ;;  %v3872_v24 = vld [vmem:[%s4515_s20 + $0xbc] sm:$0x1] }
 0x112   : > { %921 = vst.msk [vmem:[#allocation2 + $0x70] sm:$0xff] %vm913_vm7, %v880_v54  ;;  %2437 = vrot.lane.b32.xlu0 %v4280_v35, %s4406_s24  ;;  %v2854_v60 = vrot.slane %v2853_v1, 4  ;;  %v786_v61 = vor.u32 %v785_v37, %v781_v56  ;;  %v1132_v62 = vrot.slane %v974_v49, 5  ;;  %v1817_v32 = vshrl.u32 %v3806_v53, 16  ;;  %v4282_v31 = vld [vmem:[%s4515_s20 + $0xb4] sm:$0xff]  }
 0x113   : > { %1245 = vst.msk [vmem:[#allocation2 + $0x70] sm:$0xff] %vm1237_vm8, %v1204_v55  ;;  %v777_v4 = vrot.slane %v776_v57, 4  ;;  %v5317_v13 = vsel %vm4517_vm2, %v3698_v48, %v1129_v58  ;;  %v1131_v5 = vrot.slane %v1129_v58, 4  ;;  %v1820_v7 = vshll.u32 %v3806_v53, 16  ;;  %v3998_v36 = vld [vmem:[%s4515_s20 + $0xc0] sm:$0xf] }
 0x114   : > { %v2859_v12 = vsel %vm4567_vm5, %v2854_v60, %v2858_v51  ;;  %v787_v14 = vrot.slane %v786_v61, 4  ;;  %v1819_v15 = vrot.slane %v1817_v32, 4  ;;  %v1826_v16 = vshll.u32 %v3807_v59, 16  ;;  %v3999_v45 = vld [vmem:[%s4515_s20 + $0xc4] sm:$0xf] }
 0x115   : > { %v1382_v10 = vpop.permute.xlu1 %1381  ;;  %v4017_v19 = vcombine.low %v2849_v6, %v2859_v12  ;;  %v782_v20 = vsel %vm4567_vm5, %v777_v4, %v781_v56  ;;  %v1133_v21 = vsel %vm4517_vm2, %v1131_v5, %v1132_v62  ;;  %v1822_v22 = vrot.slane %v1820_v7, 5  ;;  %v4000_v53 = vld [vmem:[%s4515_s20 + $0xc8] sm:$0x1]  ;;  %v427_v6 = vld [vmem:[%s4515_s20 + $0xb4] sm:$0xf]  ;;  %v4283_v12 = vld [vmem:[%s4515_s20 + $0xc0] sm:$0xff]  }
 0x116   : > { %1423 = vst.msk [vmem:[#allocation2 + $0x70] sm:$0xff] %vm1415_vm9, %v1382_v10  ;;  %v3322_v18 = vld [vmem:[#allocation2 + $0x48] sm:$0xff]  ;;  %v792_v25 = vsel %vm4567_vm5, %v787_v14, %v791_v41  ;;  %v3714_v26 = vcombine.low %v5317_v13, %v1133_v21  ;;  %v1828_v27 = vrot.slane %v1826_v16, 5  ;;  %v1830_v28 = vshrl.u32 %v3807_v59, 16  ;;  %v428_v57 = vld [vmem:[%s4515_s20 + $0xb8] sm:$0xf] }
 0x117   : > { %4108 = vmatprep.subr.msk.bf16.mxu0 %vm365_vm6, %v3322_v18  ;;  %4136 = vmatprep.subr.msk.bf16.mxu1 %vm365_vm6, %v3322_v18  ;;  %v3682_v30 = vcombine.low %v782_v20, %v792_v25  ;;  %v1823_v33 = vor.u32 %v1822_v22, %v1819_v15  ;;  %v1836_v34 = vshll.u32 %v3808_v63, 16  ;;  %v4073_v35 = vrot.slane %v4035_v2, 9  ;;  %v429_v4 = vld [vmem:[%s4515_s20 + $0xbc] sm:$0x1]  ;;  %v976_v10 = vld [vmem:[%s4515_s20 + $0xb8] sm:$0xf] }
 0x118   : > { %v1927_v29 = vpop.permute.xlu0 %1926  ;;  %3450 = vmatpush1.bf16.xpose.msra.mxu0 %v3321_v11  ;;  %4152 = vmatpush1.bf16.xpose.msra.mxu1 %v3321_v11  ;;  %v1832_v39 = vrot.slane %v1830_v28, 4  ;;  %v3154_v40 = vrot.slane %v4036_v9, 5  ;;  %v3157_v43 = vrot.slane %v5321_v8, 5  ;;  %v3890_v44 = vrot.slane %v3870_v17, 9  ;;  %v975_v8 = vld [vmem:[%s4515_s20 + $0xb4] sm:$0xe] }
 0x119   : > { %1968 = vst.msk [vmem:[#allocation2 + $0x70] sm:$0xff] %vm1960_vm10, %v1927_v29  ;;  %v2248_v38 = vpop.permute.xlu1 %2247  ;;  %2982 = vrot.lane.b32.xlu1 %v4017_v19, %s4411_s6  ;;  %893 = vrot.lane.b32.xlu0 %v3682_v30, %s4410_s5  ;;  %v1824_v46 = vrot.slane %v1823_v33, 4  ;;  %v1838_v47 = vrot.slane %v1836_v34, 5  ;;  %v2173_v49 = vrot.slane %v3871_v23, 5  ;;  %v2176_v50 = vrot.slane %v3872_v24, 5  ;;  %v4294_v29 = vld [vmem:[%s4515_s20 + $0xb4] sm:$0xff]  }
 0x11a   : > { %2289 = vst.msk [vmem:[#allocation2 + $0x70] sm:$0xff] %vm2281_vm11, %v2248_v38  ;;  %v1833_v51 = vor.u32 %v1832_v39, %v1828_v27  ;;  %v3155_v42 = vsel %vm4517_vm2, %v4073_v35, %v3154_v40  ;;  %v3156_v52 = vrot.slane %v3154_v40, 4  ;;  %v2861_v54 = vshrl.u32 %v3998_v36, 16  ;;  %v977_v22 = vld [vmem:[%s4515_s20 + $0xbc] sm:$0x1] }
 0x11b   : > { %v1829_v1 = vsel %vm4567_vm5, %v1824_v46, %v1828_v27  ;;  %v2174_v56 = vsel %vm4517_vm2, %v3890_v44, %v2173_v49  ;;  %v2175_v37 = vrot.slane %v2173_v49, 4  ;;  %v2864_v41 = vshll.u32 %v3998_v36, 16  ;;  %v3809_v28 = vld [vmem:[%s4515_s20 + $0xc0] sm:$0xf]  ;;  %v3810_v35 = vld [vmem:[%s4515_s20 + $0xc4] sm:$0xf] }
 0x11c   : > { %v2426_v55 = vpop.permute.xlu0 %2425  ;;  %v1834_v58 = vrot.slane %v1833_v51, 4  ;;  %v3158_v59 = vsel %vm4517_vm2, %v3156_v52, %v3157_v43  ;;  %v2863_v60 = vrot.slane %v2861_v54, 4  ;;  %v2870_v61 = vshll.u32 %v3999_v45, 16  ;;  %v3323_v36 = vld [vmem:[#allocation2 + $0x50] sm:$0xff]  ;;  %381 = vst.msk [vmem:[#allocation2 + $0xf0] sm:$0xff] %vm365_vm6, %v4294_v29 }
 0x11d   : > { %2467 = vst.msk [vmem:[#allocation2 + $0x70] sm:$0xff] %vm2459_vm12, %v2426_v55  ;;  %v2971_v48 = vpop.permute.xlu1 %2970  ;;  %1217 = vrot.lane.b32.xlu1 %v3714_v26, %s4407_s27  ;;  %1395 = vrot.lane.b32.xlu0 %v4282_v31, %s4405_s21  ;;  %v4089_v62 = vcombine.low %v3155_v42, %v3158_v59  ;;  %v2177_v63 = vsel %vm4517_vm2, %v2175_v37, %v2176_v50  ;;  %v2866_v32 = vrot.slane %v2864_v41, 5  ;;  %v2874_v2 = vshrl.u32 %v3999_v45, 16  ;;  %v3873_v54 = vld [vmem:[%s4515_s20 + $0xc0] sm:$0xe] }
 0x11e   : > { %3012 = vst.msk [vmem:[#allocation2 + $0x70] sm:$0xff] %vm3004_vm13, %v2971_v48  ;;  %v1839_v13 = vsel %vm4567_vm5, %v1834_v58, %v1838_v47  ;;  %v3906_v5 = vcombine.low %v2174_v56, %v2177_v63  ;;  %v2872_v7 = vrot.slane %v2870_v61, 5  ;;  %v2880_v9 = vshll.u32 %v4000_v53, 16  ;;  %v3811_v47 = vld [vmem:[%s4515_s20 + $0xc8] sm:$0x1] }
 0x11f   : > { %v3826_v11 = vcombine.low %v1829_v1, %v1839_v13  ;;  %3298 = vst.msk [vmem:[#allocation2 + $0x58] sm:$0xff] %vm365_vm6, %v4089_v62  ;;  %v2867_v14 = vor.u32 %v2866_v32, %v2863_v60  ;;  %v2876_v15 = vrot.slane %v2874_v2, 4  ;;  %v794_v16 = vshrl.u32 %v427_v6, 16  ;;  %v3874_v55 = vld [vmem:[%s4515_s20 + $0xc4] sm:$0xf] }
 0x120   : > { %v2882_v18 = vrot.slane %v2880_v9, 5  ;;  %v797_v19 = vshll.u32 %v427_v6, 16  ;;  %v803_v20 = vshll.u32 %v428_v57, 16  ;;  %v807_v21 = vshrl.u32 %v428_v57, 16  ;;  %v3875_v1 = vld [vmem:[%s4515_s20 + $0xc8] sm:$0x1] }
 0x121   : > { %v1206_v17 = vpop.permute.xlu1 %1205  ;;  %1940 = vrot.lane.b32.xlu1 %v3826_v11, %s4409_s29  ;;  %2261 = vrot.lane.b32.xlu0 %v3906_v5, %s4408_s28  ;;  %v2868_v24 = vrot.slane %v2867_v14, 4  ;;  %v2877_v25 = vor.u32 %v2876_v15, %v2872_v7  ;;  %v796_v26 = vrot.slane %v794_v16, 4  ;;  %v813_v27 = vshll.u32 %v429_v4, 16  ;;  %v4038_v58 = vld [vmem:[%s4515_s20 + $0x60] sm:$0xe] }
 0x122   : > { %v882_v23 = vpop.permute.xlu0 %881  ;;  %v799_v30 = vrot.slane %v797_v19, 5  ;;  %v805_v31 = vrot.slane %v803_v20, 5  ;;  %v809_v33 = vrot.slane %v807_v21, 4  ;;  %v3699_v34 = vrot.slane %v975_v8, 9  ;;  %v4039_v13 = vld [vmem:[%s4515_s20 + $0x64] sm:$0xf] }
 0x123   : > { %922 = vst.msk [vmem:[#allocation2 + $0x80] sm:$0xff] %vm913_vm7, %v882_v23  ;;  %v2873_v38 = vsel %vm4567_vm5, %v2868_v24, %v2872_v7  ;;  %v2878_v39 = vrot.slane %v2877_v25, 4  ;;  %v815_v40 = vrot.slane %v813_v27, 5  ;;  %v1136_v43 = vrot.slane %v976_v10, 5  ;;  %v4040_v5 = vld [vmem:[%s4515_s20 + $0x68] sm:$0x1] }
 0x124   : > { %1246 = vst.msk [vmem:[#allocation2 + $0x80] sm:$0xff] %vm1237_vm8, %v1206_v17  ;;  %v800_v44 = vor.u32 %v799_v30, %v796_v26  ;;  %v810_v45 = vor.u32 %v809_v33, %v805_v31  ;;  %v1139_v46 = vrot.slane %v977_v22, 5  ;;  %v1841_v49 = vshrl.u32 %v3809_v28, 16  ;;  %v4285_v19 = vld [vmem:[%s4515_s20 + $0xc0] sm:$0xff]   ;;  %v4002_v24 = vld [vmem:[%s4515_s20 + $0xd0] sm:$0xf] }
 0x125   : > { %2439 = vrot.lane.b32.xlu1 %v4283_v12, %s4406_s24  ;;  %v2883_v51 = vsel %vm4567_vm5, %v2878_v39, %v2882_v18  ;;  %v1137_v42 = vsel %vm4517_vm2, %v3699_v34, %v1136_v43  ;;  %v1138_v52 = vrot.slane %v1136_v43, 4  ;;  %v1844_v53 = vshll.u32 %v3809_v28, 16  ;;  %v4001_v12 = vld [vmem:[%s4515_s20 + $0xcc] sm:$0xf]  ;;  %v4003_v28 = vld [vmem:[%s4515_s20 + $0xd4] sm:$0x1] }
 0x126   : > { %v1384_v50 = vpop.permute.xlu0 %1383  ;;  %v3324_v37 = vld [vmem:[#allocation2 + $0x58] sm:$0xff]  ;;  %v4018_v41 = vcombine.low %v2873_v38, %v2883_v51  ;;  %v801_v6 = vrot.slane %v800_v44, 4  ;;  %v811_v57 = vrot.slane %v810_v45, 4  ;;  %v1843_v48 = vrot.slane %v1841_v49, 4  ;;  %v4041_v30 = vld [vmem:[%s4515_s20 + $0x6c] sm:$0xe] }
 0x127   : > { %1424 = vst.msk [vmem:[#allocation2 + $0x80] sm:$0xff] %vm1415_vm9, %v1384_v50  ;;  %v1929_v56 = vpop.permute.xlu1 %1928  ;;  %4109 = vmatprep.subr.msk.bf16.mxu0 %vm365_vm6, %v3324_v37  ;;  %4137 = vmatprep.subr.msk.bf16.mxu1 %vm365_vm6, %v3324_v37  ;;  %v1140_v59 = vsel %vm4517_vm2, %v1138_v52, %v1139_v46  ;;  %v1846_v60 = vrot.slane %v1844_v53, 5  ;;  %v1850_v61 = vshll.u32 %v3810_v35, 16  ;;  %v1854_v62 = vshrl.u32 %v3810_v35, 16  ;;  %v4043_v39 = vld [vmem:[%s4515_s20 + $0x74] sm:$0x1] }
 0x128   : > { %1969 = vst.msk [vmem:[#allocation2 + $0x80] sm:$0xff] %vm1960_vm10, %v1929_v56  ;;  %3452 = vmatpush1.bf16.xpose.msra.mxu0 %v3323_v36  ;;  %4153 = vmatpush1.bf16.xpose.msra.mxu1 %v3323_v36  ;;  %v806_v63 = vsel %vm4567_vm5, %v801_v6, %v805_v31  ;;  %v816_v32 = vsel %vm4567_vm5, %v811_v57, %v815_v40  ;;  %v1860_v4 = vshll.u32 %v3811_v47, 16  ;;  %v3891_v16 = vrot.slane %v3873_v54, 9  ;;  %v4042_v31 = vld [vmem:[%s4515_s20 + $0x70] sm:$0xf] }
 0x129   : > { %v3715_v2 = vcombine.low %v1137_v42, %v1140_v59  ;;  %2984 = vrot.lane.b32.xlu0 %v4018_v41, %s4411_s6  ;;  %v3683_v9 = vcombine.low %v806_v63, %v816_v32  ;;  %v1847_v8 = vor.u32 %v1846_v60, %v1843_v48  ;;  %v1852_v10 = vrot.slane %v1850_v61, 5  ;;  %v4044_v42 = vld [vmem:[%s4515_s20 + $0x78] sm:$0xe]  ;;  %v4045_v52 = vld [vmem:[%s4515_s20 + $0x7c] sm:$0xf]  ;;  %v4286_v60 = vld [vmem:[%s4515_s20 + $0xcc] sm:$0xff]  }
 0x12a   : > { %v2250_v7 = vpop.permute.xlu0 %2249  ;;  %v1856_v11 = vrot.slane %v1854_v62, 4  ;;  %v1862_v15 = vrot.slane %v1860_v4, 5  ;;  %v2180_v17 = vrot.slane %v3874_v55, 5  ;;  %v2183_v18 = vrot.slane %v3875_v1, 5  ;;  %v4046_v37 = vld [vmem:[%s4515_s20 + $0x80] sm:$0x1] }
 0x12b   : > { %2290 = vst.msk [vmem:[#allocation2 + $0x80] sm:$0xff] %vm2281_vm11, %v2250_v7  ;;  %v2428_v14 = vpop.permute.xlu1 %2427  ;;  %895 = vrot.lane.b32.xlu1 %v3683_v9, %s4410_s5  ;;  %v1848_v20 = vrot.slane %v1847_v8, 4  ;;  %v4074_v22 = vrot.slane %v4038_v58, 9  ;;  %v3161_v23 = vrot.slane %v4039_v13, 5  ;;  %v3164_v27 = vrot.slane %v4040_v5, 5 }
 0x12c   : > { %2468 = vst.msk [vmem:[#allocation2 + $0x80] sm:$0xff] %vm2459_vm12, %v2428_v14  ;;  %v1857_v21 = vor.u32 %v1856_v11, %v1852_v10  ;;  %v2181_v25 = vsel %vm4517_vm2, %v3891_v16, %v2180_v17  ;;  %v2182_v26 = vrot.slane %v2180_v17, 4  ;;  %v2885_v29 = vshrl.u32 %v4001_v12, 16  ;;  %v4047_v41 = vld [vmem:[%s4515_s20 + $0x84] sm:$0xe] }
 0x12d   : > { %1219 = vrot.lane.b32.xlu0 %v3715_v2, %s4407_s27  ;;  %v1853_v34 = vsel %vm4567_vm5, %v1848_v20, %v1852_v10  ;;  %v3162_v36 = vsel %vm4517_vm2, %v4074_v22, %v3161_v23  ;;  %v3163_v38 = vrot.slane %v3161_v23, 4  ;;  %v2888_v44 = vshll.u32 %v4001_v12, 16  ;;  %v4048_v59 = vld [vmem:[%s4515_s20 + $0x88] sm:$0xf]  ;;  %v4049_v2 = vld [vmem:[%s4515_s20 + $0x8c] sm:$0x1] }
 0x12e   : > { %v2973_v33 = vpop.permute.xlu0 %2972  ;;  %v1858_v35 = vrot.slane %v1857_v21, 4  ;;  %v2184_v40 = vsel %vm4517_vm2, %v2182_v26, %v2183_v18  ;;  %v2887_v43 = vrot.slane %v2885_v29, 4  ;;  %v2894_v45 = vshll.u32 %v4002_v24, 16  ;;  %v4050_v8 = vld [vmem:[%s4515_s20 + $0x90] sm:$0xe]  ;;  %s4125_s27 = sshll.u32 %s4387_s15, 1 }
 0x12f   : > { %3013 = vst.msk [vmem:[#allocation2 + $0x80] sm:$0xff] %vm3004_vm13, %v2973_v33  ;;  %1397 = vrot.lane.b32.xlu1 %v4285_v19, %s4405_s21  ;;  %v3907_v47 = vcombine.low %v2181_v25, %v2184_v40  ;;  %v3165_v49 = vsel %vm4517_vm2, %v3163_v38, %v3164_v27  ;;  %v2898_v50 = vshrl.u32 %v4002_v24, 16  ;;  %v2890_v55 = vrot.slane %v2888_v44, 5  ;;  %v4051_v10 = vld [vmem:[%s4515_s20 + $0x94] sm:$0xf]  ;;  %v3325_v40 = vld [vmem:[#allocation2 + $0x60] sm:$0xff]  ;;  %s5537_s21 = scalar_lea.vmem %s5683_s2, %s4130_s7 }
 0x130   : > { %v1863_v46 = vsel %vm4567_vm5, %v1858_v35, %v1862_v15  ;;  %v4090_v54 = vcombine.low %v3162_v36, %v3165_v49  ;;  %v2896_v1 = vrot.slane %v2894_v45, 5  ;;  %v2904_v57 = vshll.u32 %v4003_v28, 16  ;;  %v5446_v11 = vld [vmem:[%s4515_s20 + $0x98] sm:$0x1]  ;;  %v4053_v17 = vld [vmem:[%s4515_s20 + $0x9c] sm:$0xe] }
 0x131   : > { %v884_v51 = vpop.permute.xlu1 %883  ;;  %v3827_v53 = vcombine.low %v1853_v34, %v1863_v46  ;;  %v2900_v6 = vrot.slane %v2898_v50, 4  ;;  %v4075_v48 = vrot.slane %v4041_v30, 9  ;;  %v3168_v58 = vrot.slane %v4042_v31, 5  ;;  %v4054_v18 = vld [vmem:[%s4515_s20 + $0xa0] sm:$0xf]  ;;  %s3519_s15 = scalar_lea.sflag [#allocation4], %s215_s4 }
 0x132   : > { %923 = vst.msk [vmem:[#allocation2 + $0x90] sm:$0xff] %vm913_vm7, %v884_v51  ;;  %v1208_v56 = vpop.permute.xlu0 %1207  ;;  %v2891_v61 = vor.u32 %v2890_v55, %v2887_v43  ;;  %v3171_v62 = vrot.slane %v4043_v39, 5  ;;  %v4076_v63 = vrot.slane %v4044_v42, 9  ;;  %v3175_v32 = vrot.slane %v4045_v52, 5  ;;  %v5454_v19 = vld [vmem:[%s4515_s20 + $0xa4] sm:$0x1] }
 0x133   : > { %1247 = vst.msk [vmem:[#allocation2 + $0x90] sm:$0xff] %vm1237_vm8, %v1208_v56  ;;  %1942 = vrot.lane.b32.xlu0 %v3827_v53, %s4409_s29  ;;  %2263 = vrot.lane.b32.xlu1 %v3907_v47, %s4408_s28  ;;  %v2901_v4 = vor.u32 %v2900_v6, %v2896_v1  ;;  %v2906_v13 = vrot.slane %v2904_v57, 5  ;;  %v3169_v5 = vsel %vm4517_vm2, %v4075_v48, %v3168_v58  ;;  %v3170_v7 = vrot.slane %v3168_v58, 4  ;;  %v5459_v24 = vld [vmem:[%s4515_s20 + $0xa8] sm:$0xe]  ;;  %s4126_s28 = sshll.u32 %s4391_s16, 2 }
 0x134   : > { %3299 = vst.msk [vmem:[#allocation2 + $0x68] sm:$0xff] %vm365_vm6, %v4090_v54  ;;  %v2892_v12 = vrot.slane %v2891_v61, 4  ;;  %v3176_v14 = vsel %vm4517_vm2, %v4076_v63, %v3175_v32  ;;  %v3177_v15 = vrot.slane %v3175_v32, 4  ;;  %v3178_v16 = vrot.slane %v4046_v37, 5  ;;  %v4057_v29 = vld [vmem:[%s4515_s20 + $0xac] sm:$0xf]  ;;  %s3531_s29 = sadd.s32 %s4126_s28, %s4125_s27 }
 0x135   : > { %v1386_v9 = vpop.permute.xlu1 %1385  ;;  %v2902_v20 = vrot.slane %v2901_v4, 4  ;;  %v3172_v21 = vsel %vm4517_vm2, %v3170_v7, %v3171_v62  ;;  %v4077_v22 = vrot.slane %v4047_v41, 9  ;;  %v3182_v23 = vrot.slane %v4048_v59, 5  ;;  %v5468_v30 = vld [vmem:[%s4515_s20 + $0xb0] sm:$0x1]  ;;  %s4127_s5 = sshll.u32 %s3531_s29, 7 }
 0x136   : > { %1425 = vst.msk [vmem:[#allocation2 + $0x90] sm:$0xff] %vm1415_vm9, %v1386_v9  ;;  %v2897_v25 = vsel %vm4567_vm5, %v2892_v12, %v2896_v1  ;;  %v4091_v26 = vcombine.low %v3169_v5, %v3172_v21  ;;  %v3179_v27 = vsel %vm4517_vm2, %v3177_v15, %v3178_v16  ;;  %v3185_v28 = vrot.slane %v4049_v2, 5  ;;  %v4059_v38 = vld [vmem:[%s4515_s20 + $0xb4] sm:$0xe]  ;;  %v4060_v39 = vld [vmem:[%s4515_s20 + $0xb8] sm:$0xf] }
 0x137   : > { %2441 = vrot.lane.b32.xlu0 %v4286_v60, %s4406_s24  ;;  %v2907_v31 = vsel %vm4567_vm5, %v2902_v20, %v2906_v13  ;;  %v4092_v33 = vcombine.low %v3176_v14, %v3179_v27  ;;  %v3183_v35 = vsel %vm4517_vm2, %v4077_v22, %v3182_v23  ;;  %v3184_v36 = vrot.slane %v3182_v23, 4  ;;  %v5480_v46 = vld [vmem:[%s4515_s20 + $0xbc] sm:$0x1]  ;;  %v4062_v53 = vld [vmem:[%s4515_s20 + $0xc0] sm:$0xe]  ;;  %v3327_v22 = vld [vmem:[#allocation2 + $0x70] sm:$0xff] }
 0x138   : > { %v4019_v43 = vcombine.low %v2897_v25, %v2907_v31  ;;  %3300 = vst.msk [vmem:[#allocation2 + $0x78] sm:$0xff] %vm365_vm6, %v4091_v26  ;;  %v4078_v44 = vrot.slane %v4050_v8, 9  ;;  %v3189_v45 = vrot.slane %v4051_v10, 5  ;;  %v3192_v3 = vrot.slane %v5446_v11, 5  ;;  %v4063_v37 = vld [vmem:[%s4515_s20 + $0xc4] sm:$0xf] }
 0x139   : > { %v2252_v34 = vpop.permute.xlu1 %2251  ;;  %v1931_v49 = vpop.permute.xlu0 %1930  ;;  %3301 = vst.msk [vmem:[#allocation2 + $0x88] sm:$0xff] %vm365_vm6, %v4092_v33  ;;  %v3186_v50 = vsel %vm4517_vm2, %v3184_v36, %v3185_v28  ;;  %v4079_v51 = vrot.slane %v4053_v17, 9  ;;  %v3196_v42 = vrot.slane %v4054_v18, 5  ;;  %v3199_v52 = vrot.slane %v5454_v19, 5  ;;  %v5502_v41 = vld [vmem:[%s4515_s20 + $0xc8] sm:$0x1] }
 0x13a   : > { %1970 = vst.msk [vmem:[#allocation2 + $0x90] sm:$0xff] %vm1960_vm10, %v1931_v49  ;;  %v4093_v54 = vcombine.low %v3183_v35, %v3186_v50  ;;  %v3190_v55 = vsel %vm4517_vm2, %v4078_v44, %v3189_v45  ;;  %v3191_v1 = vrot.slane %v3189_v45, 4  ;;  %v4080_v56 = vrot.slane %v5459_v24, 9  ;;  %v4065_v6 = vld [vmem:[%s4515_s20 + $0xcc] sm:$0xe]  ;;  %2986 = vrot.lane.b32.xlu1 %v4019_v43, %s4411_s6  ;;  %v3345_v36 = vld [vmem:[%s5537_s21] sm:$0xff] }
 0x13b   : > { %v3326_v47 = vld [vmem:[#allocation2 + $0x68] sm:$0xff]  ;;  %2291 = vst.msk [vmem:[#allocation2 + $0x90] sm:$0xff] %vm2281_vm11, %v2252_v34  ;;  %v3197_v48 = vsel %vm4517_vm2, %v4079_v51, %v3196_v42  ;;  %v3198_v58 = vrot.slane %v3196_v42, 4  ;;  %v3203_v59 = vrot.slane %v4057_v29, 5  ;;  %v3206_v60 = vrot.slane %v5468_v30, 5  ;;  %s3646_s24 = sshll.u32 %s215_s4, 4 }
 0x13c   : > { %4110 = vmatprep.subr.msk.bf16.mxu0 %vm365_vm6, %v3326_v47  ;;  %4138 = vmatprep.subr.msk.bf16.mxu1 %vm365_vm6, %v3326_v47  ;;  %v4297_v57 = vld [vmem:[%s5487_s10 + $0x4] ss:$8 sps:$4 sm:$0xff]   ;;  %3302 = vst.msk [vmem:[#allocation2 + $0x98] sm:$0xff] %vm365_vm6, %v4093_v54  ;;  %v3193_v61 = vsel %vm4517_vm2, %v3191_v1, %v3192_v3  ;;  %v4081_v62 = vrot.slane %v4059_v38, 9  ;;  %v3210_v63 = vrot.slane %v4060_v39, 5  ;;  %v3213_v32 = vrot.slane %v5480_v46, 5 }
 0x13d   : > { %3454 = vmatpush1.bf16.xpose.msra.mxu0 %v3325_v40  ;;  %4154 = vmatpush1.bf16.xpose.msra.mxu1 %v3325_v40  ;;  %v4066_v2 = vld [vmem:[%s4515_s20 + $0xd0] sm:$0xf]  ;;  %v2430_v4 = vpop.permute.xlu0 %2429  ;;  %v2975_v13 = vpop.permute.xlu1 %2974  ;;  %v4094_v5 = vcombine.low %v3190_v55, %v3193_v61  ;;  %v3200_v7 = vsel %vm4517_vm2, %v3198_v58, %v3199_v52  ;;  %v3204_v9 = vsel %vm4517_vm2, %v4080_v56, %v3203_v59  ;;  %v3205_v8 = vrot.slane %v3203_v59, 4  ;;  %v4067_v10 = vld [vmem:[%s4515_s20 + $0xd4] sm:$0x1]  ;;  %v3346_v35 = vld [vmem:[%s5537_s21 + $0x8] sm:$0xff] }
 0x13e   : > { %4120 = vmatprep.mubr.msk.bf16.mxu0 %vm365_vm6, %v4297_v57  ;;  %v4300_v11 = vld [vmem:[%s5487_s10 + $0x14] ss:$8 sps:$4 sm:$0xff]   ;;  %2469 = vst.msk [vmem:[#allocation2 + $0x90] sm:$0xff] %vm2459_vm12, %v2430_v4  ;;  %v4095_v12 = vcombine.low %v3197_v48, %v3200_v7  ;;  %v3211_v14 = vsel %vm4517_vm2, %v4081_v62, %v3210_v63  ;;  %v3212_v15 = vrot.slane %v3210_v63, 4  ;;  %v4082_v16 = vrot.slane %v4062_v53, 9  ;;  %v3329_v47 = vld [vmem:[#allocation2 + $0x80] sm:$0xff] }
 0x13f   : > { %v3328_v17 = vld [vmem:[#allocation2 + $0x78] sm:$0xff]  ;;  %3014 = vst.msk [vmem:[#allocation2 + $0x90] sm:$0xff] %vm3004_vm13, %v2975_v13  ;;  %v3207_v18 = vsel %vm4517_vm2, %v3205_v8, %v3206_v60  ;;  %v3217_v19 = vrot.slane %v4063_v37, 5  ;;  %v3220_v20 = vrot.slane %v5502_v41, 5  ;;  %v4083_v21 = vrot.slane %v4065_v6, 9  ;;  %4121 = vmatprep.mubr.msk.bf16.mxu1 %vm365_vm6, %v4300_v11  ;;  %v3347_v3 = vld [vmem:[%s5537_s21 + $0x10] sm:$0xff] }
 0x140   : > { %3303 = vst.msk [vmem:[#allocation2 + $0xa8] sm:$0xff] %vm365_vm6, %v4094_v5  ;;  %4111 = vmatprep.subr.msk.bf16.mxu0 %vm365_vm6, %v3328_v17  ;;  %4139 = vmatprep.subr.msk.bf16.mxu1 %vm365_vm6, %v3328_v17  ;;  %3304 = vst.msk [vmem:[#allocation2 + $0xb8] sm:$0xff] %vm365_vm6, %v4095_v12  ;;  %v4096_v23 = vcombine.low %v3204_v9, %v3207_v18  ;;  %v3214_v24 = vsel %vm4517_vm2, %v3212_v15, %v3213_v32  ;;  %v3224_v25 = vrot.slane %v4066_v2, 5  ;;  %v3330_v27 = vld [vmem:[#allocation2 + $0x88] sm:$0xff]  ;;  %v4412_v34 = vmov 0   ;;  %v3348_v46 = vld [vmem:[%s5537_s21 + $0x18] sm:$0xff] }
 0x141   : > { %v3227_v26 = vrot.slane %v4067_v10, 5  ;;  %v4097_v28 = vcombine.low %v3211_v14, %v3214_v24  ;;  %v3218_v29 = vsel %vm4517_vm2, %v4082_v16, %v3217_v19  ;;  %v3219_v30 = vrot.slane %v3217_v19, 4  ;;  %4246 = vset.pattern.permute.xlu1 %v4412_v34  ;;  %4245 = vset.pattern.permute.xlu0 %v4412_v34  ;;  %s217_s6 = scalar_lea.vmem [#allocation3], %s3646_s24  ;;  %s4313_s20 = sshll.u32 %s4413_s11, 4  ;;  %s4314_s20 = int_to_ptr.vmem [resolvable:$false] %s4313_s20 }
 0x142   : > { %3305 = vst.msk [vmem:[#allocation2 + $0xc8] sm:$0xff] %vm365_vm6, %v4096_v23  ;;  %v3225_v31 = vsel %vm4517_vm2, %v4083_v21, %v3224_v25  ;;  %v3226_v33 = vrot.slane %v3224_v25, 4  ;;  %3356 = vperm.xlu1 %4246, %v3346_v35   ;;  %3351 = vperm.xlu0 %4245, %v3345_v36   ;;  %v4295_v36 = vld [vmem:[%s5487_s10] ss:$8 sps:$4 sm:$0xff]   ;;  %s3535_s7 = sshll.u32 %s217_s6, 4  ;;  %s4315_s21 = scalar_lea.vmem %s4314_s20, 512  ;;  %s5629_s7 = int_to_ptr.vmem [resolvable:$true] %s3535_s7 }
 0x143   : > { %v1210_v38 = vpop.permute.xlu1 %1209  ;;  %3306 = vst.msk [vmem:[#allocation2 + $0xd8] sm:$0xff] %vm365_vm6, %v4097_v28  ;;  %v3221_v39 = vsel %vm4517_vm2, %v3219_v30, %v3220_v20  ;;  %v3332_v0 = vld [vmem:[#allocation2 + $0x98] sm:$0xff]  ;;  %s4309_s16 = scalar_lea.vmem %s5629_s7, 256  ;;  %p4316_p4 = scmp.lt.s32.totalorder %s5629_s7, %s4314_s20 }
 0x144   : > { %v886_v40 = vpop.permute.xlu0 %885  ;;  %v4098_v43 = vcombine.low %v3218_v29, %v3221_v39  ;;  %v3228_v44 = vsel %vm4517_vm2, %v3226_v33, %v3227_v26  ;;  %p4310_p0 = scmp.ne.s32.totalorder %s5629_s7, %s4309_s16  ;;  %p4317_p5 = scmp.lt.s32.totalorder %s4315_s21, %s4309_s16 }
 0x145   : > { %3456 = vmatpush1.bf16.xpose.msra.mxu0 %v3327_v22  ;;  %4155 = vmatpush1.bf16.xpose.msra.mxu1 %v3327_v22  ;;  %924 = vst.msk [vmem:[#allocation2 + $0xa0] sm:$0xff] %vm913_vm7, %v886_v40  ;;  %v4099_v45 = vcombine.low %v3225_v31, %v3228_v44 }
 0x146   : > { %4112 = vmatprep.subr.msk.bf16.mxu0 %vm365_vm6, %v3330_v27  ;;  %4140 = vmatprep.subr.msk.bf16.mxu1 %vm365_vm6, %v3330_v27  ;;  %1248 = vst.msk [vmem:[#allocation2 + $0xa0] sm:$0xff] %vm1237_vm8, %v1210_v38  ;;  %v3331_v52 = vld [vmem:[#allocation2 + $0x90] sm:$0xff]  ;;  %p4311_p1 = pnand %p4310_p0, %p4485_p3  ;;  %p4318_p6 = por %p4317_p5, %p4316_p4 }
 0x147   : > { %3307 = vst.msk [vmem:[#allocation2 + $0xe8] sm:$0xff] %vm365_vm6, %v4098_v43  ;;  %3308 = vst.msk [vmem:[#allocation2 + $0xf8] sm:$0xff] %vm365_vm6, %v4099_v45  ;;  %3361 = vperm.xlu1 %4246, %v3347_v3   ;;  %3366 = vperm.xlu0 %4245, %v3348_v46   ;;  %v3334_v53 = vld [vmem:[#allocation2 + $0xa8] sm:$0xff]  ;;  %v3336_v37 = vld [vmem:[#allocation2 + $0xb8] sm:$0xff] }
 0x148   : > { %v1388_v49 = vpop.permute.xlu0 %1387  ;;  %v4298_v38 = vld [vmem:[%s5487_s10 + $0x10] ss:$8 sps:$4 sm:$0xff]   ;;  %s5627_s10 = scalar_lea.hbm %s5684_s3, %s4127_s5  ;;  %p4312_p2 = pneg %p4311_p1 }
 0x149   : > { %1426 = vst.msk [vmem:[#allocation2 + $0xa0] sm:$0xff] %vm1415_vm9, %v1388_v49  ;;  %v1933_v50 = vpop.permute.xlu1 %1932  ;;  %v3338_v62 = vld [vmem:[#allocation2 + $0xc8] sm:$0xff] }
 0x14a   : > { %1971 = vst.msk [vmem:[#allocation2 + $0xa0] sm:$0xff] %vm1960_vm10, %v1933_v50  ;;  %v3340_v8 = vld [vmem:[#allocation2 + $0xd8] sm:$0xff]  ;;  %p4319_p7 = pnand %p4318_p6, %p4312_p2 }
 0x14c   : > { %v2254_v51 = vpop.permute.xlu0 %2253 }
 0x14d   : > { %3458 = vmatpush1.bf16.xpose.msra.mxu0 %v3329_v47  ;;  %4156 = vmatpush1.bf16.xpose.msra.mxu1 %v3329_v47  ;;  %2292 = vst.msk [vmem:[#allocation2 + $0xa0] sm:$0xff] %vm2281_vm11, %v2254_v51  ;;  %v2432_v42 = vpop.permute.xlu1 %2431 }
 0x14e   : > { %4113 = vmatprep.subr.msk.bf16.mxu0 %vm365_vm6, %v3332_v0  ;;  %4141 = vmatprep.subr.msk.bf16.mxu1 %vm365_vm6, %v3332_v0  ;;  %2470 = vst.msk [vmem:[#allocation2 + $0xa0] sm:$0xff] %vm2459_vm12, %v2432_v42  ;;  %v3342_v19 = vld [vmem:[#allocation2 + $0xe8] sm:$0xff]  ;;  %v3344_v28 = vld [vmem:[#allocation2 + $0xf8] sm:$0xff] }
 0x153   : > { %v2977_v54 = vpop.permute.xlu0 %2976 }
 0x154   : > { %3015 = vst.msk [vmem:[#allocation2 + $0xa0] sm:$0xff] %vm3004_vm13, %v2977_v54 }
 0x155   : > { %3460 = vmatpush1.bf16.xpose.msra.mxu0 %v3331_v52  ;;  %4157 = vmatpush1.bf16.xpose.msra.mxu1 %v3331_v52 }
 0x156   : > { %4114 = vmatprep.subr.msk.bf16.mxu0 %vm365_vm6, %v3334_v53  ;;  %4142 = vmatprep.subr.msk.bf16.mxu1 %vm365_vm6, %v3334_v53  ;;  %v888_v55 = vpop.permute.xlu1 %887 }
 0x157   : > { %925 = vst.msk [vmem:[#allocation2 + $0xb0] sm:$0xff] %vm913_vm7, %v888_v55  ;;  %v1212_v1 = vpop.permute.xlu0 %1211 }
 0x158   : > { %1249 = vst.msk [vmem:[#allocation2 + $0xb0] sm:$0xff] %vm1237_vm8, %v1212_v1 }
 0x15a   : > { %v1390_v56 = vpop.permute.xlu1 %1389 }
 0x15b   : > { %1427 = vst.msk [vmem:[#allocation2 + $0xb0] sm:$0xff] %vm1415_vm9, %v1390_v56  ;;  %v3333_v41 = vld [vmem:[#allocation2 + $0xa0] sm:$0xff] }
 0x15d   : > { %v1935_v6 = vpop.permute.xlu0 %1934  ;;  %3462 = vmatpush1.bf16.xpose.msra.mxu0 %v3333_v41  ;;  %4158 = vmatpush1.bf16.xpose.msra.mxu1 %v3333_v41 }
 0x15e   : > { %v2256_v57 = vpop.permute.xlu1 %2255  ;;  %1972 = vst.msk [vmem:[#allocation2 + $0xb0] sm:$0xff] %vm1960_vm10, %v1935_v6  ;;  %4115 = vmatprep.subr.msk.bf16.mxu0 %vm365_vm6, %v3336_v37  ;;  %4143 = vmatprep.subr.msk.bf16.mxu1 %vm365_vm6, %v3336_v37 }
 0x15f   : > { %2293 = vst.msk [vmem:[#allocation2 + $0xb0] sm:$0xff] %vm2281_vm11, %v2256_v57 }
 0x161   : > { %v2434_v48 = vpop.permute.xlu0 %2433 }
 0x162   : > { %2471 = vst.msk [vmem:[#allocation2 + $0xb0] sm:$0xff] %vm2459_vm12, %v2434_v48 }
 0x164   : > { %v2979_v58 = vpop.permute.xlu1 %2978 }
 0x165   : > { %3016 = vst.msk [vmem:[#allocation2 + $0xb0] sm:$0xff] %vm3004_vm13, %v2979_v58 }
 0x168   : > { %v890_v59 = vpop.permute.xlu0 %889  ;;  %v1214_v60 = vpop.permute.xlu1 %1213 }
 0x169   : > { %926 = vst.msk [vmem:[#allocation2 + $0xc0] sm:$0xff] %vm913_vm7, %v890_v59 }
 0x16a   : > { %1250 = vst.msk [vmem:[#allocation2 + $0xc0] sm:$0xff] %vm1237_vm8, %v1214_v60 }
 0x16c   : > { %v1392_v61 = vpop.permute.xlu0 %1391  ;;  %v3335_v32 = vld [vmem:[#allocation2 + $0xb0] sm:$0xff] }
 0x16d   : > { %1428 = vst.msk [vmem:[#allocation2 + $0xc0] sm:$0xff] %vm1415_vm9, %v1392_v61  ;;  %3464 = vmatpush1.bf16.xpose.msra.mxu0 %v3335_v32  ;;  %4159 = vmatpush1.bf16.xpose.msra.mxu1 %v3335_v32 }
 0x16e   : > { %v1937_v63 = vpop.permute.xlu1 %1936  ;;  %4116 = vmatprep.subr.msk.bf16.mxu0 %vm365_vm6, %v3338_v62  ;;  %4144 = vmatprep.subr.msk.bf16.mxu1 %vm365_vm6, %v3338_v62 }
 0x16f   : > { %1973 = vst.msk [vmem:[#allocation2 + $0xc0] sm:$0xff] %vm1960_vm10, %v1937_v63 }
 0x170   : > { %v2258_v2 = vpop.permute.xlu0 %2257 }
 0x171   : > { %2294 = vst.msk [vmem:[#allocation2 + $0xc0] sm:$0xff] %vm2281_vm11, %v2258_v2 }
 0x172   : > { %v2436_v4 = vpop.permute.xlu1 %2435 }
 0x173   : > { %2472 = vst.msk [vmem:[#allocation2 + $0xc0] sm:$0xff] %vm2459_vm12, %v2436_v4 }
 0x177   : > { %v2981_v13 = vpop.permute.xlu0 %2980 }
 0x178   : > { %3017 = vst.msk [vmem:[#allocation2 + $0xc0] sm:$0xff] %vm3004_vm13, %v2981_v13 }
 0x179   : > { %v892_v5 = vpop.permute.xlu1 %891 }
 0x17a   : > { %927 = vst.msk [vmem:[#allocation2 + $0xd0] sm:$0xff] %vm913_vm7, %v892_v5 }
 0x17b   : > { %v1216_v7 = vpop.permute.xlu0 %1215 }
 0x17c   : > { %1251 = vst.msk [vmem:[#allocation2 + $0xd0] sm:$0xff] %vm1237_vm8, %v1216_v7 }
 0x17d   : > { %v1394_v9 = vpop.permute.xlu1 %1393 }
 0x17e   : > { %1429 = vst.msk [vmem:[#allocation2 + $0xd0] sm:$0xff] %vm1415_vm9, %v1394_v9 }
 0x17f   : > { %v3337_v10 = vld [vmem:[#allocation2 + $0xc0] sm:$0xff] }
 0x180   : > { %v1939_v11 = vpop.permute.xlu0 %1938  ;;  %3466 = vmatpush1.bf16.xpose.msra.mxu0 %v3337_v10  ;;  %4160 = vmatpush1.bf16.xpose.msra.mxu1 %v3337_v10 }
 0x181   : > { %1974 = vst.msk [vmem:[#allocation2 + $0xd0] sm:$0xff] %vm1960_vm10, %v1939_v11  ;;  %v2260_v12 = vpop.permute.xlu1 %2259  ;;  %4117 = vmatprep.subr.msk.bf16.mxu0 %vm365_vm6, %v3340_v8  ;;  %4145 = vmatprep.subr.msk.bf16.mxu1 %vm365_vm6, %v3340_v8 }
 0x182   : > { %2295 = vst.msk [vmem:[#allocation2 + $0xd0] sm:$0xff] %vm2281_vm11, %v2260_v12 }
 0x184   : > { %v2438_v14 = vpop.permute.xlu0 %2437 }
 0x185   : > { %2473 = vst.msk [vmem:[#allocation2 + $0xd0] sm:$0xff] %vm2459_vm12, %v2438_v14 }
 0x18b   : > { %v2983_v15 = vpop.permute.xlu1 %2982  ;;  %v894_v16 = vpop.permute.xlu0 %893 }
 0x18c   : > { %3018 = vst.msk [vmem:[#allocation2 + $0xd0] sm:$0xff] %vm3004_vm13, %v2983_v15 }
 0x18d   : > { %928 = vst.msk [vmem:[#allocation2 + $0xe0] sm:$0xff] %vm913_vm7, %v894_v16 }
 0x18f   : > { %v1218_v17 = vpop.permute.xlu1 %1217  ;;  %v1396_v18 = vpop.permute.xlu0 %1395 }
 0x190   : > { %1252 = vst.msk [vmem:[#allocation2 + $0xe0] sm:$0xff] %vm1237_vm8, %v1218_v17 }
 0x191   : > { %1430 = vst.msk [vmem:[#allocation2 + $0xe0] sm:$0xff] %vm1415_vm9, %v1396_v18 }
 0x193   : > { %v3339_v20 = vld [vmem:[#allocation2 + $0xd0] sm:$0xff]  ;;  %v1941_v21 = vpop.permute.xlu1 %1940  ;;  %v2262_v22 = vpop.permute.xlu0 %2261 }
 0x194   : > { %3468 = vmatpush1.bf16.xpose.msra.mxu0 %v3339_v20  ;;  %4161 = vmatpush1.bf16.xpose.msra.mxu1 %v3339_v20  ;;  %1975 = vst.msk [vmem:[#allocation2 + $0xe0] sm:$0xff] %vm1960_vm10, %v1941_v21 }
 0x195   : > { %4118 = vmatprep.subr.msk.bf16.mxu0 %vm365_vm6, %v3342_v19  ;;  %4146 = vmatprep.subr.msk.bf16.mxu1 %vm365_vm6, %v3342_v19  ;;  %2296 = vst.msk [vmem:[#allocation2 + $0xe0] sm:$0xff] %vm2281_vm11, %v2262_v22 }
 0x197   : > { %v2440_v23 = vpop.permute.xlu1 %2439 }
 0x198   : > { %2474 = vst.msk [vmem:[#allocation2 + $0xe0] sm:$0xff] %vm2459_vm12, %v2440_v23 }
 0x19b   : > { %v2985_v24 = vpop.permute.xlu0 %2984 }
 0x19c   : > { %3019 = vst.msk [vmem:[#allocation2 + $0xe0] sm:$0xff] %vm3004_vm13, %v2985_v24 }
 0x19d   : > { %v896_v25 = vpop.permute.xlu1 %895 }
 0x19e   : > { %929 = vst.msk [vmem:[#allocation2 + $0xf0] sm:$0xff] %vm913_vm7, %v896_v25 }
 0x19f   : > { %v1220_v26 = vpop.permute.xlu0 %1219 }
 0x1a0   : > { %1253 = vst.msk [vmem:[#allocation2 + $0xf0] sm:$0xff] %vm1237_vm8, %v1220_v26 }
 0x1a1   : > { %v1398_v27 = vpop.permute.xlu1 %1397 }
 0x1a2   : > { %1431 = vst.msk [vmem:[#allocation2 + $0xf0] sm:$0xff] %vm1415_vm9, %v1398_v27 }
 0x1a3   : > { %v3341_v29 = vld [vmem:[#allocation2 + $0xe0] sm:$0xff] }
 0x1a4   : > { %3470 = vmatpush1.bf16.xpose.msra.mxu0 %v3341_v29  ;;  %4162 = vmatpush1.bf16.xpose.msra.mxu1 %v3341_v29 }
 0x1a5   : > { %v1943_v30 = vpop.permute.xlu0 %1942  ;;  %v2264_v31 = vpop.permute.xlu1 %2263  ;;  %4119 = vmatprep.subr.msk.bf16.mxu0 %vm365_vm6, %v3344_v28  ;;  %4147 = vmatprep.subr.msk.bf16.mxu1 %vm365_vm6, %v3344_v28 }
 0x1a6   : > { %1976 = vst.msk [vmem:[#allocation2 + $0xf0] sm:$0xff] %vm1960_vm10, %v1943_v30 }
 0x1a7   : > { %2297 = vst.msk [vmem:[#allocation2 + $0xf0] sm:$0xff] %vm2281_vm11, %v2264_v31 }
 0x1a9   : > { %v2442_v33 = vpop.permute.xlu0 %2441 }
 0x1aa   : > { %2475 = vst.msk [vmem:[#allocation2 + $0xf0] sm:$0xff] %vm2459_vm12, %v2442_v33 }
 0x1ac   : > { %v2987_v34 = vpop.permute.xlu1 %2986 }
 0x1ad   : > { %3020 = vst.msk [vmem:[#allocation2 + $0xf0] sm:$0xff] %vm3004_vm13, %v2987_v34 }
 0x1b4   : > { %v3343_v35 = vld [vmem:[#allocation2 + $0xf0] sm:$0xff] }
 0x1b5   : > { %3472 = vmatpush1.bf16.xpose.msra.mxu0 %v3343_v35  ;;  %4163 = vmatpush1.bf16.xpose.msra.mxu1 %v3343_v35 }
 0x1bc   : > { %3474 = vmatmul.mubr.bf16.vlgmr.msra.gmra.mrb[0].mxu0 %v4295_v36  ;;  %3484 = vmatmul.mubr.bf16.vlgmr.msra.gmra.mrb[0].mxu1 %v4298_v38 }
 0x1c1   : > { %v3357_v39 = vpop.permute.xlu1 %3356  ;;  %v3352_v40 = vpop.permute.xlu0 %3351 }
 0x1c6   : > { %v3362_v43 = vpop.permute.xlu1 %3361  ;;  %v3367_v53 = vpop.permute.xlu0 %3366 }
 0x28f   : > { %v3475_v44 = vpop.f32.mrb[0].mxu0  ;;  %v3485_v45 = vpop.f32.mrb[0].mxu1 }
 0x290   : > { %v3477_v3 = vpop.f32.mrb[1].mxu0  ;;  %v3487_v46 = vpop.f32.mrb[1].mxu1  ;;  %v3476_v50 = vadd.f32 %v3475_v44, %v3352_v40  ;;  %v3486_v55 = vadd.f32 %v3485_v45, %v3362_v43 }
 0x291   : > { %v3479_v47 = vpop.f32.mrb[2].mxu0  ;;  %v3489_v49 = vpop.f32.mrb[2].mxu1  ;;  %v3478_v52 = vadd.f32 %v3477_v3, %v3352_v40  ;;  %v3488_v56 = vadd.f32 %v3487_v46, %v3362_v43 }
 0x292   : > { %v3480_v0 = vadd.f32 %v3479_v47, %v3357_v39  ;;  %v3481_v51 = vpop.f32.mrb[3].mxu0  ;;  %v3491_v42 = vpop.f32.mrb[3].mxu1  ;;  %v3490_v41 = vadd.f32 %v3489_v49, %v3367_v53 }
 0x293   : > { %v3482_v54 = vadd.f32 %v3481_v51, %v3357_v39  ;;  %v3492_v57 = vadd.f32 %v3491_v42, %v3367_v53 }
 0x294   : > { %v3494_v1 = vmax.f32 %v3476_v50, %v3480_v0 }
 0x295   : > { %v3495_v37 = vmax.f32 %v3478_v52, %v3482_v54 }
 0x296   : > { %v3496_v6 = vmax.f32 %v3494_v1, %v3486_v55 }
 0x297   : > { %v3497_v48 = vmax.f32 %v3495_v37, %v3488_v56 }
 0x298   : > { %v3498_v58 = vmax.f32 %v3496_v6, %v3490_v41 }
 0x299   : > { %v3499_v59 = vmax.f32 %v3497_v48, %v3492_v57 }
 0x29a   : > { %vm3500_vm14 = vcmp.ge.f32.partialorder %v3476_v50, %v3498_v58  ;;  %v4122_v60 = vmul.f32 -1.442695, %v3498_v58 }
 0x29b   : > { %vm3501_vm15 = vcmp.ge.f32.partialorder %v3478_v52, %v3499_v59  ;;  %v4123_v61 = vmul.f32 -1.442695, %v3499_v59 }
 0x29c   : > { %4301 = vpow2.f32 %v4122_v60 }
 0x29d   : > { %4303 = vpow2.f32 %v4123_v61 }
 0x2a6   : > { %v4302_v62 = vpop.eup %4301 }
 0x2a7   : > { %v4304_v63 = vpop.eup %4303  ;;  %v3508_v32 = vadd.f32 1.0, %v4302_v62 }
 0x2a8   : > { %v3509_v2 = vadd.f32 1.0, %v4304_v63 }
 0x2a9   : > { %4305 = vrcp.f32 %v3508_v32 }
 0x2aa   : > { %4307 = vrcp.f32 %v3509_v2 }
 0x2b3   : > { %v4306_v4 = vpop.eup %4305 }
 0x2b4   : > { %v4308_v13 = vpop.eup %4307  ;;  %v3514_v5 = vsel %vm3500_vm14, 0.0, %v4306_v4 }
 0x2b5   : > { %v3515_v7 = vsel %vm3501_vm15, 0.0, %v4308_v13  ;;  %3516 = vst [vmem:[%s217_s6] sm:$0xff] %v3514_v5 }
 0x2b6   : > { %3517 = vst [vmem:[%s217_s6 + $0x8] sm:$0xff] %v3515_v7 }
 0x2b7   : > { %4322 = shalt.err (!%p4319_p7)
}
 0x2b8   : > { %s4323_s4 = scalar_lea.hbm %s5627_s10, 256  ;;  %s4327_s28 = scalar_lea.hbm %s5684_s3, 1024 }
 0x2b9   : > { %p4324_p9 = scmp.ne.s32.totalorder %s5627_s10, %s4323_s4  ;;  %p4328_p12 = scmp.lt.u32.totalorder %s5627_s10, %s5684_s3 }
 0x2ba   : > { %p4329_p13 = scmp.lt.u32.totalorder %s4327_s28, %s4323_s4  ;;  %p4331_p1 = scmp.lt.u32.totalorder %s4323_s4, %s5627_s10 }
 0x2bb   : > { %p4325_p10 = pnand %p4324_p9, %p4485_p3 }
 0x2bc   : > { %p4330_p0 = por %p4329_p13, %p4328_p12 }
 0x2bd   : > { %p4326_p11 = pneg %p4325_p10 }
 0x2be   : > { %p4332_p2 = por %p4331_p1, %p4330_p0 }
 0x2c0   : > { %p4333_p4 = pnand %p4332_p2, %p4326_p11 }
 0x2c2   : > { %4336 = shalt.err (!%p4333_p4)
}
 0x2c3   : > { %4166 = dma.vmem_to_hbm [thread:$0]  (%p4485_p3), %s5629_s7, 256, %s5627_s10, %s3519_s15  }
 0x2c4 PF: > { %p4172_p5 = scmp.ge.s32.totalorder %s4403_s19, 2  ;;  %s3547_s6 = sand.u32 1, %s4375_s12  }
 0x2c5   : > { %s3548_s8 = scalar_lea.sflag [#allocation4], %s3547_s6 }
 0x2c6   : > { %p4169_p6 = pnand %p4172_p5, %p4494_p8 }
 0x2c8   : > { %4370 = dma.done.wait (!%p4169_p6), %s3548_s8, 256  }
 0x2c9   : > { %4372 = vsyncadd (!%p4169_p6), %s3548_s8, 4294967040  ;;  %s16_s19 = sadd.s32 1, %s4403_s19   ;;  %s5691_s12 = smov %s4379_s13 }
 0x2ca   : > { %p13_p7 = scmp.ge.s32.totalorder %s16_s19, 6   ;;  %s5692_s13 = smov %s4383_s14 }
 0x2cb   : > { %s5693_s14 = smov %s4503_s30  ;;  %s5694_s15 = smov %s4395_s17 }
 0x2cc   : > { %s5695_s16 = smov %s4399_s18  ;;  %s5696_s17 = smov %s5699_s22 }
 0x2cd   : > { %s5697_s18 = smov %s5703_s23  ;;  %15 = sbr.rel (!%p13_p7) target bundleno = 5 (0x5), region = 75 }
 0x2d4   :  { %3553 = vsyncpa [#allocation4], 1 }
 0x2d5   :  { %3555 = vsyncpa [#allocation4 + $0x1], 1 }

</bundles_post_ra>
